<compile_context>
chip_gen: v7x
topology: tpu7x:2x2x1
jax: 0.10.0
libtpu: 0.0.40
codegen_flags: <defaults>
</compile_context>

<pallas_src>
import math
import functools

import numpy as np
import jax
import jax.numpy as jnp
from jax import lax
from jax.experimental import pallas as pl
from jax.experimental.pallas import tpu as pltpu


def _round_up(x, m):
    return ((x + m - 1) // m) * m


# ---------------------------------------------------------------------------
# Pallas kernel: one (batch, q_tile, head) grid step.  Heads are the innermost
# ("arbitrary") axis; batch / q-tile are "parallel" (megacore).
# ---------------------------------------------------------------------------
def _deform_attn_kernel(packed_ref,   # (4*L*P, TQ) f32   rows = [x | y | z | attn-logit]
                        v_ref,        # (Len_in_pad, d_head) bf16, this head
                        wo_ref,       # (C, C) f32   full output projection
                        bo_ref,       # (1, C) f32
                        out_ref,      # (TQ, C) f32  written once at the last head
                        acc_ref,      # (H, TQ, d_head) f32 scratch: per-head features
                        *, n_heads, n_levels, n_points,
                        level_shapes, level_starts, level_sizes_pad, chunk_cols):
    TQ, C = out_ref.shape
    d_head = v_ref.shape[-1]
    LP = n_levels * n_points
    h_idx = pl.program_id(2)

    # One small XLU transpose so all elementwise math runs with the q-tile in
    # sublanes and the (level, point) axis in lanes.
    pk_t = packed_ref[...].T                                   # (TQ, 4*L*P)

    # ---- fused softmax over (levels x points) for this head / q-tile ----
    logits = pk_t[:, 3 * LP:4 * LP]                            # (TQ, L*P)
    m = jnp.max(logits, axis=-1, keepdims=True)
    ex = jnp.exp(logits - m)
    inv = pl.reciprocal(jnp.sum(ex, axis=-1, keepdims=True), approx=True)  # EUP slot
    wa = ex * inv                                              # (TQ, L*P)

    # ---- 3D deformable sampling, per level ----
    g = jnp.zeros((TQ, d_head), jnp.float32)
    for l in range(n_levels):
        d_l, h_l, w_l = level_shapes[l]                        # static python ints
        start = level_starts[l]                                # 8-aligned row offset
        size_pad = level_sizes_pad[l]                          # multiple of 8
        c0 = l * n_points

        # grid_sample(align_corners=False) convention: p = loc*size - 0.5
        xf = pk_t[:, 0 * LP + c0:0 * LP + c0 + n_points] * float(w_l) - 0.5
        yf = pk_t[:, 1 * LP + c0:1 * LP + c0 + n_points] * float(h_l) - 0.5
        zf = pk_t[:, 2 * LP + c0:2 * LP + c0 + n_points] * float(d_l) - 0.5
        wa_l = wa[:, c0:c0 + n_points]                         # (TQ, P)

        x0 = jnp.floor(xf); y0 = jnp.floor(yf); z0 = jnp.floor(zf)
        fx = xf - x0; fy = yf - y0; fz = zf - z0
        x0i = x0.astype(jnp.int32)
        y0i = y0.astype(jnp.int32)
        z0i = z0.astype(jnp.int32)

        # 8 trilinear corners: softmax-scaled weight (zeroed at OOB corners)
        # and flat in-level row index, all (TQ, P).
        corner_w, corner_ix = [], []
        for dz in (0, 1):
            zi = z0i + dz
            wz = fz if dz else 1.0 - fz
            zok = (zi >= 0) & (zi < d_l)
            for dy in (0, 1):
                yi = y0i + dy
                wzy = wz * (fy if dy else 1.0 - fy)
                zyok = zok & (yi >= 0) & (yi < h_l)
                for dx in (0, 1):
                    xi = x0i + dx
                    w3 = wzy * (fx if dx else 1.0 - fx)
                    ok = zyok & (xi >= 0) & (xi < w_l)
                    corner_w.append(jnp.where(ok, w3 * wa_l, 0.0))
                    corner_ix.append((zi * h_l + yi) * w_l + xi)

        # Build the gather/interp matrix for one column chunk and immediately
        # fold it through the MXU against that chunk's value rows.
        def gather_chunk(col0, width, g_in):
            cols = lax.broadcasted_iota(jnp.int32, (1, width), 1)
            oh = jnp.zeros((TQ, width), jnp.float32)
            for ci in range(8):
                fl = corner_ix[ci] - col0                      # (TQ, P)
                cw = corner_w[ci]
                for p in range(n_points):
                    oh = oh + jnp.where(fl[:, p:p + 1] == cols,
                                        cw[:, p:p + 1], 0.0)
            row0 = start + col0
            if not isinstance(col0, int):
                row0 = pl.multiple_of(row0, 8)                 # 8-aligned by construction
            v_c = v_ref[pl.ds(row0, width), :]                 # (width, d_head) bf16
            return g_in + jnp.dot(oh.astype(jnp.bfloat16), v_c,
                                  preferred_element_type=jnp.float32)

        if size_pad <= chunk_cols:
            g = gather_chunk(0, size_pad, g)
        else:
            n_full = size_pad // chunk_cols
            tail = size_pad - n_full * chunk_cols
            g = lax.fori_loop(
                0, n_full,
                lambda i, gg: gather_chunk(i * chunk_cols, chunk_cols, gg), g)
            if tail:
                g = gather_chunk(n_full * chunk_cols, tail, g)

    # Stash this head's gathered features; at the last head fold all heads
    # through one fat (TQ, C) x (C, C) output-projection matmul.
    acc_ref[h_idx] = g

    @pl.when(h_idx == n_heads - 1)
    def _finalize():
        feats = jnp.concatenate([acc_ref[hh] for hh in range(n_heads)], axis=-1)
        out_ref[...] = (jnp.dot(feats, wo_ref[...],
                                preferred_element_type=jnp.float32) + bo_ref[...])


# ---------------------------------------------------------------------------
# Wrapper: glue linears + value_proj in plain XLA, then the pallas_call.
# `level_shapes` is a tuple of (D, H, W) *Python ints* (static model geometry).
# ---------------------------------------------------------------------------
def flash_deform_attn_3d(params, query, reference_points, input_flatten,
                         level_shapes, input_padding_mask=None,
                         *, n_heads, n_levels, n_points, chunk_cols=512):
    N, len_q, C = query.shape
    _, len_in, _ = input_flatten.shape
    d_head = C // n_heads
    LP = n_levels * n_points
    assert chunk_cols % 8 == 0

    level_shapes = tuple((int(d), int(h), int(w)) for d, h, w in level_shapes)
    sizes = [d * h * w for d, h, w in level_shapes]
    assert sum(sizes) == len_in
    starts = [0]
    for s in sizes[:-1]:
        starts.append(starts[-1] + s)
    sizes_pad = [_round_up(s, 8) for s in sizes]               # 8-row aligned levels
    starts_pad = [0]
    for s in sizes_pad[:-1]:
        starts_pad.append(starts_pad[-1] + s)
    len_in_pad = sum(sizes_pad)

    # --- sampling offsets / attention logits (small glue linears) ---
    so = (query @ params["w_so"] + params["b_so"]).reshape(
        N, len_q, n_heads, n_levels, n_points, 3)
    attn = (query @ params["w_aw"] + params["b_aw"]).reshape(
        N, len_q, n_heads, n_levels, n_points)

    if reference_points.shape[-1] == 3:
        normalizer = jnp.asarray([[w, h, d] for d, h, w in level_shapes], jnp.float32)
        loc = (reference_points[:, :, None, :, None, :] +
               so / normalizer[None, None, None, :, None, :])
    elif reference_points.shape[-1] == 6:
        loc = (reference_points[:, :, None, :, None, :3] +
               so / n_points * reference_points[:, :, None, :, None, 3:] * 0.5)
    else:
        raise ValueError("Last dim of reference_points must be 3 or 6")
    # faithful to `.half()` in the PyTorch module: quantize locations to fp16
    loc = loc.astype(jnp.float16).astype(jnp.float32)          # (N, Lq, H, L, P, 3)

    # --- value projection + padding mask (hoisted out of the kernel) ---
    value = input_flatten @ params["w_v"] + params["b_v"]
    if input_padding_mask is not None:
        value = jnp.where(input_padding_mask[..., None], 0.0, value)
    value = value.reshape(N, len_in, n_heads, d_head).transpose(0, 2, 1, 3)
    # 8-row-align every level's region so the in-kernel per-level slice is free.
    segs = []
    for l in range(n_levels):
        seg = value[:, :, starts[l]:starts[l] + sizes[l], :]
        if sizes_pad[l] != sizes[l]:
            seg = jnp.pad(seg, ((0, 0), (0, 0), (0, sizes_pad[l] - sizes[l]), (0, 0)))
        segs.append(seg)
    value = jnp.concatenate(segs, axis=2).astype(jnp.bfloat16)  # (N, H, Len_in_pad, dh)

    # --- lane-dense packed [x | y | z | attn-logit] tensor: (N, H, 4*L*P, Lq) ---
    loc_t = jnp.transpose(loc, (0, 2, 5, 3, 4, 1))             # (N, H, 3, L, P, Lq)
    attn_t = jnp.transpose(attn, (0, 2, 3, 4, 1))[:, :, None]  # (N, H, 1, L, P, Lq)
    packed = jnp.concatenate([loc_t, attn_t], axis=2)          # (N, H, 4, L, P, Lq)
    packed = packed.reshape(N, n_heads, 4 * LP, len_q)

    # q-tiling: q-tile is the lane dim -> multiple of 128 when tiling, else one tile.
    TQ = 256 if len_q >= 256 else _round_up(len_q, 8)
    lq_pad = _round_up(len_q, TQ)
    if lq_pad != len_q:
        packed = jnp.pad(packed, ((0, 0), (0, 0), (0, 0), (0, lq_pad - len_q)))
    nq = lq_pad // TQ

    b_o2 = params["b_o"][None, :]

    kernel = functools.partial(
        _deform_attn_kernel,
        n_heads=n_heads, n_levels=n_levels, n_points=n_points,
        level_shapes=level_shapes,
        level_starts=tuple(starts_pad),
        level_sizes_pad=tuple(sizes_pad),
        chunk_cols=chunk_cols)

    # ---- advisory cost estimate + scoped VMEM budget ----
    steps = N * nq * n_heads
    gather_flops = 2 * TQ * len_in_pad * d_head                 # MXU gather matmul / step
    interp_flops = 3 * 8 * n_points * TQ * sum(sizes_pad)       # compare/select volume
    flops = steps * (gather_flops + interp_flops) + N * nq * 2 * TQ * C * C
    bytes_accessed = (steps * len_in_pad * d_head * 2           # value re-reads
                      + N * n_heads * 4 * LP * lq_pad * 4       # packed loc/attn
                      + N * lq_pad * C * 4 + C * C * 4)         # output + w_o
    cost = pl.CostEstimate(flops=int(flops),
                           transcendentals=int(N * lq_pad * n_heads * LP),
                           bytes_accessed=int(bytes_accessed))

    dh_lanes = max(d_head, 128)                                 # lane padding in VMEM
    est = (2 * len_in_pad * dh_lanes * 2                        # value block (dbl-buffered)
           + 2 * 4 * LP * TQ * 4                                # packed block
           + 2 * TQ * max(C, 128) * 4                           # output block
           + 2 * C * max(C, 128) * 4                            # w_o
           + n_heads * TQ * dh_lanes * 4                        # per-head scratch
           + 6 * TQ * min(chunk_cols, max(sizes_pad)) * 4)      # one-hot working set
    vmem_limit = int(min(max(2 * est, 32 << 20), 64 << 20))     # safe on v5e/v6e/v7x

    out = pl.pallas_call(
        kernel,
        out_shape=jax.ShapeDtypeStruct((N, lq_pad, C), jnp.float32),
        grid=(N, nq, n_heads),
        in_specs=[
            pl.BlockSpec((None, None, 4 * LP, TQ), lambda b, q, h: (b, h, 0, q)),
            pl.BlockSpec((None, None, len_in_pad, d_head), lambda b, q, h: (b, h, 0, 0)),
            pl.BlockSpec((C, C), lambda b, q, h: (0, 0)),
            pl.BlockSpec((1, C), lambda b, q, h: (0, 0)),
        ],
        out_specs=pl.BlockSpec((None, TQ, C), lambda b, q, h: (b, q, 0)),
        scratch_shapes=[pltpu.VMEM((n_heads, TQ, d_head), jnp.float32)],
        compiler_params=pltpu.CompilerParams(
            dimension_semantics=("parallel", "parallel", "arbitrary"),
            vmem_limit_bytes=vmem_limit),
        cost_estimate=cost,
    )(packed, value, params["w_o"], b_o2)

    return out[:, :len_q, :]


# ---------------------------------------------------------------------------
# Deterministic parameter init (shapes / init scheme from the module)
# ---------------------------------------------------------------------------
def init_params(key, d_model, n_heads, n_levels, n_points):
    H, L, P = n_heads, n_levels, n_points
    k1, k2, k3 = jax.random.split(key, 3)

    # sampling_offsets: zero weight + geometric direction bias (_reset_parameters)
    w_so = jnp.zeros((d_model, H * L * P * 3), jnp.float32)
    thetas = jnp.arange(H, dtype=jnp.float32) * (2.0 * math.pi / H)
    phis = jnp.tile(jnp.array([math.pi / 4, -math.pi / 4], jnp.float32),
                    (H + 1) // 2)[:H]
    dirs = jnp.stack([jnp.cos(thetas) * jnp.cos(phis),
                      jnp.sin(thetas) * jnp.cos(phis),
                      jnp.sin(phis)], axis=-1)                  # (H, 3)
    grid = jnp.tile(dirs[:, None, None, :], (1, L, P, 1))       # (H, L, P, 3)
    scales = (jnp.arange(P, dtype=jnp.float32) + 1.0) / (P + 1.0)
    grid = grid * scales[None, None, :, None]
    b_so = grid.reshape(-1)

    # attention_weights: small deterministic random so the fused softmax is
    # exercised non-trivially (reference init is all zeros -> uniform softmax)
    w_aw = 0.1 * jax.random.normal(k1, (d_model, H * L * P), jnp.float32)
    b_aw = jnp.zeros((H * L * P,), jnp.float32)

    # value_proj / output_proj: xavier-uniform-like, zero bias
    a = math.sqrt(6.0 / (d_model + d_model))
    w_v = jax.random.uniform(k2, (d_model, d_model), jnp.float32, -a, a)
    b_v = jnp.zeros((d_model,), jnp.float32)
    w_o = jax.random.uniform(k3, (d_model, d_model), jnp.float32, -a, a)
    b_o = jnp.zeros((d_model,), jnp.float32)
    return dict(w_so=w_so, b_so=b_so, w_aw=w_aw, b_aw=b_aw,
                w_v=w_v, b_v=b_v, w_o=w_o, b_o=b_o)


# ---------------------------------------------------------------------------
# Pure-JAX fp32 reference (validation)
# ---------------------------------------------------------------------------
def reference_forward(params, query, reference_points, input_flatten,
                      spatial_shapes, level_start, padding_mask,
                      n_heads, n_levels, n_points):
    N, len_q, C = query.shape
    _, len_in, _ = input_flatten.shape
    Dh = C // n_heads
    value = input_flatten @ params["w_v"] + params["b_v"]
    if padding_mask is not None:
        value = jnp.where(padding_mask[..., None], 0.0, value)
    value = value.reshape(N, len_in, n_heads, Dh)
    so = (query @ params["w_so"] + params["b_so"]).reshape(
        N, len_q, n_heads, n_levels, n_points, 3)
    attn = (query @ params["w_aw"] + params["b_aw"]).reshape(
        N, len_q, n_heads, n_levels * n_points)
    normalizer = spatial_shapes[:, ::-1].astype(jnp.float32)
    loc = (reference_points[:, :, None, :, None, :] +
           so / normalizer[None, None, None, :, None, :])
    loc = loc.astype(jnp.float16).astype(jnp.float32)
    w = jax.nn.softmax(attn, -1).reshape(N, len_q, n_heads, n_levels, n_points)
    out = jnp.zeros((N, len_q, n_heads, Dh), jnp.float32)
    for l in range(n_levels):
        D_, H_, W_ = (int(spatial_shapes[l, 0]), int(spatial_shapes[l, 1]),
                      int(spatial_shapes[l, 2]))
        s0 = int(level_start[l])
        v_l = value[:, s0:s0 + D_ * H_ * W_]
        x = loc[:, :, :, l, :, 0] * W_ - 0.5
        y = loc[:, :, :, l, :, 1] * H_ - 0.5
        z = loc[:, :, :, l, :, 2] * D_ - 0.5
        x0 = jnp.floor(x); y0 = jnp.floor(y); z0 = jnp.floor(z)
        fx = x - x0; fy = y - y0; fz = z - z0
        x0 = x0.astype(jnp.int32); y0 = y0.astype(jnp.int32); z0 = z0.astype(jnp.int32)
        wl = w[:, :, :, l, :]
        for dz in (0, 1):
            for dy in (0, 1):
                for dx in (0, 1):
                    xi = x0 + dx; yi = y0 + dy; zi = z0 + dz
                    tw = ((fx if dx else 1 - fx) * (fy if dy else 1 - fy) *
                          (fz if dz else 1 - fz))
                    inb = ((xi >= 0) & (xi < W_) & (yi >= 0) & (yi < H_) &
                           (zi >= 0) & (zi < D_))
                    cw = jnp.where(inb, tw * wl, 0.0)
                    flat = jnp.clip((zi * H_ + yi) * W_ + xi, 0, D_ * H_ * W_ - 1)
                    oh = (flat[..., None] ==
                          jnp.arange(D_ * H_ * W_)[None, None, None, None, :]
                          ).astype(jnp.float32)
                    out = out + jnp.einsum('nqhp,nqhpk,nkhc->nqhc', cw, oh, v_l)
    out = out.reshape(N, len_q, C)
    return out @ params["w_o"] + params["b_o"]


# ---------------------------------------------------------------------------
if __name__ == "__main__":
    d_model, n_heads, n_levels, n_points = 32, 4, 2, 4
    N, len_q = 2, 8
    spatial_np = np.array([[2, 4, 4], [2, 2, 2]], np.int32)      # (D, H, W) per level
    level_shapes = tuple(tuple(int(v) for v in row) for row in spatial_np)
    sizes = spatial_np[:, 0] * spatial_np[:, 1] * spatial_np[:, 2]
    len_in = int(sizes.sum())                                    # 40
    level_start = np.concatenate([[0], np.cumsum(sizes)[:-1]]).astype(np.int32)
    spatial = jnp.asarray(spatial_np)

    key = jax.random.PRNGKey(0)
    kq, kv, kr, kp = jax.random.split(key, 4)
    query = jax.random.normal(kq, (N, len_q, d_model), jnp.float32)
    input_flatten = jax.random.normal(kv, (N, len_in, d_model), jnp.float32)
    reference_points = jax.random.uniform(kr, (N, len_q, n_levels, 3), jnp.float32)
    params = init_params(kp, d_model, n_heads, n_levels, n_points)

    # TODO(synk): im2col_step and use_reg are CUDA-kernel tuning knobs with no
    # semantic effect on the forward output; they are intentionally ignored.
    out = flash_deform_attn_3d(params, query, reference_points, input_flatten,
                               level_shapes, None,
                               n_heads=n_heads, n_levels=n_levels,
                               n_points=n_points)
    out = jax.block_until_ready(out)

    ref = reference_forward(params, query, reference_points, input_flatten,
                            spatial, level_start, None,
                            n_heads, n_levels, n_points)
    assert out.shape == (N, len_q, d_model)
    err = float(jnp.max(jnp.abs(out - ref)))
    # Tolerance reflects the bf16 MXU operands inside the kernel (value rows and
    # gather/interp weights) + the approx reciprocal, consistent with the
    # half-precision internals of the original CUDA kernel; the reference is fp32.
    assert jnp.allclose(out, ref, atol=3e-2, rtol=3e-2), f"max abs err {err}"
    print("KERNEL_OK")
</pallas_src>

<mosaic_0001>
module attributes {stable_mosaic.version = 11 : i64} {
  func.func @_deform_attn_kernel(%arg0: i32, %arg1: i32, %arg2: i32, %arg3: memref<1x1x32x8xf32, #tpu.memory_space<vmem>>, %arg4: memref<1x1x40x8xbf16, #tpu.memory_space<vmem>>, %arg5: memref<32x32xf32, #tpu.memory_space<vmem>>, %arg6: memref<1x32xf32, #tpu.memory_space<vmem>>, %arg7: memref<1x8x32xf32, #tpu.memory_space<vmem>>, %arg8: memref<4x8x8xf32, #tpu.memory_space<vmem>>) attributes {dimension_semantics = [#tpu.dimension_semantics<parallel>, #tpu.dimension_semantics<parallel>, #tpu.dimension_semantics<arbitrary>], iteration_bounds = array<i64: 2, 1, 4>, scalar_prefetch = 0 : i64, scratch_operands = 1 : i64, tpu.core_type = #tpu.core_type<tc>, window_params = [{transform_indices = @transform_0, window_bounds = array<i64: 1, 1, 32, 8>}, {transform_indices = @transform_1, window_bounds = array<i64: 1, 1, 40, 8>}, {pipeline_mode = #tpu.pipeline_mode<synchronous>, transform_indices = @transform_2, window_bounds = array<i64: 32, 32>}, {pipeline_mode = #tpu.pipeline_mode<synchronous>, transform_indices = @transform_3, window_bounds = array<i64: 1, 32>}, {transform_indices = @transform_4, window_bounds = array<i64: 1, 8, 32>}]} {
    %c0 = arith.constant 0 : index
    %c0_0 = arith.constant 0 : index
    %c0_1 = arith.constant 0 : index
    %c0_2 = arith.constant 0 : index
    %0 = vector.load %arg3[%c0, %c0_0, %c0_1, %c0_2] : memref<1x1x32x8xf32, #tpu.memory_space<vmem>>, vector<1x1x32x8xf32>
    %1 = vector.shape_cast %0 : vector<1x1x32x8xf32> to vector<32x8xf32>
    %2 = tpu.transpose %1, [1, 0] : vector<32x8xf32> -> vector<8x32xf32>
    %3 = vector.extract_strided_slice %2 {offsets = [0, 24], sizes = [8, 8], strides = [1, 1]} : vector<8x32xf32> to vector<8x8xf32>
    %cst = arith.constant dense<0xFF800000> : vector<8xf32>
    %4 = vector.multi_reduction <maximumf>, %3, %cst [1] : vector<8x8xf32> to vector<8xf32>
    %5 = vector.shape_cast %4 : vector<8xf32> to vector<8x1xf32>
    %6 = vector.broadcast %5 : vector<8x1xf32> to vector<8x8xf32>
    %7 = arith.subf %3, %6 : vector<8x8xf32>
    %8 = math.exp %7 : vector<8x8xf32>
    %cst_3 = arith.constant dense<0.000000e+00> : vector<8xf32>
    %9 = vector.multi_reduction <add>, %8, %cst_3 [1] : vector<8x8xf32> to vector<8xf32>
    %10 = vector.shape_cast %9 : vector<8xf32> to vector<8x1xf32>
    %11 = tpu.reciprocal %10 {approx = true} : vector<8x1xf32> -> vector<8x1xf32>
    %12 = vector.broadcast %11 : vector<8x1xf32> to vector<8x8xf32>
    %13 = arith.mulf %8, %12 : vector<8x8xf32>
    %cst_4 = arith.constant 0.000000e+00 : f32
    %14 = vector.broadcast %cst_4 : f32 to vector<8x8xf32>
    %15 = vector.extract_strided_slice %2 {offsets = [0, 0], sizes = [8, 4], strides = [1, 1]} : vector<8x32xf32> to vector<8x4xf32>
    %cst_5 = arith.constant 4.000000e+00 : f32
    %16 = vector.broadcast %cst_5 : f32 to vector<8x4xf32>
    %17 = arith.mulf %15, %16 : vector<8x4xf32>
    %cst_6 = arith.constant 5.000000e-01 : f32
    %18 = vector.broadcast %cst_6 : f32 to vector<8x4xf32>
    %19 = arith.subf %17, %18 : vector<8x4xf32>
    %20 = vector.extract_strided_slice %2 {offsets = [0, 8], sizes = [8, 4], strides = [1, 1]} : vector<8x32xf32> to vector<8x4xf32>
    %cst_7 = arith.constant 4.000000e+00 : f32
    %21 = vector.broadcast %cst_7 : f32 to vector<8x4xf32>
    %22 = arith.mulf %20, %21 : vector<8x4xf32>
    %cst_8 = arith.constant 5.000000e-01 : f32
    %23 = vector.broadcast %cst_8 : f32 to vector<8x4xf32>
    %24 = arith.subf %22, %23 : vector<8x4xf32>
    %25 = vector.extract_strided_slice %2 {offsets = [0, 16], sizes = [8, 4], strides = [1, 1]} : vector<8x32xf32> to vector<8x4xf32>
    %cst_9 = arith.constant 2.000000e+00 : f32
    %26 = vector.broadcast %cst_9 : f32 to vector<8x4xf32>
    %27 = arith.mulf %25, %26 : vector<8x4xf32>
    %cst_10 = arith.constant 5.000000e-01 : f32
    %28 = vector.broadcast %cst_10 : f32 to vector<8x4xf32>
    %29 = arith.subf %27, %28 : vector<8x4xf32>
    %30 = vector.extract_strided_slice %13 {offsets = [0, 0], sizes = [8, 4], strides = [1, 1]} : vector<8x8xf32> to vector<8x4xf32>
    %31 = math.floor %19 : vector<8x4xf32>
    %32 = math.floor %24 : vector<8x4xf32>
    %33 = math.floor %29 : vector<8x4xf32>
    %34 = arith.subf %19, %31 : vector<8x4xf32>
    %35 = arith.subf %24, %32 : vector<8x4xf32>
    %36 = arith.subf %29, %33 : vector<8x4xf32>
    %37 = arith.fptosi %31 : vector<8x4xf32> to vector<8x4xi32>
    %38 = arith.fptosi %32 : vector<8x4xf32> to vector<8x4xi32>
    %39 = arith.fptosi %33 : vector<8x4xf32> to vector<8x4xi32>
    %c0_i32 = arith.constant 0 : i32
    %40 = vector.broadcast %c0_i32 : i32 to vector<8x4xi32>
    %41 = arith.addi %39, %40 : vector<8x4xi32>
    %cst_11 = arith.constant 1.000000e+00 : f32
    %42 = vector.broadcast %cst_11 : f32 to vector<8x4xf32>
    %43 = arith.subf %42, %36 : vector<8x4xf32>
    %c0_i32_12 = arith.constant 0 : i32
    %44 = vector.broadcast %c0_i32_12 : i32 to vector<8x4xi32>
    %45 = arith.cmpi sge, %41, %44 : vector<8x4xi32>
    %c2_i32 = arith.constant 2 : i32
    %46 = vector.broadcast %c2_i32 : i32 to vector<8x4xi32>
    %47 = arith.cmpi slt, %41, %46 : vector<8x4xi32>
    %48 = arith.andi %45, %47 : vector<8x4xi1>
    %c0_i32_13 = arith.constant 0 : i32
    %49 = vector.broadcast %c0_i32_13 : i32 to vector<8x4xi32>
    %50 = arith.addi %38, %49 : vector<8x4xi32>
    %cst_14 = arith.constant 1.000000e+00 : f32
    %51 = vector.broadcast %cst_14 : f32 to vector<8x4xf32>
    %52 = arith.subf %51, %35 : vector<8x4xf32>
    %53 = arith.mulf %43, %52 : vector<8x4xf32>
    %c0_i32_15 = arith.constant 0 : i32
    %54 = vector.broadcast %c0_i32_15 : i32 to vector<8x4xi32>
    %55 = arith.cmpi sge, %50, %54 : vector<8x4xi32>
    %56 = arith.andi %48, %55 : vector<8x4xi1>
    %c4_i32 = arith.constant 4 : i32
    %57 = vector.broadcast %c4_i32 : i32 to vector<8x4xi32>
    %58 = arith.cmpi slt, %50, %57 : vector<8x4xi32>
    %59 = arith.andi %56, %58 : vector<8x4xi1>
    %c0_i32_16 = arith.constant 0 : i32
    %60 = vector.broadcast %c0_i32_16 : i32 to vector<8x4xi32>
    %61 = arith.addi %37, %60 : vector<8x4xi32>
    %cst_17 = arith.constant 1.000000e+00 : f32
    %62 = vector.broadcast %cst_17 : f32 to vector<8x4xf32>
    %63 = arith.subf %62, %34 : vector<8x4xf32>
    %64 = arith.mulf %53, %63 : vector<8x4xf32>
    %c0_i32_18 = arith.constant 0 : i32
    %65 = vector.broadcast %c0_i32_18 : i32 to vector<8x4xi32>
    %66 = arith.cmpi sge, %61, %65 : vector<8x4xi32>
    %67 = arith.andi %59, %66 : vector<8x4xi1>
    %c4_i32_19 = arith.constant 4 : i32
    %68 = vector.broadcast %c4_i32_19 : i32 to vector<8x4xi32>
    %69 = arith.cmpi slt, %61, %68 : vector<8x4xi32>
    %70 = arith.andi %67, %69 : vector<8x4xi1>
    %71 = arith.mulf %64, %30 : vector<8x4xf32>
    %cst_20 = arith.constant 0.000000e+00 : f32
    %72 = vector.broadcast %cst_20 : f32 to vector<8x4xf32>
    %73 = arith.select %70, %71, %72 : vector<8x4xi1>, vector<8x4xf32>
    %c4_i32_21 = arith.constant 4 : i32
    %74 = vector.broadcast %c4_i32_21 : i32 to vector<8x4xi32>
    %75 = arith.muli %41, %74 : vector<8x4xi32>
    %76 = arith.addi %75, %50 : vector<8x4xi32>
    %c4_i32_22 = arith.constant 4 : i32
    %77 = vector.broadcast %c4_i32_22 : i32 to vector<8x4xi32>
    %78 = arith.muli %76, %77 : vector<8x4xi32>
    %79 = arith.addi %78, %61 : vector<8x4xi32>
    %c1_i32 = arith.constant 1 : i32
    %80 = vector.broadcast %c1_i32 : i32 to vector<8x4xi32>
    %81 = arith.addi %37, %80 : vector<8x4xi32>
    %82 = arith.mulf %53, %34 : vector<8x4xf32>
    %c0_i32_23 = arith.constant 0 : i32
    %83 = vector.broadcast %c0_i32_23 : i32 to vector<8x4xi32>
    %84 = arith.cmpi sge, %81, %83 : vector<8x4xi32>
    %85 = arith.andi %59, %84 : vector<8x4xi1>
    %c4_i32_24 = arith.constant 4 : i32
    %86 = vector.broadcast %c4_i32_24 : i32 to vector<8x4xi32>
    %87 = arith.cmpi slt, %81, %86 : vector<8x4xi32>
    %88 = arith.andi %85, %87 : vector<8x4xi1>
    %89 = arith.mulf %82, %30 : vector<8x4xf32>
    %cst_25 = arith.constant 0.000000e+00 : f32
    %90 = vector.broadcast %cst_25 : f32 to vector<8x4xf32>
    %91 = arith.select %88, %89, %90 : vector<8x4xi1>, vector<8x4xf32>
    %c4_i32_26 = arith.constant 4 : i32
    %92 = vector.broadcast %c4_i32_26 : i32 to vector<8x4xi32>
    %93 = arith.muli %41, %92 : vector<8x4xi32>
    %94 = arith.addi %93, %50 : vector<8x4xi32>
    %c4_i32_27 = arith.constant 4 : i32
    %95 = vector.broadcast %c4_i32_27 : i32 to vector<8x4xi32>
    %96 = arith.muli %94, %95 : vector<8x4xi32>
    %97 = arith.addi %96, %81 : vector<8x4xi32>
    %c1_i32_28 = arith.constant 1 : i32
    %98 = vector.broadcast %c1_i32_28 : i32 to vector<8x4xi32>
    %99 = arith.addi %38, %98 : vector<8x4xi32>
    %100 = arith.mulf %43, %35 : vector<8x4xf32>
    %c0_i32_29 = arith.constant 0 : i32
    %101 = vector.broadcast %c0_i32_29 : i32 to vector<8x4xi32>
    %102 = arith.cmpi sge, %99, %101 : vector<8x4xi32>
    %103 = arith.andi %48, %102 : vector<8x4xi1>
    %c4_i32_30 = arith.constant 4 : i32
    %104 = vector.broadcast %c4_i32_30 : i32 to vector<8x4xi32>
    %105 = arith.cmpi slt, %99, %104 : vector<8x4xi32>
    %106 = arith.andi %103, %105 : vector<8x4xi1>
    %c0_i32_31 = arith.constant 0 : i32
    %107 = vector.broadcast %c0_i32_31 : i32 to vector<8x4xi32>
    %108 = arith.addi %37, %107 : vector<8x4xi32>
    %cst_32 = arith.constant 1.000000e+00 : f32
    %109 = vector.broadcast %cst_32 : f32 to vector<8x4xf32>
    %110 = arith.subf %109, %34 : vector<8x4xf32>
    %111 = arith.mulf %100, %110 : vector<8x4xf32>
    %c0_i32_33 = arith.constant 0 : i32
    %112 = vector.broadcast %c0_i32_33 : i32 to vector<8x4xi32>
    %113 = arith.cmpi sge, %108, %112 : vector<8x4xi32>
    %114 = arith.andi %106, %113 : vector<8x4xi1>
    %c4_i32_34 = arith.constant 4 : i32
    %115 = vector.broadcast %c4_i32_34 : i32 to vector<8x4xi32>
    %116 = arith.cmpi slt, %108, %115 : vector<8x4xi32>
    %117 = arith.andi %114, %116 : vector<8x4xi1>
    %118 = arith.mulf %111, %30 : vector<8x4xf32>
    %cst_35 = arith.constant 0.000000e+00 : f32
    %119 = vector.broadcast %cst_35 : f32 to vector<8x4xf32>
    %120 = arith.select %117, %118, %119 : vector<8x4xi1>, vector<8x4xf32>
    %c4_i32_36 = arith.constant 4 : i32
    %121 = vector.broadcast %c4_i32_36 : i32 to vector<8x4xi32>
    %122 = arith.muli %41, %121 : vector<8x4xi32>
    %123 = arith.addi %122, %99 : vector<8x4xi32>
    %c4_i32_37 = arith.constant 4 : i32
    %124 = vector.broadcast %c4_i32_37 : i32 to vector<8x4xi32>
    %125 = arith.muli %123, %124 : vector<8x4xi32>
    %126 = arith.addi %125, %108 : vector<8x4xi32>
    %c1_i32_38 = arith.constant 1 : i32
    %127 = vector.broadcast %c1_i32_38 : i32 to vector<8x4xi32>
    %128 = arith.addi %37, %127 : vector<8x4xi32>
    %129 = arith.mulf %100, %34 : vector<8x4xf32>
    %c0_i32_39 = arith.constant 0 : i32
    %130 = vector.broadcast %c0_i32_39 : i32 to vector<8x4xi32>
    %131 = arith.cmpi sge, %128, %130 : vector<8x4xi32>
    %132 = arith.andi %106, %131 : vector<8x4xi1>
    %c4_i32_40 = arith.constant 4 : i32
    %133 = vector.broadcast %c4_i32_40 : i32 to vector<8x4xi32>
    %134 = arith.cmpi slt, %128, %133 : vector<8x4xi32>
    %135 = arith.andi %132, %134 : vector<8x4xi1>
    %136 = arith.mulf %129, %30 : vector<8x4xf32>
    %cst_41 = arith.constant 0.000000e+00 : f32
    %137 = vector.broadcast %cst_41 : f32 to vector<8x4xf32>
    %138 = arith.select %135, %136, %137 : vector<8x4xi1>, vector<8x4xf32>
    %c4_i32_42 = arith.constant 4 : i32
    %139 = vector.broadcast %c4_i32_42 : i32 to vector<8x4xi32>
    %140 = arith.muli %41, %139 : vector<8x4xi32>
    %141 = arith.addi %140, %99 : vector<8x4xi32>
    %c4_i32_43 = arith.constant 4 : i32
    %142 = vector.broadcast %c4_i32_43 : i32 to vector<8x4xi32>
    %143 = arith.muli %141, %142 : vector<8x4xi32>
    %144 = arith.addi %143, %128 : vector<8x4xi32>
    %c1_i32_44 = arith.constant 1 : i32
    %145 = vector.broadcast %c1_i32_44 : i32 to vector<8x4xi32>
    %146 = arith.addi %39, %145 : vector<8x4xi32>
    %c0_i32_45 = arith.constant 0 : i32
    %147 = vector.broadcast %c0_i32_45 : i32 to vector<8x4xi32>
    %148 = arith.cmpi sge, %146, %147 : vector<8x4xi32>
    %c2_i32_46 = arith.constant 2 : i32
    %149 = vector.broadcast %c2_i32_46 : i32 to vector<8x4xi32>
    %150 = arith.cmpi slt, %146, %149 : vector<8x4xi32>
    %151 = arith.andi %148, %150 : vector<8x4xi1>
    %c0_i32_47 = arith.constant 0 : i32
    %152 = vector.broadcast %c0_i32_47 : i32 to vector<8x4xi32>
    %153 = arith.addi %38, %152 : vector<8x4xi32>
    %cst_48 = arith.constant 1.000000e+00 : f32
    %154 = vector.broadcast %cst_48 : f32 to vector<8x4xf32>
    %155 = arith.subf %154, %35 : vector<8x4xf32>
    %156 = arith.mulf %36, %155 : vector<8x4xf32>
    %c0_i32_49 = arith.constant 0 : i32
    %157 = vector.broadcast %c0_i32_49 : i32 to vector<8x4xi32>
    %158 = arith.cmpi sge, %153, %157 : vector<8x4xi32>
    %159 = arith.andi %151, %158 : vector<8x4xi1>
    %c4_i32_50 = arith.constant 4 : i32
    %160 = vector.broadcast %c4_i32_50 : i32 to vector<8x4xi32>
    %161 = arith.cmpi slt, %153, %160 : vector<8x4xi32>
    %162 = arith.andi %159, %161 : vector<8x4xi1>
    %c0_i32_51 = arith.constant 0 : i32
    %163 = vector.broadcast %c0_i32_51 : i32 to vector<8x4xi32>
    %164 = arith.addi %37, %163 : vector<8x4xi32>
    %cst_52 = arith.constant 1.000000e+00 : f32
    %165 = vector.broadcast %cst_52 : f32 to vector<8x4xf32>
    %166 = arith.subf %165, %34 : vector<8x4xf32>
    %167 = arith.mulf %156, %166 : vector<8x4xf32>
    %c0_i32_53 = arith.constant 0 : i32
    %168 = vector.broadcast %c0_i32_53 : i32 to vector<8x4xi32>
    %169 = arith.cmpi sge, %164, %168 : vector<8x4xi32>
    %170 = arith.andi %162, %169 : vector<8x4xi1>
    %c4_i32_54 = arith.constant 4 : i32
    %171 = vector.broadcast %c4_i32_54 : i32 to vector<8x4xi32>
    %172 = arith.cmpi slt, %164, %171 : vector<8x4xi32>
    %173 = arith.andi %170, %172 : vector<8x4xi1>
    %174 = arith.mulf %167, %30 : vector<8x4xf32>
    %cst_55 = arith.constant 0.000000e+00 : f32
    %175 = vector.broadcast %cst_55 : f32 to vector<8x4xf32>
    %176 = arith.select %173, %174, %175 : vector<8x4xi1>, vector<8x4xf32>
    %c4_i32_56 = arith.constant 4 : i32
    %177 = vector.broadcast %c4_i32_56 : i32 to vector<8x4xi32>
    %178 = arith.muli %146, %177 : vector<8x4xi32>
    %179 = arith.addi %178, %153 : vector<8x4xi32>
    %c4_i32_57 = arith.constant 4 : i32
    %180 = vector.broadcast %c4_i32_57 : i32 to vector<8x4xi32>
    %181 = arith.muli %179, %180 : vector<8x4xi32>
    %182 = arith.addi %181, %164 : vector<8x4xi32>
    %c1_i32_58 = arith.constant 1 : i32
    %183 = vector.broadcast %c1_i32_58 : i32 to vector<8x4xi32>
    %184 = arith.addi %37, %183 : vector<8x4xi32>
    %185 = arith.mulf %156, %34 : vector<8x4xf32>
    %c0_i32_59 = arith.constant 0 : i32
    %186 = vector.broadcast %c0_i32_59 : i32 to vector<8x4xi32>
    %187 = arith.cmpi sge, %184, %186 : vector<8x4xi32>
    %188 = arith.andi %162, %187 : vector<8x4xi1>
    %c4_i32_60 = arith.constant 4 : i32
    %189 = vector.broadcast %c4_i32_60 : i32 to vector<8x4xi32>
    %190 = arith.cmpi slt, %184, %189 : vector<8x4xi32>
    %191 = arith.andi %188, %190 : vector<8x4xi1>
    %192 = arith.mulf %185, %30 : vector<8x4xf32>
    %cst_61 = arith.constant 0.000000e+00 : f32
    %193 = vector.broadcast %cst_61 : f32 to vector<8x4xf32>
    %194 = arith.select %191, %192, %193 : vector<8x4xi1>, vector<8x4xf32>
    %c4_i32_62 = arith.constant 4 : i32
    %195 = vector.broadcast %c4_i32_62 : i32 to vector<8x4xi32>
    %196 = arith.muli %146, %195 : vector<8x4xi32>
    %197 = arith.addi %196, %153 : vector<8x4xi32>
    %c4_i32_63 = arith.constant 4 : i32
    %198 = vector.broadcast %c4_i32_63 : i32 to vector<8x4xi32>
    %199 = arith.muli %197, %198 : vector<8x4xi32>
    %200 = arith.addi %199, %184 : vector<8x4xi32>
    %c1_i32_64 = arith.constant 1 : i32
    %201 = vector.broadcast %c1_i32_64 : i32 to vector<8x4xi32>
    %202 = arith.addi %38, %201 : vector<8x4xi32>
    %203 = arith.mulf %36, %35 : vector<8x4xf32>
    %c0_i32_65 = arith.constant 0 : i32
    %204 = vector.broadcast %c0_i32_65 : i32 to vector<8x4xi32>
    %205 = arith.cmpi sge, %202, %204 : vector<8x4xi32>
    %206 = arith.andi %151, %205 : vector<8x4xi1>
    %c4_i32_66 = arith.constant 4 : i32
    %207 = vector.broadcast %c4_i32_66 : i32 to vector<8x4xi32>
    %208 = arith.cmpi slt, %202, %207 : vector<8x4xi32>
    %209 = arith.andi %206, %208 : vector<8x4xi1>
    %c0_i32_67 = arith.constant 0 : i32
    %210 = vector.broadcast %c0_i32_67 : i32 to vector<8x4xi32>
    %211 = arith.addi %37, %210 : vector<8x4xi32>
    %cst_68 = arith.constant 1.000000e+00 : f32
    %212 = vector.broadcast %cst_68 : f32 to vector<8x4xf32>
    %213 = arith.subf %212, %34 : vector<8x4xf32>
    %214 = arith.mulf %203, %213 : vector<8x4xf32>
    %c0_i32_69 = arith.constant 0 : i32
    %215 = vector.broadcast %c0_i32_69 : i32 to vector<8x4xi32>
    %216 = arith.cmpi sge, %211, %215 : vector<8x4xi32>
    %217 = arith.andi %209, %216 : vector<8x4xi1>
    %c4_i32_70 = arith.constant 4 : i32
    %218 = vector.broadcast %c4_i32_70 : i32 to vector<8x4xi32>
    %219 = arith.cmpi slt, %211, %218 : vector<8x4xi32>
    %220 = arith.andi %217, %219 : vector<8x4xi1>
    %221 = arith.mulf %214, %30 : vector<8x4xf32>
    %cst_71 = arith.constant 0.000000e+00 : f32
    %222 = vector.broadcast %cst_71 : f32 to vector<8x4xf32>
    %223 = arith.select %220, %221, %222 : vector<8x4xi1>, vector<8x4xf32>
    %c4_i32_72 = arith.constant 4 : i32
    %224 = vector.broadcast %c4_i32_72 : i32 to vector<8x4xi32>
    %225 = arith.muli %146, %224 : vector<8x4xi32>
    %226 = arith.addi %225, %202 : vector<8x4xi32>
    %c4_i32_73 = arith.constant 4 : i32
    %227 = vector.broadcast %c4_i32_73 : i32 to vector<8x4xi32>
    %228 = arith.muli %226, %227 : vector<8x4xi32>
    %229 = arith.addi %228, %211 : vector<8x4xi32>
    %c1_i32_74 = arith.constant 1 : i32
    %230 = vector.broadcast %c1_i32_74 : i32 to vector<8x4xi32>
    %231 = arith.addi %37, %230 : vector<8x4xi32>
    %232 = arith.mulf %203, %34 : vector<8x4xf32>
    %c0_i32_75 = arith.constant 0 : i32
    %233 = vector.broadcast %c0_i32_75 : i32 to vector<8x4xi32>
    %234 = arith.cmpi sge, %231, %233 : vector<8x4xi32>
    %235 = arith.andi %209, %234 : vector<8x4xi1>
    %c4_i32_76 = arith.constant 4 : i32
    %236 = vector.broadcast %c4_i32_76 : i32 to vector<8x4xi32>
    %237 = arith.cmpi slt, %231, %236 : vector<8x4xi32>
    %238 = arith.andi %235, %237 : vector<8x4xi1>
    %239 = arith.mulf %232, %30 : vector<8x4xf32>
    %cst_77 = arith.constant 0.000000e+00 : f32
    %240 = vector.broadcast %cst_77 : f32 to vector<8x4xf32>
    %241 = arith.select %238, %239, %240 : vector<8x4xi1>, vector<8x4xf32>
    %c4_i32_78 = arith.constant 4 : i32
    %242 = vector.broadcast %c4_i32_78 : i32 to vector<8x4xi32>
    %243 = arith.muli %146, %242 : vector<8x4xi32>
    %244 = arith.addi %243, %202 : vector<8x4xi32>
    %c4_i32_79 = arith.constant 4 : i32
    %245 = vector.broadcast %c4_i32_79 : i32 to vector<8x4xi32>
    %246 = arith.muli %244, %245 : vector<8x4xi32>
    %247 = arith.addi %246, %231 : vector<8x4xi32>
    %248 = tpu.iota {dimensions = array<i32: 1>} : vector<1x32xi32>
    %cst_80 = arith.constant 0.000000e+00 : f32
    %249 = vector.broadcast %cst_80 : f32 to vector<8x32xf32>
    %c0_i32_81 = arith.constant 0 : i32
    %250 = vector.broadcast %c0_i32_81 : i32 to vector<8x4xi32>
    %251 = arith.subi %79, %250 : vector<8x4xi32>
    %252 = vector.extract_strided_slice %251 {offsets = [0, 0], sizes = [8, 1], strides = [1, 1]} : vector<8x4xi32> to vector<8x1xi32>
    %253 = vector.broadcast %252 : vector<8x1xi32> to vector<8x32xi32>
    %254 = vector.broadcast %248 : vector<1x32xi32> to vector<8x32xi32>
    %255 = arith.cmpi eq, %253, %254 : vector<8x32xi32>
    %256 = vector.extract_strided_slice %73 {offsets = [0, 0], sizes = [8, 1], strides = [1, 1]} : vector<8x4xf32> to vector<8x1xf32>
    %cst_82 = arith.constant 0.000000e+00 : f32
    %257 = vector.shape_cast %256 : vector<8x1xf32> to vector<8x1xf32>
    %258 = vector.broadcast %257 : vector<8x1xf32> to vector<8x32xf32>
    %259 = vector.broadcast %cst_82 : f32 to vector<8x32xf32>
    %260 = arith.select %255, %258, %259 : vector<8x32xi1>, vector<8x32xf32>
    %261 = arith.addf %249, %260 : vector<8x32xf32>
    %262 = vector.extract_strided_slice %251 {offsets = [0, 1], sizes = [8, 1], strides = [1, 1]} : vector<8x4xi32> to vector<8x1xi32>
    %263 = vector.broadcast %262 : vector<8x1xi32> to vector<8x32xi32>
    %264 = vector.broadcast %248 : vector<1x32xi32> to vector<8x32xi32>
    %265 = arith.cmpi eq, %263, %264 : vector<8x32xi32>
    %266 = vector.extract_strided_slice %73 {offsets = [0, 1], sizes = [8, 1], strides = [1, 1]} : vector<8x4xf32> to vector<8x1xf32>
    %cst_83 = arith.constant 0.000000e+00 : f32
    %267 = vector.shape_cast %266 : vector<8x1xf32> to vector<8x1xf32>
    %268 = vector.broadcast %267 : vector<8x1xf32> to vector<8x32xf32>
    %269 = vector.broadcast %cst_83 : f32 to vector<8x32xf32>
    %270 = arith.select %265, %268, %269 : vector<8x32xi1>, vector<8x32xf32>
    %271 = arith.addf %261, %270 : vector<8x32xf32>
    %272 = vector.extract_strided_slice %251 {offsets = [0, 2], sizes = [8, 1], strides = [1, 1]} : vector<8x4xi32> to vector<8x1xi32>
    %273 = vector.broadcast %272 : vector<8x1xi32> to vector<8x32xi32>
    %274 = vector.broadcast %248 : vector<1x32xi32> to vector<8x32xi32>
    %275 = arith.cmpi eq, %273, %274 : vector<8x32xi32>
    %276 = vector.extract_strided_slice %73 {offsets = [0, 2], sizes = [8, 1], strides = [1, 1]} : vector<8x4xf32> to vector<8x1xf32>
    %cst_84 = arith.constant 0.000000e+00 : f32
    %277 = vector.shape_cast %276 : vector<8x1xf32> to vector<8x1xf32>
    %278 = vector.broadcast %277 : vector<8x1xf32> to vector<8x32xf32>
    %279 = vector.broadcast %cst_84 : f32 to vector<8x32xf32>
    %280 = arith.select %275, %278, %279 : vector<8x32xi1>, vector<8x32xf32>
    %281 = arith.addf %271, %280 : vector<8x32xf32>
    %282 = vector.extract_strided_slice %251 {offsets = [0, 3], sizes = [8, 1], strides = [1, 1]} : vector<8x4xi32> to vector<8x1xi32>
    %283 = vector.broadcast %282 : vector<8x1xi32> to vector<8x32xi32>
    %284 = vector.broadcast %248 : vector<1x32xi32> to vector<8x32xi32>
    %285 = arith.cmpi eq, %283, %284 : vector<8x32xi32>
    %286 = vector.extract_strided_slice %73 {offsets = [0, 3], sizes = [8, 1], strides = [1, 1]} : vector<8x4xf32> to vector<8x1xf32>
    %cst_85 = arith.constant 0.000000e+00 : f32
    %287 = vector.shape_cast %286 : vector<8x1xf32> to vector<8x1xf32>
    %288 = vector.broadcast %287 : vector<8x1xf32> to vector<8x32xf32>
    %289 = vector.broadcast %cst_85 : f32 to vector<8x32xf32>
    %290 = arith.select %285, %288, %289 : vector<8x32xi1>, vector<8x32xf32>
    %291 = arith.addf %281, %290 : vector<8x32xf32>
    %c0_i32_86 = arith.constant 0 : i32
    %292 = vector.broadcast %c0_i32_86 : i32 to vector<8x4xi32>
    %293 = arith.subi %97, %292 : vector<8x4xi32>
    %294 = vector.extract_strided_slice %293 {offsets = [0, 0], sizes = [8, 1], strides = [1, 1]} : vector<8x4xi32> to vector<8x1xi32>
    %295 = vector.broadcast %294 : vector<8x1xi32> to vector<8x32xi32>
    %296 = vector.broadcast %248 : vector<1x32xi32> to vector<8x32xi32>
    %297 = arith.cmpi eq, %295, %296 : vector<8x32xi32>
    %298 = vector.extract_strided_slice %91 {offsets = [0, 0], sizes = [8, 1], strides = [1, 1]} : vector<8x4xf32> to vector<8x1xf32>
    %cst_87 = arith.constant 0.000000e+00 : f32
    %299 = vector.shape_cast %298 : vector<8x1xf32> to vector<8x1xf32>
    %300 = vector.broadcast %299 : vector<8x1xf32> to vector<8x32xf32>
    %301 = vector.broadcast %cst_87 : f32 to vector<8x32xf32>
    %302 = arith.select %297, %300, %301 : vector<8x32xi1>, vector<8x32xf32>
    %303 = arith.addf %291, %302 : vector<8x32xf32>
    %304 = vector.extract_strided_slice %293 {offsets = [0, 1], sizes = [8, 1], strides = [1, 1]} : vector<8x4xi32> to vector<8x1xi32>
    %305 = vector.broadcast %304 : vector<8x1xi32> to vector<8x32xi32>
    %306 = vector.broadcast %248 : vector<1x32xi32> to vector<8x32xi32>
    %307 = arith.cmpi eq, %305, %306 : vector<8x32xi32>
    %308 = vector.extract_strided_slice %91 {offsets = [0, 1], sizes = [8, 1], strides = [1, 1]} : vector<8x4xf32> to vector<8x1xf32>
    %cst_88 = arith.constant 0.000000e+00 : f32
    %309 = vector.shape_cast %308 : vector<8x1xf32> to vector<8x1xf32>
    %310 = vector.broadcast %309 : vector<8x1xf32> to vector<8x32xf32>
    %311 = vector.broadcast %cst_88 : f32 to vector<8x32xf32>
    %312 = arith.select %307, %310, %311 : vector<8x32xi1>, vector<8x32xf32>
    %313 = arith.addf %303, %312 : vector<8x32xf32>
    %314 = vector.extract_strided_slice %293 {offsets = [0, 2], sizes = [8, 1], strides = [1, 1]} : vector<8x4xi32> to vector<8x1xi32>
    %315 = vector.broadcast %314 : vector<8x1xi32> to vector<8x32xi32>
    %316 = vector.broadcast %248 : vector<1x32xi32> to vector<8x32xi32>
    %317 = arith.cmpi eq, %315, %316 : vector<8x32xi32>
    %318 = vector.extract_strided_slice %91 {offsets = [0, 2], sizes = [8, 1], strides = [1, 1]} : vector<8x4xf32> to vector<8x1xf32>
    %cst_89 = arith.constant 0.000000e+00 : f32
    %319 = vector.shape_cast %318 : vector<8x1xf32> to vector<8x1xf32>
    %320 = vector.broadcast %319 : vector<8x1xf32> to vector<8x32xf32>
    %321 = vector.broadcast %cst_89 : f32 to vector<8x32xf32>
    %322 = arith.select %317, %320, %321 : vector<8x32xi1>, vector<8x32xf32>
    %323 = arith.addf %313, %322 : vector<8x32xf32>
    %324 = vector.extract_strided_slice %293 {offsets = [0, 3], sizes = [8, 1], strides = [1, 1]} : vector<8x4xi32> to vector<8x1xi32>
    %325 = vector.broadcast %324 : vector<8x1xi32> to vector<8x32xi32>
    %326 = vector.broadcast %248 : vector<1x32xi32> to vector<8x32xi32>
    %327 = arith.cmpi eq, %325, %326 : vector<8x32xi32>
    %328 = vector.extract_strided_slice %91 {offsets = [0, 3], sizes = [8, 1], strides = [1, 1]} : vector<8x4xf32> to vector<8x1xf32>
    %cst_90 = arith.constant 0.000000e+00 : f32
    %329 = vector.shape_cast %328 : vector<8x1xf32> to vector<8x1xf32>
    %330 = vector.broadcast %329 : vector<8x1xf32> to vector<8x32xf32>
    %331 = vector.broadcast %cst_90 : f32 to vector<8x32xf32>
    %332 = arith.select %327, %330, %331 : vector<8x32xi1>, vector<8x32xf32>
    %333 = arith.addf %323, %332 : vector<8x32xf32>
    %c0_i32_91 = arith.constant 0 : i32
    %334 = vector.broadcast %c0_i32_91 : i32 to vector<8x4xi32>
    %335 = arith.subi %126, %334 : vector<8x4xi32>
    %336 = vector.extract_strided_slice %335 {offsets = [0, 0], sizes = [8, 1], strides = [1, 1]} : vector<8x4xi32> to vector<8x1xi32>
    %337 = vector.broadcast %336 : vector<8x1xi32> to vector<8x32xi32>
    %338 = vector.broadcast %248 : vector<1x32xi32> to vector<8x32xi32>
    %339 = arith.cmpi eq, %337, %338 : vector<8x32xi32>
    %340 = vector.extract_strided_slice %120 {offsets = [0, 0], sizes = [8, 1], strides = [1, 1]} : vector<8x4xf32> to vector<8x1xf32>
    %cst_92 = arith.constant 0.000000e+00 : f32
    %341 = vector.shape_cast %340 : vector<8x1xf32> to vector<8x1xf32>
    %342 = vector.broadcast %341 : vector<8x1xf32> to vector<8x32xf32>
    %343 = vector.broadcast %cst_92 : f32 to vector<8x32xf32>
    %344 = arith.select %339, %342, %343 : vector<8x32xi1>, vector<8x32xf32>
    %345 = arith.addf %333, %344 : vector<8x32xf32>
    %346 = vector.extract_strided_slice %335 {offsets = [0, 1], sizes = [8, 1], strides = [1, 1]} : vector<8x4xi32> to vector<8x1xi32>
    %347 = vector.broadcast %346 : vector<8x1xi32> to vector<8x32xi32>
    %348 = vector.broadcast %248 : vector<1x32xi32> to vector<8x32xi32>
    %349 = arith.cmpi eq, %347, %348 : vector<8x32xi32>
    %350 = vector.extract_strided_slice %120 {offsets = [0, 1], sizes = [8, 1], strides = [1, 1]} : vector<8x4xf32> to vector<8x1xf32>
    %cst_93 = arith.constant 0.000000e+00 : f32
    %351 = vector.shape_cast %350 : vector<8x1xf32> to vector<8x1xf32>
    %352 = vector.broadcast %351 : vector<8x1xf32> to vector<8x32xf32>
    %353 = vector.broadcast %cst_93 : f32 to vector<8x32xf32>
    %354 = arith.select %349, %352, %353 : vector<8x32xi1>, vector<8x32xf32>
    %355 = arith.addf %345, %354 : vector<8x32xf32>
    %356 = vector.extract_strided_slice %335 {offsets = [0, 2], sizes = [8, 1], strides = [1, 1]} : vector<8x4xi32> to vector<8x1xi32>
    %357 = vector.broadcast %356 : vector<8x1xi32> to vector<8x32xi32>
    %358 = vector.broadcast %248 : vector<1x32xi32> to vector<8x32xi32>
    %359 = arith.cmpi eq, %357, %358 : vector<8x32xi32>
    %360 = vector.extract_strided_slice %120 {offsets = [0, 2], sizes = [8, 1], strides = [1, 1]} : vector<8x4xf32> to vector<8x1xf32>
    %cst_94 = arith.constant 0.000000e+00 : f32
    %361 = vector.shape_cast %360 : vector<8x1xf32> to vector<8x1xf32>
    %362 = vector.broadcast %361 : vector<8x1xf32> to vector<8x32xf32>
    %363 = vector.broadcast %cst_94 : f32 to vector<8x32xf32>
    %364 = arith.select %359, %362, %363 : vector<8x32xi1>, vector<8x32xf32>
    %365 = arith.addf %355, %364 : vector<8x32xf32>
    %366 = vector.extract_strided_slice %335 {offsets = [0, 3], sizes = [8, 1], strides = [1, 1]} : vector<8x4xi32> to vector<8x1xi32>
    %367 = vector.broadcast %366 : vector<8x1xi32> to vector<8x32xi32>
    %368 = vector.broadcast %248 : vector<1x32xi32> to vector<8x32xi32>
    %369 = arith.cmpi eq, %367, %368 : vector<8x32xi32>
    %370 = vector.extract_strided_slice %120 {offsets = [0, 3], sizes = [8, 1], strides = [1, 1]} : vector<8x4xf32> to vector<8x1xf32>
    %cst_95 = arith.constant 0.000000e+00 : f32
    %371 = vector.shape_cast %370 : vector<8x1xf32> to vector<8x1xf32>
    %372 = vector.broadcast %371 : vector<8x1xf32> to vector<8x32xf32>
    %373 = vector.broadcast %cst_95 : f32 to vector<8x32xf32>
    %374 = arith.select %369, %372, %373 : vector<8x32xi1>, vector<8x32xf32>
    %375 = arith.addf %365, %374 : vector<8x32xf32>
    %c0_i32_96 = arith.constant 0 : i32
    %376 = vector.broadcast %c0_i32_96 : i32 to vector<8x4xi32>
    %377 = arith.subi %144, %376 : vector<8x4xi32>
    %378 = vector.extract_strided_slice %377 {offsets = [0, 0], sizes = [8, 1], strides = [1, 1]} : vector<8x4xi32> to vector<8x1xi32>
    %379 = vector.broadcast %378 : vector<8x1xi32> to vector<8x32xi32>
    %380 = vector.broadcast %248 : vector<1x32xi32> to vector<8x32xi32>
    %381 = arith.cmpi eq, %379, %380 : vector<8x32xi32>
    %382 = vector.extract_strided_slice %138 {offsets = [0, 0], sizes = [8, 1], strides = [1, 1]} : vector<8x4xf32> to vector<8x1xf32>
    %cst_97 = arith.constant 0.000000e+00 : f32
    %383 = vector.shape_cast %382 : vector<8x1xf32> to vector<8x1xf32>
    %384 = vector.broadcast %383 : vector<8x1xf32> to vector<8x32xf32>
    %385 = vector.broadcast %cst_97 : f32 to vector<8x32xf32>
    %386 = arith.select %381, %384, %385 : vector<8x32xi1>, vector<8x32xf32>
    %387 = arith.addf %375, %386 : vector<8x32xf32>
    %388 = vector.extract_strided_slice %377 {offsets = [0, 1], sizes = [8, 1], strides = [1, 1]} : vector<8x4xi32> to vector<8x1xi32>
    %389 = vector.broadcast %388 : vector<8x1xi32> to vector<8x32xi32>
    %390 = vector.broadcast %248 : vector<1x32xi32> to vector<8x32xi32>
    %391 = arith.cmpi eq, %389, %390 : vector<8x32xi32>
    %392 = vector.extract_strided_slice %138 {offsets = [0, 1], sizes = [8, 1], strides = [1, 1]} : vector<8x4xf32> to vector<8x1xf32>
    %cst_98 = arith.constant 0.000000e+00 : f32
    %393 = vector.shape_cast %392 : vector<8x1xf32> to vector<8x1xf32>
    %394 = vector.broadcast %393 : vector<8x1xf32> to vector<8x32xf32>
    %395 = vector.broadcast %cst_98 : f32 to vector<8x32xf32>
    %396 = arith.select %391, %394, %395 : vector<8x32xi1>, vector<8x32xf32>
    %397 = arith.addf %387, %396 : vector<8x32xf32>
    %398 = vector.extract_strided_slice %377 {offsets = [0, 2], sizes = [8, 1], strides = [1, 1]} : vector<8x4xi32> to vector<8x1xi32>
    %399 = vector.broadcast %398 : vector<8x1xi32> to vector<8x32xi32>
    %400 = vector.broadcast %248 : vector<1x32xi32> to vector<8x32xi32>
    %401 = arith.cmpi eq, %399, %400 : vector<8x32xi32>
    %402 = vector.extract_strided_slice %138 {offsets = [0, 2], sizes = [8, 1], strides = [1, 1]} : vector<8x4xf32> to vector<8x1xf32>
    %cst_99 = arith.constant 0.000000e+00 : f32
    %403 = vector.shape_cast %402 : vector<8x1xf32> to vector<8x1xf32>
    %404 = vector.broadcast %403 : vector<8x1xf32> to vector<8x32xf32>
    %405 = vector.broadcast %cst_99 : f32 to vector<8x32xf32>
    %406 = arith.select %401, %404, %405 : vector<8x32xi1>, vector<8x32xf32>
    %407 = arith.addf %397, %406 : vector<8x32xf32>
    %408 = vector.extract_strided_slice %377 {offsets = [0, 3], sizes = [8, 1], strides = [1, 1]} : vector<8x4xi32> to vector<8x1xi32>
    %409 = vector.broadcast %408 : vector<8x1xi32> to vector<8x32xi32>
    %410 = vector.broadcast %248 : vector<1x32xi32> to vector<8x32xi32>
    %411 = arith.cmpi eq, %409, %410 : vector<8x32xi32>
    %412 = vector.extract_strided_slice %138 {offsets = [0, 3], sizes = [8, 1], strides = [1, 1]} : vector<8x4xf32> to vector<8x1xf32>
    %cst_100 = arith.constant 0.000000e+00 : f32
    %413 = vector.shape_cast %412 : vector<8x1xf32> to vector<8x1xf32>
    %414 = vector.broadcast %413 : vector<8x1xf32> to vector<8x32xf32>
    %415 = vector.broadcast %cst_100 : f32 to vector<8x32xf32>
    %416 = arith.select %411, %414, %415 : vector<8x32xi1>, vector<8x32xf32>
    %417 = arith.addf %407, %416 : vector<8x32xf32>
    %c0_i32_101 = arith.constant 0 : i32
    %418 = vector.broadcast %c0_i32_101 : i32 to vector<8x4xi32>
    %419 = arith.subi %182, %418 : vector<8x4xi32>
    %420 = vector.extract_strided_slice %419 {offsets = [0, 0], sizes = [8, 1], strides = [1, 1]} : vector<8x4xi32> to vector<8x1xi32>
    %421 = vector.broadcast %420 : vector<8x1xi32> to vector<8x32xi32>
    %422 = vector.broadcast %248 : vector<1x32xi32> to vector<8x32xi32>
    %423 = arith.cmpi eq, %421, %422 : vector<8x32xi32>
    %424 = vector.extract_strided_slice %176 {offsets = [0, 0], sizes = [8, 1], strides = [1, 1]} : vector<8x4xf32> to vector<8x1xf32>
    %cst_102 = arith.constant 0.000000e+00 : f32
    %425 = vector.shape_cast %424 : vector<8x1xf32> to vector<8x1xf32>
    %426 = vector.broadcast %425 : vector<8x1xf32> to vector<8x32xf32>
    %427 = vector.broadcast %cst_102 : f32 to vector<8x32xf32>
    %428 = arith.select %423, %426, %427 : vector<8x32xi1>, vector<8x32xf32>
    %429 = arith.addf %417, %428 : vector<8x32xf32>
    %430 = vector.extract_strided_slice %419 {offsets = [0, 1], sizes = [8, 1], strides = [1, 1]} : vector<8x4xi32> to vector<8x1xi32>
    %431 = vector.broadcast %430 : vector<8x1xi32> to vector<8x32xi32>
    %432 = vector.broadcast %248 : vector<1x32xi32> to vector<8x32xi32>
    %433 = arith.cmpi eq, %431, %432 : vector<8x32xi32>
    %434 = vector.extract_strided_slice %176 {offsets = [0, 1], sizes = [8, 1], strides = [1, 1]} : vector<8x4xf32> to vector<8x1xf32>
    %cst_103 = arith.constant 0.000000e+00 : f32
    %435 = vector.shape_cast %434 : vector<8x1xf32> to vector<8x1xf32>
    %436 = vector.broadcast %435 : vector<8x1xf32> to vector<8x32xf32>
    %437 = vector.broadcast %cst_103 : f32 to vector<8x32xf32>
    %438 = arith.select %433, %436, %437 : vector<8x32xi1>, vector<8x32xf32>
    %439 = arith.addf %429, %438 : vector<8x32xf32>
    %440 = vector.extract_strided_slice %419 {offsets = [0, 2], sizes = [8, 1], strides = [1, 1]} : vector<8x4xi32> to vector<8x1xi32>
    %441 = vector.broadcast %440 : vector<8x1xi32> to vector<8x32xi32>
    %442 = vector.broadcast %248 : vector<1x32xi32> to vector<8x32xi32>
    %443 = arith.cmpi eq, %441, %442 : vector<8x32xi32>
    %444 = vector.extract_strided_slice %176 {offsets = [0, 2], sizes = [8, 1], strides = [1, 1]} : vector<8x4xf32> to vector<8x1xf32>
    %cst_104 = arith.constant 0.000000e+00 : f32
    %445 = vector.shape_cast %444 : vector<8x1xf32> to vector<8x1xf32>
    %446 = vector.broadcast %445 : vector<8x1xf32> to vector<8x32xf32>
    %447 = vector.broadcast %cst_104 : f32 to vector<8x32xf32>
    %448 = arith.select %443, %446, %447 : vector<8x32xi1>, vector<8x32xf32>
    %449 = arith.addf %439, %448 : vector<8x32xf32>
    %450 = vector.extract_strided_slice %419 {offsets = [0, 3], sizes = [8, 1], strides = [1, 1]} : vector<8x4xi32> to vector<8x1xi32>
    %451 = vector.broadcast %450 : vector<8x1xi32> to vector<8x32xi32>
    %452 = vector.broadcast %248 : vector<1x32xi32> to vector<8x32xi32>
    %453 = arith.cmpi eq, %451, %452 : vector<8x32xi32>
    %454 = vector.extract_strided_slice %176 {offsets = [0, 3], sizes = [8, 1], strides = [1, 1]} : vector<8x4xf32> to vector<8x1xf32>
    %cst_105 = arith.constant 0.000000e+00 : f32
    %455 = vector.shape_cast %454 : vector<8x1xf32> to vector<8x1xf32>
    %456 = vector.broadcast %455 : vector<8x1xf32> to vector<8x32xf32>
    %457 = vector.broadcast %cst_105 : f32 to vector<8x32xf32>
    %458 = arith.select %453, %456, %457 : vector<8x32xi1>, vector<8x32xf32>
    %459 = arith.addf %449, %458 : vector<8x32xf32>
    %c0_i32_106 = arith.constant 0 : i32
    %460 = vector.broadcast %c0_i32_106 : i32 to vector<8x4xi32>
    %461 = arith.subi %200, %460 : vector<8x4xi32>
    %462 = vector.extract_strided_slice %461 {offsets = [0, 0], sizes = [8, 1], strides = [1, 1]} : vector<8x4xi32> to vector<8x1xi32>
    %463 = vector.broadcast %462 : vector<8x1xi32> to vector<8x32xi32>
    %464 = vector.broadcast %248 : vector<1x32xi32> to vector<8x32xi32>
    %465 = arith.cmpi eq, %463, %464 : vector<8x32xi32>
    %466 = vector.extract_strided_slice %194 {offsets = [0, 0], sizes = [8, 1], strides = [1, 1]} : vector<8x4xf32> to vector<8x1xf32>
    %cst_107 = arith.constant 0.000000e+00 : f32
    %467 = vector.shape_cast %466 : vector<8x1xf32> to vector<8x1xf32>
    %468 = vector.broadcast %467 : vector<8x1xf32> to vector<8x32xf32>
    %469 = vector.broadcast %cst_107 : f32 to vector<8x32xf32>
    %470 = arith.select %465, %468, %469 : vector<8x32xi1>, vector<8x32xf32>
    %471 = arith.addf %459, %470 : vector<8x32xf32>
    %472 = vector.extract_strided_slice %461 {offsets = [0, 1], sizes = [8, 1], strides = [1, 1]} : vector<8x4xi32> to vector<8x1xi32>
    %473 = vector.broadcast %472 : vector<8x1xi32> to vector<8x32xi32>
    %474 = vector.broadcast %248 : vector<1x32xi32> to vector<8x32xi32>
    %475 = arith.cmpi eq, %473, %474 : vector<8x32xi32>
    %476 = vector.extract_strided_slice %194 {offsets = [0, 1], sizes = [8, 1], strides = [1, 1]} : vector<8x4xf32> to vector<8x1xf32>
    %cst_108 = arith.constant 0.000000e+00 : f32
    %477 = vector.shape_cast %476 : vector<8x1xf32> to vector<8x1xf32>
    %478 = vector.broadcast %477 : vector<8x1xf32> to vector<8x32xf32>
    %479 = vector.broadcast %cst_108 : f32 to vector<8x32xf32>
    %480 = arith.select %475, %478, %479 : vector<8x32xi1>, vector<8x32xf32>
    %481 = arith.addf %471, %480 : vector<8x32xf32>
    %482 = vector.extract_strided_slice %461 {offsets = [0, 2], sizes = [8, 1], strides = [1, 1]} : vector<8x4xi32> to vector<8x1xi32>
    %483 = vector.broadcast %482 : vector<8x1xi32> to vector<8x32xi32>
    %484 = vector.broadcast %248 : vector<1x32xi32> to vector<8x32xi32>
    %485 = arith.cmpi eq, %483, %484 : vector<8x32xi32>
    %486 = vector.extract_strided_slice %194 {offsets = [0, 2], sizes = [8, 1], strides = [1, 1]} : vector<8x4xf32> to vector<8x1xf32>
    %cst_109 = arith.constant 0.000000e+00 : f32
    %487 = vector.shape_cast %486 : vector<8x1xf32> to vector<8x1xf32>
    %488 = vector.broadcast %487 : vector<8x1xf32> to vector<8x32xf32>
    %489 = vector.broadcast %cst_109 : f32 to vector<8x32xf32>
    %490 = arith.select %485, %488, %489 : vector<8x32xi1>, vector<8x32xf32>
    %491 = arith.addf %481, %490 : vector<8x32xf32>
    %492 = vector.extract_strided_slice %461 {offsets = [0, 3], sizes = [8, 1], strides = [1, 1]} : vector<8x4xi32> to vector<8x1xi32>
    %493 = vector.broadcast %492 : vector<8x1xi32> to vector<8x32xi32>
    %494 = vector.broadcast %248 : vector<1x32xi32> to vector<8x32xi32>
    %495 = arith.cmpi eq, %493, %494 : vector<8x32xi32>
    %496 = vector.extract_strided_slice %194 {offsets = [0, 3], sizes = [8, 1], strides = [1, 1]} : vector<8x4xf32> to vector<8x1xf32>
    %cst_110 = arith.constant 0.000000e+00 : f32
    %497 = vector.shape_cast %496 : vector<8x1xf32> to vector<8x1xf32>
    %498 = vector.broadcast %497 : vector<8x1xf32> to vector<8x32xf32>
    %499 = vector.broadcast %cst_110 : f32 to vector<8x32xf32>
    %500 = arith.select %495, %498, %499 : vector<8x32xi1>, vector<8x32xf32>
    %501 = arith.addf %491, %500 : vector<8x32xf32>
    %c0_i32_111 = arith.constant 0 : i32
    %502 = vector.broadcast %c0_i32_111 : i32 to vector<8x4xi32>
    %503 = arith.subi %229, %502 : vector<8x4xi32>
    %504 = vector.extract_strided_slice %503 {offsets = [0, 0], sizes = [8, 1], strides = [1, 1]} : vector<8x4xi32> to vector<8x1xi32>
    %505 = vector.broadcast %504 : vector<8x1xi32> to vector<8x32xi32>
    %506 = vector.broadcast %248 : vector<1x32xi32> to vector<8x32xi32>
    %507 = arith.cmpi eq, %505, %506 : vector<8x32xi32>
    %508 = vector.extract_strided_slice %223 {offsets = [0, 0], sizes = [8, 1], strides = [1, 1]} : vector<8x4xf32> to vector<8x1xf32>
    %cst_112 = arith.constant 0.000000e+00 : f32
    %509 = vector.shape_cast %508 : vector<8x1xf32> to vector<8x1xf32>
    %510 = vector.broadcast %509 : vector<8x1xf32> to vector<8x32xf32>
    %511 = vector.broadcast %cst_112 : f32 to vector<8x32xf32>
    %512 = arith.select %507, %510, %511 : vector<8x32xi1>, vector<8x32xf32>
    %513 = arith.addf %501, %512 : vector<8x32xf32>
    %514 = vector.extract_strided_slice %503 {offsets = [0, 1], sizes = [8, 1], strides = [1, 1]} : vector<8x4xi32> to vector<8x1xi32>
    %515 = vector.broadcast %514 : vector<8x1xi32> to vector<8x32xi32>
    %516 = vector.broadcast %248 : vector<1x32xi32> to vector<8x32xi32>
    %517 = arith.cmpi eq, %515, %516 : vector<8x32xi32>
    %518 = vector.extract_strided_slice %223 {offsets = [0, 1], sizes = [8, 1], strides = [1, 1]} : vector<8x4xf32> to vector<8x1xf32>
    %cst_113 = arith.constant 0.000000e+00 : f32
    %519 = vector.shape_cast %518 : vector<8x1xf32> to vector<8x1xf32>
    %520 = vector.broadcast %519 : vector<8x1xf32> to vector<8x32xf32>
    %521 = vector.broadcast %cst_113 : f32 to vector<8x32xf32>
    %522 = arith.select %517, %520, %521 : vector<8x32xi1>, vector<8x32xf32>
    %523 = arith.addf %513, %522 : vector<8x32xf32>
    %524 = vector.extract_strided_slice %503 {offsets = [0, 2], sizes = [8, 1], strides = [1, 1]} : vector<8x4xi32> to vector<8x1xi32>
    %525 = vector.broadcast %524 : vector<8x1xi32> to vector<8x32xi32>
    %526 = vector.broadcast %248 : vector<1x32xi32> to vector<8x32xi32>
    %527 = arith.cmpi eq, %525, %526 : vector<8x32xi32>
    %528 = vector.extract_strided_slice %223 {offsets = [0, 2], sizes = [8, 1], strides = [1, 1]} : vector<8x4xf32> to vector<8x1xf32>
    %cst_114 = arith.constant 0.000000e+00 : f32
    %529 = vector.shape_cast %528 : vector<8x1xf32> to vector<8x1xf32>
    %530 = vector.broadcast %529 : vector<8x1xf32> to vector<8x32xf32>
    %531 = vector.broadcast %cst_114 : f32 to vector<8x32xf32>
    %532 = arith.select %527, %530, %531 : vector<8x32xi1>, vector<8x32xf32>
    %533 = arith.addf %523, %532 : vector<8x32xf32>
    %534 = vector.extract_strided_slice %503 {offsets = [0, 3], sizes = [8, 1], strides = [1, 1]} : vector<8x4xi32> to vector<8x1xi32>
    %535 = vector.broadcast %534 : vector<8x1xi32> to vector<8x32xi32>
    %536 = vector.broadcast %248 : vector<1x32xi32> to vector<8x32xi32>
    %537 = arith.cmpi eq, %535, %536 : vector<8x32xi32>
    %538 = vector.extract_strided_slice %223 {offsets = [0, 3], sizes = [8, 1], strides = [1, 1]} : vector<8x4xf32> to vector<8x1xf32>
    %cst_115 = arith.constant 0.000000e+00 : f32
    %539 = vector.shape_cast %538 : vector<8x1xf32> to vector<8x1xf32>
    %540 = vector.broadcast %539 : vector<8x1xf32> to vector<8x32xf32>
    %541 = vector.broadcast %cst_115 : f32 to vector<8x32xf32>
    %542 = arith.select %537, %540, %541 : vector<8x32xi1>, vector<8x32xf32>
    %543 = arith.addf %533, %542 : vector<8x32xf32>
    %c0_i32_116 = arith.constant 0 : i32
    %544 = vector.broadcast %c0_i32_116 : i32 to vector<8x4xi32>
    %545 = arith.subi %247, %544 : vector<8x4xi32>
    %546 = vector.extract_strided_slice %545 {offsets = [0, 0], sizes = [8, 1], strides = [1, 1]} : vector<8x4xi32> to vector<8x1xi32>
    %547 = vector.broadcast %546 : vector<8x1xi32> to vector<8x32xi32>
    %548 = vector.broadcast %248 : vector<1x32xi32> to vector<8x32xi32>
    %549 = arith.cmpi eq, %547, %548 : vector<8x32xi32>
    %550 = vector.extract_strided_slice %241 {offsets = [0, 0], sizes = [8, 1], strides = [1, 1]} : vector<8x4xf32> to vector<8x1xf32>
    %cst_117 = arith.constant 0.000000e+00 : f32
    %551 = vector.shape_cast %550 : vector<8x1xf32> to vector<8x1xf32>
    %552 = vector.broadcast %551 : vector<8x1xf32> to vector<8x32xf32>
    %553 = vector.broadcast %cst_117 : f32 to vector<8x32xf32>
    %554 = arith.select %549, %552, %553 : vector<8x32xi1>, vector<8x32xf32>
    %555 = arith.addf %543, %554 : vector<8x32xf32>
    %556 = vector.extract_strided_slice %545 {offsets = [0, 1], sizes = [8, 1], strides = [1, 1]} : vector<8x4xi32> to vector<8x1xi32>
    %557 = vector.broadcast %556 : vector<8x1xi32> to vector<8x32xi32>
    %558 = vector.broadcast %248 : vector<1x32xi32> to vector<8x32xi32>
    %559 = arith.cmpi eq, %557, %558 : vector<8x32xi32>
    %560 = vector.extract_strided_slice %241 {offsets = [0, 1], sizes = [8, 1], strides = [1, 1]} : vector<8x4xf32> to vector<8x1xf32>
    %cst_118 = arith.constant 0.000000e+00 : f32
    %561 = vector.shape_cast %560 : vector<8x1xf32> to vector<8x1xf32>
    %562 = vector.broadcast %561 : vector<8x1xf32> to vector<8x32xf32>
    %563 = vector.broadcast %cst_118 : f32 to vector<8x32xf32>
    %564 = arith.select %559, %562, %563 : vector<8x32xi1>, vector<8x32xf32>
    %565 = arith.addf %555, %564 : vector<8x32xf32>
    %566 = vector.extract_strided_slice %545 {offsets = [0, 2], sizes = [8, 1], strides = [1, 1]} : vector<8x4xi32> to vector<8x1xi32>
    %567 = vector.broadcast %566 : vector<8x1xi32> to vector<8x32xi32>
    %568 = vector.broadcast %248 : vector<1x32xi32> to vector<8x32xi32>
    %569 = arith.cmpi eq, %567, %568 : vector<8x32xi32>
    %570 = vector.extract_strided_slice %241 {offsets = [0, 2], sizes = [8, 1], strides = [1, 1]} : vector<8x4xf32> to vector<8x1xf32>
    %cst_119 = arith.constant 0.000000e+00 : f32
    %571 = vector.shape_cast %570 : vector<8x1xf32> to vector<8x1xf32>
    %572 = vector.broadcast %571 : vector<8x1xf32> to vector<8x32xf32>
    %573 = vector.broadcast %cst_119 : f32 to vector<8x32xf32>
    %574 = arith.select %569, %572, %573 : vector<8x32xi1>, vector<8x32xf32>
    %575 = arith.addf %565, %574 : vector<8x32xf32>
    %576 = vector.extract_strided_slice %545 {offsets = [0, 3], sizes = [8, 1], strides = [1, 1]} : vector<8x4xi32> to vector<8x1xi32>
    %577 = vector.broadcast %576 : vector<8x1xi32> to vector<8x32xi32>
    %578 = vector.broadcast %248 : vector<1x32xi32> to vector<8x32xi32>
    %579 = arith.cmpi eq, %577, %578 : vector<8x32xi32>
    %580 = vector.extract_strided_slice %241 {offsets = [0, 3], sizes = [8, 1], strides = [1, 1]} : vector<8x4xf32> to vector<8x1xf32>
    %cst_120 = arith.constant 0.000000e+00 : f32
    %581 = vector.shape_cast %580 : vector<8x1xf32> to vector<8x1xf32>
    %582 = vector.broadcast %581 : vector<8x1xf32> to vector<8x32xf32>
    %583 = vector.broadcast %cst_120 : f32 to vector<8x32xf32>
    %584 = arith.select %579, %582, %583 : vector<8x32xi1>, vector<8x32xf32>
    %585 = arith.addf %575, %584 : vector<8x32xf32>
    %c0_121 = arith.constant 0 : index
    %c0_122 = arith.constant 0 : index
    %c0_123 = arith.constant 0 : index
    %c0_124 = arith.constant 0 : index
    %586 = vector.load %arg4[%c0_121, %c0_122, %c0_123, %c0_124] : memref<1x1x40x8xbf16, #tpu.memory_space<vmem>>, vector<1x1x32x8xbf16>
    %587 = vector.shape_cast %586 : vector<1x1x32x8xbf16> to vector<32x8xbf16>
    %588 = arith.truncf %585 : vector<8x32xf32> to vector<8x32xbf16>
    %cst_125 = arith.constant dense<0.000000e+00> : vector<8x8xf32>
    %589 = tpu.matmul %588, %587, %cst_125 {dimension_numbers = #tpu.dot_dimension_numbers<[1], [0], [0], [1], [0, 0, 1, 1], [], []>} : vector<8x32xbf16>, vector<32x8xbf16>, vector<8x8xf32> -> vector<8x8xf32>
    %590 = arith.addf %14, %589 : vector<8x8xf32>
    %591 = vector.extract_strided_slice %2 {offsets = [0, 4], sizes = [8, 4], strides = [1, 1]} : vector<8x32xf32> to vector<8x4xf32>
    %cst_126 = arith.constant 2.000000e+00 : f32
    %592 = vector.broadcast %cst_126 : f32 to vector<8x4xf32>
    %593 = arith.mulf %591, %592 : vector<8x4xf32>
    %cst_127 = arith.constant 5.000000e-01 : f32
    %594 = vector.broadcast %cst_127 : f32 to vector<8x4xf32>
    %595 = arith.subf %593, %594 : vector<8x4xf32>
    %596 = vector.extract_strided_slice %2 {offsets = [0, 12], sizes = [8, 4], strides = [1, 1]} : vector<8x32xf32> to vector<8x4xf32>
    %cst_128 = arith.constant 2.000000e+00 : f32
    %597 = vector.broadcast %cst_128 : f32 to vector<8x4xf32>
    %598 = arith.mulf %596, %597 : vector<8x4xf32>
    %cst_129 = arith.constant 5.000000e-01 : f32
    %599 = vector.broadcast %cst_129 : f32 to vector<8x4xf32>
    %600 = arith.subf %598, %599 : vector<8x4xf32>
    %601 = vector.extract_strided_slice %2 {offsets = [0, 20], sizes = [8, 4], strides = [1, 1]} : vector<8x32xf32> to vector<8x4xf32>
    %cst_130 = arith.constant 2.000000e+00 : f32
    %602 = vector.broadcast %cst_130 : f32 to vector<8x4xf32>
    %603 = arith.mulf %601, %602 : vector<8x4xf32>
    %cst_131 = arith.constant 5.000000e-01 : f32
    %604 = vector.broadcast %cst_131 : f32 to vector<8x4xf32>
    %605 = arith.subf %603, %604 : vector<8x4xf32>
    %606 = vector.extract_strided_slice %13 {offsets = [0, 4], sizes = [8, 4], strides = [1, 1]} : vector<8x8xf32> to vector<8x4xf32>
    %607 = math.floor %595 : vector<8x4xf32>
    %608 = math.floor %600 : vector<8x4xf32>
    %609 = math.floor %605 : vector<8x4xf32>
    %610 = arith.subf %595, %607 : vector<8x4xf32>
    %611 = arith.subf %600, %608 : vector<8x4xf32>
    %612 = arith.subf %605, %609 : vector<8x4xf32>
    %613 = arith.fptosi %607 : vector<8x4xf32> to vector<8x4xi32>
    %614 = arith.fptosi %608 : vector<8x4xf32> to vector<8x4xi32>
    %615 = arith.fptosi %609 : vector<8x4xf32> to vector<8x4xi32>
    %c0_i32_132 = arith.constant 0 : i32
    %616 = vector.broadcast %c0_i32_132 : i32 to vector<8x4xi32>
    %617 = arith.addi %615, %616 : vector<8x4xi32>
    %cst_133 = arith.constant 1.000000e+00 : f32
    %618 = vector.broadcast %cst_133 : f32 to vector<8x4xf32>
    %619 = arith.subf %618, %612 : vector<8x4xf32>
    %c0_i32_134 = arith.constant 0 : i32
    %620 = vector.broadcast %c0_i32_134 : i32 to vector<8x4xi32>
    %621 = arith.cmpi sge, %617, %620 : vector<8x4xi32>
    %c2_i32_135 = arith.constant 2 : i32
    %622 = vector.broadcast %c2_i32_135 : i32 to vector<8x4xi32>
    %623 = arith.cmpi slt, %617, %622 : vector<8x4xi32>
    %624 = arith.andi %621, %623 : vector<8x4xi1>
    %c0_i32_136 = arith.constant 0 : i32
    %625 = vector.broadcast %c0_i32_136 : i32 to vector<8x4xi32>
    %626 = arith.addi %614, %625 : vector<8x4xi32>
    %cst_137 = arith.constant 1.000000e+00 : f32
    %627 = vector.broadcast %cst_137 : f32 to vector<8x4xf32>
    %628 = arith.subf %627, %611 : vector<8x4xf32>
    %629 = arith.mulf %619, %628 : vector<8x4xf32>
    %c0_i32_138 = arith.constant 0 : i32
    %630 = vector.broadcast %c0_i32_138 : i32 to vector<8x4xi32>
    %631 = arith.cmpi sge, %626, %630 : vector<8x4xi32>
    %632 = arith.andi %624, %631 : vector<8x4xi1>
    %c2_i32_139 = arith.constant 2 : i32
    %633 = vector.broadcast %c2_i32_139 : i32 to vector<8x4xi32>
    %634 = arith.cmpi slt, %626, %633 : vector<8x4xi32>
    %635 = arith.andi %632, %634 : vector<8x4xi1>
    %c0_i32_140 = arith.constant 0 : i32
    %636 = vector.broadcast %c0_i32_140 : i32 to vector<8x4xi32>
    %637 = arith.addi %613, %636 : vector<8x4xi32>
    %cst_141 = arith.constant 1.000000e+00 : f32
    %638 = vector.broadcast %cst_141 : f32 to vector<8x4xf32>
    %639 = arith.subf %638, %610 : vector<8x4xf32>
    %640 = arith.mulf %629, %639 : vector<8x4xf32>
    %c0_i32_142 = arith.constant 0 : i32
    %641 = vector.broadcast %c0_i32_142 : i32 to vector<8x4xi32>
    %642 = arith.cmpi sge, %637, %641 : vector<8x4xi32>
    %643 = arith.andi %635, %642 : vector<8x4xi1>
    %c2_i32_143 = arith.constant 2 : i32
    %644 = vector.broadcast %c2_i32_143 : i32 to vector<8x4xi32>
    %645 = arith.cmpi slt, %637, %644 : vector<8x4xi32>
    %646 = arith.andi %643, %645 : vector<8x4xi1>
    %647 = arith.mulf %640, %606 : vector<8x4xf32>
    %cst_144 = arith.constant 0.000000e+00 : f32
    %648 = vector.broadcast %cst_144 : f32 to vector<8x4xf32>
    %649 = arith.select %646, %647, %648 : vector<8x4xi1>, vector<8x4xf32>
    %c2_i32_145 = arith.constant 2 : i32
    %650 = vector.broadcast %c2_i32_145 : i32 to vector<8x4xi32>
    %651 = arith.muli %617, %650 : vector<8x4xi32>
    %652 = arith.addi %651, %626 : vector<8x4xi32>
    %c2_i32_146 = arith.constant 2 : i32
    %653 = vector.broadcast %c2_i32_146 : i32 to vector<8x4xi32>
    %654 = arith.muli %652, %653 : vector<8x4xi32>
    %655 = arith.addi %654, %637 : vector<8x4xi32>
    %c1_i32_147 = arith.constant 1 : i32
    %656 = vector.broadcast %c1_i32_147 : i32 to vector<8x4xi32>
    %657 = arith.addi %613, %656 : vector<8x4xi32>
    %658 = arith.mulf %629, %610 : vector<8x4xf32>
    %c0_i32_148 = arith.constant 0 : i32
    %659 = vector.broadcast %c0_i32_148 : i32 to vector<8x4xi32>
    %660 = arith.cmpi sge, %657, %659 : vector<8x4xi32>
    %661 = arith.andi %635, %660 : vector<8x4xi1>
    %c2_i32_149 = arith.constant 2 : i32
    %662 = vector.broadcast %c2_i32_149 : i32 to vector<8x4xi32>
    %663 = arith.cmpi slt, %657, %662 : vector<8x4xi32>
    %664 = arith.andi %661, %663 : vector<8x4xi1>
    %665 = arith.mulf %658, %606 : vector<8x4xf32>
    %cst_150 = arith.constant 0.000000e+00 : f32
    %666 = vector.broadcast %cst_150 : f32 to vector<8x4xf32>
    %667 = arith.select %664, %665, %666 : vector<8x4xi1>, vector<8x4xf32>
    %c2_i32_151 = arith.constant 2 : i32
    %668 = vector.broadcast %c2_i32_151 : i32 to vector<8x4xi32>
    %669 = arith.muli %617, %668 : vector<8x4xi32>
    %670 = arith.addi %669, %626 : vector<8x4xi32>
    %c2_i32_152 = arith.constant 2 : i32
    %671 = vector.broadcast %c2_i32_152 : i32 to vector<8x4xi32>
    %672 = arith.muli %670, %671 : vector<8x4xi32>
    %673 = arith.addi %672, %657 : vector<8x4xi32>
    %c1_i32_153 = arith.constant 1 : i32
    %674 = vector.broadcast %c1_i32_153 : i32 to vector<8x4xi32>
    %675 = arith.addi %614, %674 : vector<8x4xi32>
    %676 = arith.mulf %619, %611 : vector<8x4xf32>
    %c0_i32_154 = arith.constant 0 : i32
    %677 = vector.broadcast %c0_i32_154 : i32 to vector<8x4xi32>
    %678 = arith.cmpi sge, %675, %677 : vector<8x4xi32>
    %679 = arith.andi %624, %678 : vector<8x4xi1>
    %c2_i32_155 = arith.constant 2 : i32
    %680 = vector.broadcast %c2_i32_155 : i32 to vector<8x4xi32>
    %681 = arith.cmpi slt, %675, %680 : vector<8x4xi32>
    %682 = arith.andi %679, %681 : vector<8x4xi1>
    %c0_i32_156 = arith.constant 0 : i32
    %683 = vector.broadcast %c0_i32_156 : i32 to vector<8x4xi32>
    %684 = arith.addi %613, %683 : vector<8x4xi32>
    %cst_157 = arith.constant 1.000000e+00 : f32
    %685 = vector.broadcast %cst_157 : f32 to vector<8x4xf32>
    %686 = arith.subf %685, %610 : vector<8x4xf32>
    %687 = arith.mulf %676, %686 : vector<8x4xf32>
    %c0_i32_158 = arith.constant 0 : i32
    %688 = vector.broadcast %c0_i32_158 : i32 to vector<8x4xi32>
    %689 = arith.cmpi sge, %684, %688 : vector<8x4xi32>
    %690 = arith.andi %682, %689 : vector<8x4xi1>
    %c2_i32_159 = arith.constant 2 : i32
    %691 = vector.broadcast %c2_i32_159 : i32 to vector<8x4xi32>
    %692 = arith.cmpi slt, %684, %691 : vector<8x4xi32>
    %693 = arith.andi %690, %692 : vector<8x4xi1>
    %694 = arith.mulf %687, %606 : vector<8x4xf32>
    %cst_160 = arith.constant 0.000000e+00 : f32
    %695 = vector.broadcast %cst_160 : f32 to vector<8x4xf32>
    %696 = arith.select %693, %694, %695 : vector<8x4xi1>, vector<8x4xf32>
    %c2_i32_161 = arith.constant 2 : i32
    %697 = vector.broadcast %c2_i32_161 : i32 to vector<8x4xi32>
    %698 = arith.muli %617, %697 : vector<8x4xi32>
    %699 = arith.addi %698, %675 : vector<8x4xi32>
    %c2_i32_162 = arith.constant 2 : i32
    %700 = vector.broadcast %c2_i32_162 : i32 to vector<8x4xi32>
    %701 = arith.muli %699, %700 : vector<8x4xi32>
    %702 = arith.addi %701, %684 : vector<8x4xi32>
    %c1_i32_163 = arith.constant 1 : i32
    %703 = vector.broadcast %c1_i32_163 : i32 to vector<8x4xi32>
    %704 = arith.addi %613, %703 : vector<8x4xi32>
    %705 = arith.mulf %676, %610 : vector<8x4xf32>
    %c0_i32_164 = arith.constant 0 : i32
    %706 = vector.broadcast %c0_i32_164 : i32 to vector<8x4xi32>
    %707 = arith.cmpi sge, %704, %706 : vector<8x4xi32>
    %708 = arith.andi %682, %707 : vector<8x4xi1>
    %c2_i32_165 = arith.constant 2 : i32
    %709 = vector.broadcast %c2_i32_165 : i32 to vector<8x4xi32>
    %710 = arith.cmpi slt, %704, %709 : vector<8x4xi32>
    %711 = arith.andi %708, %710 : vector<8x4xi1>
    %712 = arith.mulf %705, %606 : vector<8x4xf32>
    %cst_166 = arith.constant 0.000000e+00 : f32
    %713 = vector.broadcast %cst_166 : f32 to vector<8x4xf32>
    %714 = arith.select %711, %712, %713 : vector<8x4xi1>, vector<8x4xf32>
    %c2_i32_167 = arith.constant 2 : i32
    %715 = vector.broadcast %c2_i32_167 : i32 to vector<8x4xi32>
    %716 = arith.muli %617, %715 : vector<8x4xi32>
    %717 = arith.addi %716, %675 : vector<8x4xi32>
    %c2_i32_168 = arith.constant 2 : i32
    %718 = vector.broadcast %c2_i32_168 : i32 to vector<8x4xi32>
    %719 = arith.muli %717, %718 : vector<8x4xi32>
    %720 = arith.addi %719, %704 : vector<8x4xi32>
    %c1_i32_169 = arith.constant 1 : i32
    %721 = vector.broadcast %c1_i32_169 : i32 to vector<8x4xi32>
    %722 = arith.addi %615, %721 : vector<8x4xi32>
    %c0_i32_170 = arith.constant 0 : i32
    %723 = vector.broadcast %c0_i32_170 : i32 to vector<8x4xi32>
    %724 = arith.cmpi sge, %722, %723 : vector<8x4xi32>
    %c2_i32_171 = arith.constant 2 : i32
    %725 = vector.broadcast %c2_i32_171 : i32 to vector<8x4xi32>
    %726 = arith.cmpi slt, %722, %725 : vector<8x4xi32>
    %727 = arith.andi %724, %726 : vector<8x4xi1>
    %c0_i32_172 = arith.constant 0 : i32
    %728 = vector.broadcast %c0_i32_172 : i32 to vector<8x4xi32>
    %729 = arith.addi %614, %728 : vector<8x4xi32>
    %cst_173 = arith.constant 1.000000e+00 : f32
    %730 = vector.broadcast %cst_173 : f32 to vector<8x4xf32>
    %731 = arith.subf %730, %611 : vector<8x4xf32>
    %732 = arith.mulf %612, %731 : vector<8x4xf32>
    %c0_i32_174 = arith.constant 0 : i32
    %733 = vector.broadcast %c0_i32_174 : i32 to vector<8x4xi32>
    %734 = arith.cmpi sge, %729, %733 : vector<8x4xi32>
    %735 = arith.andi %727, %734 : vector<8x4xi1>
    %c2_i32_175 = arith.constant 2 : i32
    %736 = vector.broadcast %c2_i32_175 : i32 to vector<8x4xi32>
    %737 = arith.cmpi slt, %729, %736 : vector<8x4xi32>
    %738 = arith.andi %735, %737 : vector<8x4xi1>
    %c0_i32_176 = arith.constant 0 : i32
    %739 = vector.broadcast %c0_i32_176 : i32 to vector<8x4xi32>
    %740 = arith.addi %613, %739 : vector<8x4xi32>
    %cst_177 = arith.constant 1.000000e+00 : f32
    %741 = vector.broadcast %cst_177 : f32 to vector<8x4xf32>
    %742 = arith.subf %741, %610 : vector<8x4xf32>
    %743 = arith.mulf %732, %742 : vector<8x4xf32>
    %c0_i32_178 = arith.constant 0 : i32
    %744 = vector.broadcast %c0_i32_178 : i32 to vector<8x4xi32>
    %745 = arith.cmpi sge, %740, %744 : vector<8x4xi32>
    %746 = arith.andi %738, %745 : vector<8x4xi1>
    %c2_i32_179 = arith.constant 2 : i32
    %747 = vector.broadcast %c2_i32_179 : i32 to vector<8x4xi32>
    %748 = arith.cmpi slt, %740, %747 : vector<8x4xi32>
    %749 = arith.andi %746, %748 : vector<8x4xi1>
    %750 = arith.mulf %743, %606 : vector<8x4xf32>
    %cst_180 = arith.constant 0.000000e+00 : f32
    %751 = vector.broadcast %cst_180 : f32 to vector<8x4xf32>
    %752 = arith.select %749, %750, %751 : vector<8x4xi1>, vector<8x4xf32>
    %c2_i32_181 = arith.constant 2 : i32
    %753 = vector.broadcast %c2_i32_181 : i32 to vector<8x4xi32>
    %754 = arith.muli %722, %753 : vector<8x4xi32>
    %755 = arith.addi %754, %729 : vector<8x4xi32>
    %c2_i32_182 = arith.constant 2 : i32
    %756 = vector.broadcast %c2_i32_182 : i32 to vector<8x4xi32>
    %757 = arith.muli %755, %756 : vector<8x4xi32>
    %758 = arith.addi %757, %740 : vector<8x4xi32>
    %c1_i32_183 = arith.constant 1 : i32
    %759 = vector.broadcast %c1_i32_183 : i32 to vector<8x4xi32>
    %760 = arith.addi %613, %759 : vector<8x4xi32>
    %761 = arith.mulf %732, %610 : vector<8x4xf32>
    %c0_i32_184 = arith.constant 0 : i32
    %762 = vector.broadcast %c0_i32_184 : i32 to vector<8x4xi32>
    %763 = arith.cmpi sge, %760, %762 : vector<8x4xi32>
    %764 = arith.andi %738, %763 : vector<8x4xi1>
    %c2_i32_185 = arith.constant 2 : i32
    %765 = vector.broadcast %c2_i32_185 : i32 to vector<8x4xi32>
    %766 = arith.cmpi slt, %760, %765 : vector<8x4xi32>
    %767 = arith.andi %764, %766 : vector<8x4xi1>
    %768 = arith.mulf %761, %606 : vector<8x4xf32>
    %cst_186 = arith.constant 0.000000e+00 : f32
    %769 = vector.broadcast %cst_186 : f32 to vector<8x4xf32>
    %770 = arith.select %767, %768, %769 : vector<8x4xi1>, vector<8x4xf32>
    %c2_i32_187 = arith.constant 2 : i32
    %771 = vector.broadcast %c2_i32_187 : i32 to vector<8x4xi32>
    %772 = arith.muli %722, %771 : vector<8x4xi32>
    %773 = arith.addi %772, %729 : vector<8x4xi32>
    %c2_i32_188 = arith.constant 2 : i32
    %774 = vector.broadcast %c2_i32_188 : i32 to vector<8x4xi32>
    %775 = arith.muli %773, %774 : vector<8x4xi32>
    %776 = arith.addi %775, %760 : vector<8x4xi32>
    %c1_i32_189 = arith.constant 1 : i32
    %777 = vector.broadcast %c1_i32_189 : i32 to vector<8x4xi32>
    %778 = arith.addi %614, %777 : vector<8x4xi32>
    %779 = arith.mulf %612, %611 : vector<8x4xf32>
    %c0_i32_190 = arith.constant 0 : i32
    %780 = vector.broadcast %c0_i32_190 : i32 to vector<8x4xi32>
    %781 = arith.cmpi sge, %778, %780 : vector<8x4xi32>
    %782 = arith.andi %727, %781 : vector<8x4xi1>
    %c2_i32_191 = arith.constant 2 : i32
    %783 = vector.broadcast %c2_i32_191 : i32 to vector<8x4xi32>
    %784 = arith.cmpi slt, %778, %783 : vector<8x4xi32>
    %785 = arith.andi %782, %784 : vector<8x4xi1>
    %c0_i32_192 = arith.constant 0 : i32
    %786 = vector.broadcast %c0_i32_192 : i32 to vector<8x4xi32>
    %787 = arith.addi %613, %786 : vector<8x4xi32>
    %cst_193 = arith.constant 1.000000e+00 : f32
    %788 = vector.broadcast %cst_193 : f32 to vector<8x4xf32>
    %789 = arith.subf %788, %610 : vector<8x4xf32>
    %790 = arith.mulf %779, %789 : vector<8x4xf32>
    %c0_i32_194 = arith.constant 0 : i32
    %791 = vector.broadcast %c0_i32_194 : i32 to vector<8x4xi32>
    %792 = arith.cmpi sge, %787, %791 : vector<8x4xi32>
    %793 = arith.andi %785, %792 : vector<8x4xi1>
    %c2_i32_195 = arith.constant 2 : i32
    %794 = vector.broadcast %c2_i32_195 : i32 to vector<8x4xi32>
    %795 = arith.cmpi slt, %787, %794 : vector<8x4xi32>
    %796 = arith.andi %793, %795 : vector<8x4xi1>
    %797 = arith.mulf %790, %606 : vector<8x4xf32>
    %cst_196 = arith.constant 0.000000e+00 : f32
    %798 = vector.broadcast %cst_196 : f32 to vector<8x4xf32>
    %799 = arith.select %796, %797, %798 : vector<8x4xi1>, vector<8x4xf32>
    %c2_i32_197 = arith.constant 2 : i32
    %800 = vector.broadcast %c2_i32_197 : i32 to vector<8x4xi32>
    %801 = arith.muli %722, %800 : vector<8x4xi32>
    %802 = arith.addi %801, %778 : vector<8x4xi32>
    %c2_i32_198 = arith.constant 2 : i32
    %803 = vector.broadcast %c2_i32_198 : i32 to vector<8x4xi32>
    %804 = arith.muli %802, %803 : vector<8x4xi32>
    %805 = arith.addi %804, %787 : vector<8x4xi32>
    %c1_i32_199 = arith.constant 1 : i32
    %806 = vector.broadcast %c1_i32_199 : i32 to vector<8x4xi32>
    %807 = arith.addi %613, %806 : vector<8x4xi32>
    %808 = arith.mulf %779, %610 : vector<8x4xf32>
    %c0_i32_200 = arith.constant 0 : i32
    %809 = vector.broadcast %c0_i32_200 : i32 to vector<8x4xi32>
    %810 = arith.cmpi sge, %807, %809 : vector<8x4xi32>
    %811 = arith.andi %785, %810 : vector<8x4xi1>
    %c2_i32_201 = arith.constant 2 : i32
    %812 = vector.broadcast %c2_i32_201 : i32 to vector<8x4xi32>
    %813 = arith.cmpi slt, %807, %812 : vector<8x4xi32>
    %814 = arith.andi %811, %813 : vector<8x4xi1>
    %815 = arith.mulf %808, %606 : vector<8x4xf32>
    %cst_202 = arith.constant 0.000000e+00 : f32
    %816 = vector.broadcast %cst_202 : f32 to vector<8x4xf32>
    %817 = arith.select %814, %815, %816 : vector<8x4xi1>, vector<8x4xf32>
    %c2_i32_203 = arith.constant 2 : i32
    %818 = vector.broadcast %c2_i32_203 : i32 to vector<8x4xi32>
    %819 = arith.muli %722, %818 : vector<8x4xi32>
    %820 = arith.addi %819, %778 : vector<8x4xi32>
    %c2_i32_204 = arith.constant 2 : i32
    %821 = vector.broadcast %c2_i32_204 : i32 to vector<8x4xi32>
    %822 = arith.muli %820, %821 : vector<8x4xi32>
    %823 = arith.addi %822, %807 : vector<8x4xi32>
    %824 = tpu.iota {dimensions = array<i32: 1>} : vector<1x8xi32>
    %cst_205 = arith.constant 0.000000e+00 : f32
    %825 = vector.broadcast %cst_205 : f32 to vector<8x8xf32>
    %c0_i32_206 = arith.constant 0 : i32
    %826 = vector.broadcast %c0_i32_206 : i32 to vector<8x4xi32>
    %827 = arith.subi %655, %826 : vector<8x4xi32>
    %828 = vector.extract_strided_slice %827 {offsets = [0, 0], sizes = [8, 1], strides = [1, 1]} : vector<8x4xi32> to vector<8x1xi32>
    %829 = vector.broadcast %828 : vector<8x1xi32> to vector<8x8xi32>
    %830 = vector.broadcast %824 : vector<1x8xi32> to vector<8x8xi32>
    %831 = arith.cmpi eq, %829, %830 : vector<8x8xi32>
    %832 = vector.extract_strided_slice %649 {offsets = [0, 0], sizes = [8, 1], strides = [1, 1]} : vector<8x4xf32> to vector<8x1xf32>
    %cst_207 = arith.constant 0.000000e+00 : f32
    %833 = vector.shape_cast %832 : vector<8x1xf32> to vector<8x1xf32>
    %834 = vector.broadcast %833 : vector<8x1xf32> to vector<8x8xf32>
    %835 = vector.broadcast %cst_207 : f32 to vector<8x8xf32>
    %836 = arith.select %831, %834, %835 : vector<8x8xi1>, vector<8x8xf32>
    %837 = arith.addf %825, %836 : vector<8x8xf32>
    %838 = vector.extract_strided_slice %827 {offsets = [0, 1], sizes = [8, 1], strides = [1, 1]} : vector<8x4xi32> to vector<8x1xi32>
    %839 = vector.broadcast %838 : vector<8x1xi32> to vector<8x8xi32>
    %840 = vector.broadcast %824 : vector<1x8xi32> to vector<8x8xi32>
    %841 = arith.cmpi eq, %839, %840 : vector<8x8xi32>
    %842 = vector.extract_strided_slice %649 {offsets = [0, 1], sizes = [8, 1], strides = [1, 1]} : vector<8x4xf32> to vector<8x1xf32>
    %cst_208 = arith.constant 0.000000e+00 : f32
    %843 = vector.shape_cast %842 : vector<8x1xf32> to vector<8x1xf32>
    %844 = vector.broadcast %843 : vector<8x1xf32> to vector<8x8xf32>
    %845 = vector.broadcast %cst_208 : f32 to vector<8x8xf32>
    %846 = arith.select %841, %844, %845 : vector<8x8xi1>, vector<8x8xf32>
    %847 = arith.addf %837, %846 : vector<8x8xf32>
    %848 = vector.extract_strided_slice %827 {offsets = [0, 2], sizes = [8, 1], strides = [1, 1]} : vector<8x4xi32> to vector<8x1xi32>
    %849 = vector.broadcast %848 : vector<8x1xi32> to vector<8x8xi32>
    %850 = vector.broadcast %824 : vector<1x8xi32> to vector<8x8xi32>
    %851 = arith.cmpi eq, %849, %850 : vector<8x8xi32>
    %852 = vector.extract_strided_slice %649 {offsets = [0, 2], sizes = [8, 1], strides = [1, 1]} : vector<8x4xf32> to vector<8x1xf32>
    %cst_209 = arith.constant 0.000000e+00 : f32
    %853 = vector.shape_cast %852 : vector<8x1xf32> to vector<8x1xf32>
    %854 = vector.broadcast %853 : vector<8x1xf32> to vector<8x8xf32>
    %855 = vector.broadcast %cst_209 : f32 to vector<8x8xf32>
    %856 = arith.select %851, %854, %855 : vector<8x8xi1>, vector<8x8xf32>
    %857 = arith.addf %847, %856 : vector<8x8xf32>
    %858 = vector.extract_strided_slice %827 {offsets = [0, 3], sizes = [8, 1], strides = [1, 1]} : vector<8x4xi32> to vector<8x1xi32>
    %859 = vector.broadcast %858 : vector<8x1xi32> to vector<8x8xi32>
    %860 = vector.broadcast %824 : vector<1x8xi32> to vector<8x8xi32>
    %861 = arith.cmpi eq, %859, %860 : vector<8x8xi32>
    %862 = vector.extract_strided_slice %649 {offsets = [0, 3], sizes = [8, 1], strides = [1, 1]} : vector<8x4xf32> to vector<8x1xf32>
    %cst_210 = arith.constant 0.000000e+00 : f32
    %863 = vector.shape_cast %862 : vector<8x1xf32> to vector<8x1xf32>
    %864 = vector.broadcast %863 : vector<8x1xf32> to vector<8x8xf32>
    %865 = vector.broadcast %cst_210 : f32 to vector<8x8xf32>
    %866 = arith.select %861, %864, %865 : vector<8x8xi1>, vector<8x8xf32>
    %867 = arith.addf %857, %866 : vector<8x8xf32>
    %c0_i32_211 = arith.constant 0 : i32
    %868 = vector.broadcast %c0_i32_211 : i32 to vector<8x4xi32>
    %869 = arith.subi %673, %868 : vector<8x4xi32>
    %870 = vector.extract_strided_slice %869 {offsets = [0, 0], sizes = [8, 1], strides = [1, 1]} : vector<8x4xi32> to vector<8x1xi32>
    %871 = vector.broadcast %870 : vector<8x1xi32> to vector<8x8xi32>
    %872 = vector.broadcast %824 : vector<1x8xi32> to vector<8x8xi32>
    %873 = arith.cmpi eq, %871, %872 : vector<8x8xi32>
    %874 = vector.extract_strided_slice %667 {offsets = [0, 0], sizes = [8, 1], strides = [1, 1]} : vector<8x4xf32> to vector<8x1xf32>
    %cst_212 = arith.constant 0.000000e+00 : f32
    %875 = vector.shape_cast %874 : vector<8x1xf32> to vector<8x1xf32>
    %876 = vector.broadcast %875 : vector<8x1xf32> to vector<8x8xf32>
    %877 = vector.broadcast %cst_212 : f32 to vector<8x8xf32>
    %878 = arith.select %873, %876, %877 : vector<8x8xi1>, vector<8x8xf32>
    %879 = arith.addf %867, %878 : vector<8x8xf32>
    %880 = vector.extract_strided_slice %869 {offsets = [0, 1], sizes = [8, 1], strides = [1, 1]} : vector<8x4xi32> to vector<8x1xi32>
    %881 = vector.broadcast %880 : vector<8x1xi32> to vector<8x8xi32>
    %882 = vector.broadcast %824 : vector<1x8xi32> to vector<8x8xi32>
    %883 = arith.cmpi eq, %881, %882 : vector<8x8xi32>
    %884 = vector.extract_strided_slice %667 {offsets = [0, 1], sizes = [8, 1], strides = [1, 1]} : vector<8x4xf32> to vector<8x1xf32>
    %cst_213 = arith.constant 0.000000e+00 : f32
    %885 = vector.shape_cast %884 : vector<8x1xf32> to vector<8x1xf32>
    %886 = vector.broadcast %885 : vector<8x1xf32> to vector<8x8xf32>
    %887 = vector.broadcast %cst_213 : f32 to vector<8x8xf32>
    %888 = arith.select %883, %886, %887 : vector<8x8xi1>, vector<8x8xf32>
    %889 = arith.addf %879, %888 : vector<8x8xf32>
    %890 = vector.extract_strided_slice %869 {offsets = [0, 2], sizes = [8, 1], strides = [1, 1]} : vector<8x4xi32> to vector<8x1xi32>
    %891 = vector.broadcast %890 : vector<8x1xi32> to vector<8x8xi32>
    %892 = vector.broadcast %824 : vector<1x8xi32> to vector<8x8xi32>
    %893 = arith.cmpi eq, %891, %892 : vector<8x8xi32>
    %894 = vector.extract_strided_slice %667 {offsets = [0, 2], sizes = [8, 1], strides = [1, 1]} : vector<8x4xf32> to vector<8x1xf32>
    %cst_214 = arith.constant 0.000000e+00 : f32
    %895 = vector.shape_cast %894 : vector<8x1xf32> to vector<8x1xf32>
    %896 = vector.broadcast %895 : vector<8x1xf32> to vector<8x8xf32>
    %897 = vector.broadcast %cst_214 : f32 to vector<8x8xf32>
    %898 = arith.select %893, %896, %897 : vector<8x8xi1>, vector<8x8xf32>
    %899 = arith.addf %889, %898 : vector<8x8xf32>
    %900 = vector.extract_strided_slice %869 {offsets = [0, 3], sizes = [8, 1], strides = [1, 1]} : vector<8x4xi32> to vector<8x1xi32>
    %901 = vector.broadcast %900 : vector<8x1xi32> to vector<8x8xi32>
    %902 = vector.broadcast %824 : vector<1x8xi32> to vector<8x8xi32>
    %903 = arith.cmpi eq, %901, %902 : vector<8x8xi32>
    %904 = vector.extract_strided_slice %667 {offsets = [0, 3], sizes = [8, 1], strides = [1, 1]} : vector<8x4xf32> to vector<8x1xf32>
    %cst_215 = arith.constant 0.000000e+00 : f32
    %905 = vector.shape_cast %904 : vector<8x1xf32> to vector<8x1xf32>
    %906 = vector.broadcast %905 : vector<8x1xf32> to vector<8x8xf32>
    %907 = vector.broadcast %cst_215 : f32 to vector<8x8xf32>
    %908 = arith.select %903, %906, %907 : vector<8x8xi1>, vector<8x8xf32>
    %909 = arith.addf %899, %908 : vector<8x8xf32>
    %c0_i32_216 = arith.constant 0 : i32
    %910 = vector.broadcast %c0_i32_216 : i32 to vector<8x4xi32>
    %911 = arith.subi %702, %910 : vector<8x4xi32>
    %912 = vector.extract_strided_slice %911 {offsets = [0, 0], sizes = [8, 1], strides = [1, 1]} : vector<8x4xi32> to vector<8x1xi32>
    %913 = vector.broadcast %912 : vector<8x1xi32> to vector<8x8xi32>
    %914 = vector.broadcast %824 : vector<1x8xi32> to vector<8x8xi32>
    %915 = arith.cmpi eq, %913, %914 : vector<8x8xi32>
    %916 = vector.extract_strided_slice %696 {offsets = [0, 0], sizes = [8, 1], strides = [1, 1]} : vector<8x4xf32> to vector<8x1xf32>
    %cst_217 = arith.constant 0.000000e+00 : f32
    %917 = vector.shape_cast %916 : vector<8x1xf32> to vector<8x1xf32>
    %918 = vector.broadcast %917 : vector<8x1xf32> to vector<8x8xf32>
    %919 = vector.broadcast %cst_217 : f32 to vector<8x8xf32>
    %920 = arith.select %915, %918, %919 : vector<8x8xi1>, vector<8x8xf32>
    %921 = arith.addf %909, %920 : vector<8x8xf32>
    %922 = vector.extract_strided_slice %911 {offsets = [0, 1], sizes = [8, 1], strides = [1, 1]} : vector<8x4xi32> to vector<8x1xi32>
    %923 = vector.broadcast %922 : vector<8x1xi32> to vector<8x8xi32>
    %924 = vector.broadcast %824 : vector<1x8xi32> to vector<8x8xi32>
    %925 = arith.cmpi eq, %923, %924 : vector<8x8xi32>
    %926 = vector.extract_strided_slice %696 {offsets = [0, 1], sizes = [8, 1], strides = [1, 1]} : vector<8x4xf32> to vector<8x1xf32>
    %cst_218 = arith.constant 0.000000e+00 : f32
    %927 = vector.shape_cast %926 : vector<8x1xf32> to vector<8x1xf32>
    %928 = vector.broadcast %927 : vector<8x1xf32> to vector<8x8xf32>
    %929 = vector.broadcast %cst_218 : f32 to vector<8x8xf32>
    %930 = arith.select %925, %928, %929 : vector<8x8xi1>, vector<8x8xf32>
    %931 = arith.addf %921, %930 : vector<8x8xf32>
    %932 = vector.extract_strided_slice %911 {offsets = [0, 2], sizes = [8, 1], strides = [1, 1]} : vector<8x4xi32> to vector<8x1xi32>
    %933 = vector.broadcast %932 : vector<8x1xi32> to vector<8x8xi32>
    %934 = vector.broadcast %824 : vector<1x8xi32> to vector<8x8xi32>
    %935 = arith.cmpi eq, %933, %934 : vector<8x8xi32>
    %936 = vector.extract_strided_slice %696 {offsets = [0, 2], sizes = [8, 1], strides = [1, 1]} : vector<8x4xf32> to vector<8x1xf32>
    %cst_219 = arith.constant 0.000000e+00 : f32
    %937 = vector.shape_cast %936 : vector<8x1xf32> to vector<8x1xf32>
    %938 = vector.broadcast %937 : vector<8x1xf32> to vector<8x8xf32>
    %939 = vector.broadcast %cst_219 : f32 to vector<8x8xf32>
    %940 = arith.select %935, %938, %939 : vector<8x8xi1>, vector<8x8xf32>
    %941 = arith.addf %931, %940 : vector<8x8xf32>
    %942 = vector.extract_strided_slice %911 {offsets = [0, 3], sizes = [8, 1], strides = [1, 1]} : vector<8x4xi32> to vector<8x1xi32>
    %943 = vector.broadcast %942 : vector<8x1xi32> to vector<8x8xi32>
    %944 = vector.broadcast %824 : vector<1x8xi32> to vector<8x8xi32>
    %945 = arith.cmpi eq, %943, %944 : vector<8x8xi32>
    %946 = vector.extract_strided_slice %696 {offsets = [0, 3], sizes = [8, 1], strides = [1, 1]} : vector<8x4xf32> to vector<8x1xf32>
    %cst_220 = arith.constant 0.000000e+00 : f32
    %947 = vector.shape_cast %946 : vector<8x1xf32> to vector<8x1xf32>
    %948 = vector.broadcast %947 : vector<8x1xf32> to vector<8x8xf32>
    %949 = vector.broadcast %cst_220 : f32 to vector<8x8xf32>
    %950 = arith.select %945, %948, %949 : vector<8x8xi1>, vector<8x8xf32>
    %951 = arith.addf %941, %950 : vector<8x8xf32>
    %c0_i32_221 = arith.constant 0 : i32
    %952 = vector.broadcast %c0_i32_221 : i32 to vector<8x4xi32>
    %953 = arith.subi %720, %952 : vector<8x4xi32>
    %954 = vector.extract_strided_slice %953 {offsets = [0, 0], sizes = [8, 1], strides = [1, 1]} : vector<8x4xi32> to vector<8x1xi32>
    %955 = vector.broadcast %954 : vector<8x1xi32> to vector<8x8xi32>
    %956 = vector.broadcast %824 : vector<1x8xi32> to vector<8x8xi32>
    %957 = arith.cmpi eq, %955, %956 : vector<8x8xi32>
    %958 = vector.extract_strided_slice %714 {offsets = [0, 0], sizes = [8, 1], strides = [1, 1]} : vector<8x4xf32> to vector<8x1xf32>
    %cst_222 = arith.constant 0.000000e+00 : f32
    %959 = vector.shape_cast %958 : vector<8x1xf32> to vector<8x1xf32>
    %960 = vector.broadcast %959 : vector<8x1xf32> to vector<8x8xf32>
    %961 = vector.broadcast %cst_222 : f32 to vector<8x8xf32>
    %962 = arith.select %957, %960, %961 : vector<8x8xi1>, vector<8x8xf32>
    %963 = arith.addf %951, %962 : vector<8x8xf32>
    %964 = vector.extract_strided_slice %953 {offsets = [0, 1], sizes = [8, 1], strides = [1, 1]} : vector<8x4xi32> to vector<8x1xi32>
    %965 = vector.broadcast %964 : vector<8x1xi32> to vector<8x8xi32>
    %966 = vector.broadcast %824 : vector<1x8xi32> to vector<8x8xi32>
    %967 = arith.cmpi eq, %965, %966 : vector<8x8xi32>
    %968 = vector.extract_strided_slice %714 {offsets = [0, 1], sizes = [8, 1], strides = [1, 1]} : vector<8x4xf32> to vector<8x1xf32>
    %cst_223 = arith.constant 0.000000e+00 : f32
    %969 = vector.shape_cast %968 : vector<8x1xf32> to vector<8x1xf32>
    %970 = vector.broadcast %969 : vector<8x1xf32> to vector<8x8xf32>
    %971 = vector.broadcast %cst_223 : f32 to vector<8x8xf32>
    %972 = arith.select %967, %970, %971 : vector<8x8xi1>, vector<8x8xf32>
    %973 = arith.addf %963, %972 : vector<8x8xf32>
    %974 = vector.extract_strided_slice %953 {offsets = [0, 2], sizes = [8, 1], strides = [1, 1]} : vector<8x4xi32> to vector<8x1xi32>
    %975 = vector.broadcast %974 : vector<8x1xi32> to vector<8x8xi32>
    %976 = vector.broadcast %824 : vector<1x8xi32> to vector<8x8xi32>
    %977 = arith.cmpi eq, %975, %976 : vector<8x8xi32>
    %978 = vector.extract_strided_slice %714 {offsets = [0, 2], sizes = [8, 1], strides = [1, 1]} : vector<8x4xf32> to vector<8x1xf32>
    %cst_224 = arith.constant 0.000000e+00 : f32
    %979 = vector.shape_cast %978 : vector<8x1xf32> to vector<8x1xf32>
    %980 = vector.broadcast %979 : vector<8x1xf32> to vector<8x8xf32>
    %981 = vector.broadcast %cst_224 : f32 to vector<8x8xf32>
    %982 = arith.select %977, %980, %981 : vector<8x8xi1>, vector<8x8xf32>
    %983 = arith.addf %973, %982 : vector<8x8xf32>
    %984 = vector.extract_strided_slice %953 {offsets = [0, 3], sizes = [8, 1], strides = [1, 1]} : vector<8x4xi32> to vector<8x1xi32>
    %985 = vector.broadcast %984 : vector<8x1xi32> to vector<8x8xi32>
    %986 = vector.broadcast %824 : vector<1x8xi32> to vector<8x8xi32>
    %987 = arith.cmpi eq, %985, %986 : vector<8x8xi32>
    %988 = vector.extract_strided_slice %714 {offsets = [0, 3], sizes = [8, 1], strides = [1, 1]} : vector<8x4xf32> to vector<8x1xf32>
    %cst_225 = arith.constant 0.000000e+00 : f32
    %989 = vector.shape_cast %988 : vector<8x1xf32> to vector<8x1xf32>
    %990 = vector.broadcast %989 : vector<8x1xf32> to vector<8x8xf32>
    %991 = vector.broadcast %cst_225 : f32 to vector<8x8xf32>
    %992 = arith.select %987, %990, %991 : vector<8x8xi1>, vector<8x8xf32>
    %993 = arith.addf %983, %992 : vector<8x8xf32>
    %c0_i32_226 = arith.constant 0 : i32
    %994 = vector.broadcast %c0_i32_226 : i32 to vector<8x4xi32>
    %995 = arith.subi %758, %994 : vector<8x4xi32>
    %996 = vector.extract_strided_slice %995 {offsets = [0, 0], sizes = [8, 1], strides = [1, 1]} : vector<8x4xi32> to vector<8x1xi32>
    %997 = vector.broadcast %996 : vector<8x1xi32> to vector<8x8xi32>
    %998 = vector.broadcast %824 : vector<1x8xi32> to vector<8x8xi32>
    %999 = arith.cmpi eq, %997, %998 : vector<8x8xi32>
    %1000 = vector.extract_strided_slice %752 {offsets = [0, 0], sizes = [8, 1], strides = [1, 1]} : vector<8x4xf32> to vector<8x1xf32>
    %cst_227 = arith.constant 0.000000e+00 : f32
    %1001 = vector.shape_cast %1000 : vector<8x1xf32> to vector<8x1xf32>
    %1002 = vector.broadcast %1001 : vector<8x1xf32> to vector<8x8xf32>
    %1003 = vector.broadcast %cst_227 : f32 to vector<8x8xf32>
    %1004 = arith.select %999, %1002, %1003 : vector<8x8xi1>, vector<8x8xf32>
    %1005 = arith.addf %993, %1004 : vector<8x8xf32>
    %1006 = vector.extract_strided_slice %995 {offsets = [0, 1], sizes = [8, 1], strides = [1, 1]} : vector<8x4xi32> to vector<8x1xi32>
    %1007 = vector.broadcast %1006 : vector<8x1xi32> to vector<8x8xi32>
    %1008 = vector.broadcast %824 : vector<1x8xi32> to vector<8x8xi32>
    %1009 = arith.cmpi eq, %1007, %1008 : vector<8x8xi32>
    %1010 = vector.extract_strided_slice %752 {offsets = [0, 1], sizes = [8, 1], strides = [1, 1]} : vector<8x4xf32> to vector<8x1xf32>
    %cst_228 = arith.constant 0.000000e+00 : f32
    %1011 = vector.shape_cast %1010 : vector<8x1xf32> to vector<8x1xf32>
    %1012 = vector.broadcast %1011 : vector<8x1xf32> to vector<8x8xf32>
    %1013 = vector.broadcast %cst_228 : f32 to vector<8x8xf32>
    %1014 = arith.select %1009, %1012, %1013 : vector<8x8xi1>, vector<8x8xf32>
    %1015 = arith.addf %1005, %1014 : vector<8x8xf32>
    %1016 = vector.extract_strided_slice %995 {offsets = [0, 2], sizes = [8, 1], strides = [1, 1]} : vector<8x4xi32> to vector<8x1xi32>
    %1017 = vector.broadcast %1016 : vector<8x1xi32> to vector<8x8xi32>
    %1018 = vector.broadcast %824 : vector<1x8xi32> to vector<8x8xi32>
    %1019 = arith.cmpi eq, %1017, %1018 : vector<8x8xi32>
    %1020 = vector.extract_strided_slice %752 {offsets = [0, 2], sizes = [8, 1], strides = [1, 1]} : vector<8x4xf32> to vector<8x1xf32>
    %cst_229 = arith.constant 0.000000e+00 : f32
    %1021 = vector.shape_cast %1020 : vector<8x1xf32> to vector<8x1xf32>
    %1022 = vector.broadcast %1021 : vector<8x1xf32> to vector<8x8xf32>
    %1023 = vector.broadcast %cst_229 : f32 to vector<8x8xf32>
    %1024 = arith.select %1019, %1022, %1023 : vector<8x8xi1>, vector<8x8xf32>
    %1025 = arith.addf %1015, %1024 : vector<8x8xf32>
    %1026 = vector.extract_strided_slice %995 {offsets = [0, 3], sizes = [8, 1], strides = [1, 1]} : vector<8x4xi32> to vector<8x1xi32>
    %1027 = vector.broadcast %1026 : vector<8x1xi32> to vector<8x8xi32>
    %1028 = vector.broadcast %824 : vector<1x8xi32> to vector<8x8xi32>
    %1029 = arith.cmpi eq, %1027, %1028 : vector<8x8xi32>
    %1030 = vector.extract_strided_slice %752 {offsets = [0, 3], sizes = [8, 1], strides = [1, 1]} : vector<8x4xf32> to vector<8x1xf32>
    %cst_230 = arith.constant 0.000000e+00 : f32
    %1031 = vector.shape_cast %1030 : vector<8x1xf32> to vector<8x1xf32>
    %1032 = vector.broadcast %1031 : vector<8x1xf32> to vector<8x8xf32>
    %1033 = vector.broadcast %cst_230 : f32 to vector<8x8xf32>
    %1034 = arith.select %1029, %1032, %1033 : vector<8x8xi1>, vector<8x8xf32>
    %1035 = arith.addf %1025, %1034 : vector<8x8xf32>
    %c0_i32_231 = arith.constant 0 : i32
    %1036 = vector.broadcast %c0_i32_231 : i32 to vector<8x4xi32>
    %1037 = arith.subi %776, %1036 : vector<8x4xi32>
    %1038 = vector.extract_strided_slice %1037 {offsets = [0, 0], sizes = [8, 1], strides = [1, 1]} : vector<8x4xi32> to vector<8x1xi32>
    %1039 = vector.broadcast %1038 : vector<8x1xi32> to vector<8x8xi32>
    %1040 = vector.broadcast %824 : vector<1x8xi32> to vector<8x8xi32>
    %1041 = arith.cmpi eq, %1039, %1040 : vector<8x8xi32>
    %1042 = vector.extract_strided_slice %770 {offsets = [0, 0], sizes = [8, 1], strides = [1, 1]} : vector<8x4xf32> to vector<8x1xf32>
    %cst_232 = arith.constant 0.000000e+00 : f32
    %1043 = vector.shape_cast %1042 : vector<8x1xf32> to vector<8x1xf32>
    %1044 = vector.broadcast %1043 : vector<8x1xf32> to vector<8x8xf32>
    %1045 = vector.broadcast %cst_232 : f32 to vector<8x8xf32>
    %1046 = arith.select %1041, %1044, %1045 : vector<8x8xi1>, vector<8x8xf32>
    %1047 = arith.addf %1035, %1046 : vector<8x8xf32>
    %1048 = vector.extract_strided_slice %1037 {offsets = [0, 1], sizes = [8, 1], strides = [1, 1]} : vector<8x4xi32> to vector<8x1xi32>
    %1049 = vector.broadcast %1048 : vector<8x1xi32> to vector<8x8xi32>
    %1050 = vector.broadcast %824 : vector<1x8xi32> to vector<8x8xi32>
    %1051 = arith.cmpi eq, %1049, %1050 : vector<8x8xi32>
    %1052 = vector.extract_strided_slice %770 {offsets = [0, 1], sizes = [8, 1], strides = [1, 1]} : vector<8x4xf32> to vector<8x1xf32>
    %cst_233 = arith.constant 0.000000e+00 : f32
    %1053 = vector.shape_cast %1052 : vector<8x1xf32> to vector<8x1xf32>
    %1054 = vector.broadcast %1053 : vector<8x1xf32> to vector<8x8xf32>
    %1055 = vector.broadcast %cst_233 : f32 to vector<8x8xf32>
    %1056 = arith.select %1051, %1054, %1055 : vector<8x8xi1>, vector<8x8xf32>
    %1057 = arith.addf %1047, %1056 : vector<8x8xf32>
    %1058 = vector.extract_strided_slice %1037 {offsets = [0, 2], sizes = [8, 1], strides = [1, 1]} : vector<8x4xi32> to vector<8x1xi32>
    %1059 = vector.broadcast %1058 : vector<8x1xi32> to vector<8x8xi32>
    %1060 = vector.broadcast %824 : vector<1x8xi32> to vector<8x8xi32>
    %1061 = arith.cmpi eq, %1059, %1060 : vector<8x8xi32>
    %1062 = vector.extract_strided_slice %770 {offsets = [0, 2], sizes = [8, 1], strides = [1, 1]} : vector<8x4xf32> to vector<8x1xf32>
    %cst_234 = arith.constant 0.000000e+00 : f32
    %1063 = vector.shape_cast %1062 : vector<8x1xf32> to vector<8x1xf32>
    %1064 = vector.broadcast %1063 : vector<8x1xf32> to vector<8x8xf32>
    %1065 = vector.broadcast %cst_234 : f32 to vector<8x8xf32>
    %1066 = arith.select %1061, %1064, %1065 : vector<8x8xi1>, vector<8x8xf32>
    %1067 = arith.addf %1057, %1066 : vector<8x8xf32>
    %1068 = vector.extract_strided_slice %1037 {offsets = [0, 3], sizes = [8, 1], strides = [1, 1]} : vector<8x4xi32> to vector<8x1xi32>
    %1069 = vector.broadcast %1068 : vector<8x1xi32> to vector<8x8xi32>
    %1070 = vector.broadcast %824 : vector<1x8xi32> to vector<8x8xi32>
    %1071 = arith.cmpi eq, %1069, %1070 : vector<8x8xi32>
    %1072 = vector.extract_strided_slice %770 {offsets = [0, 3], sizes = [8, 1], strides = [1, 1]} : vector<8x4xf32> to vector<8x1xf32>
    %cst_235 = arith.constant 0.000000e+00 : f32
    %1073 = vector.shape_cast %1072 : vector<8x1xf32> to vector<8x1xf32>
    %1074 = vector.broadcast %1073 : vector<8x1xf32> to vector<8x8xf32>
    %1075 = vector.broadcast %cst_235 : f32 to vector<8x8xf32>
    %1076 = arith.select %1071, %1074, %1075 : vector<8x8xi1>, vector<8x8xf32>
    %1077 = arith.addf %1067, %1076 : vector<8x8xf32>
    %c0_i32_236 = arith.constant 0 : i32
    %1078 = vector.broadcast %c0_i32_236 : i32 to vector<8x4xi32>
    %1079 = arith.subi %805, %1078 : vector<8x4xi32>
    %1080 = vector.extract_strided_slice %1079 {offsets = [0, 0], sizes = [8, 1], strides = [1, 1]} : vector<8x4xi32> to vector<8x1xi32>
    %1081 = vector.broadcast %1080 : vector<8x1xi32> to vector<8x8xi32>
    %1082 = vector.broadcast %824 : vector<1x8xi32> to vector<8x8xi32>
    %1083 = arith.cmpi eq, %1081, %1082 : vector<8x8xi32>
    %1084 = vector.extract_strided_slice %799 {offsets = [0, 0], sizes = [8, 1], strides = [1, 1]} : vector<8x4xf32> to vector<8x1xf32>
    %cst_237 = arith.constant 0.000000e+00 : f32
    %1085 = vector.shape_cast %1084 : vector<8x1xf32> to vector<8x1xf32>
    %1086 = vector.broadcast %1085 : vector<8x1xf32> to vector<8x8xf32>
    %1087 = vector.broadcast %cst_237 : f32 to vector<8x8xf32>
    %1088 = arith.select %1083, %1086, %1087 : vector<8x8xi1>, vector<8x8xf32>
    %1089 = arith.addf %1077, %1088 : vector<8x8xf32>
    %1090 = vector.extract_strided_slice %1079 {offsets = [0, 1], sizes = [8, 1], strides = [1, 1]} : vector<8x4xi32> to vector<8x1xi32>
    %1091 = vector.broadcast %1090 : vector<8x1xi32> to vector<8x8xi32>
    %1092 = vector.broadcast %824 : vector<1x8xi32> to vector<8x8xi32>
    %1093 = arith.cmpi eq, %1091, %1092 : vector<8x8xi32>
    %1094 = vector.extract_strided_slice %799 {offsets = [0, 1], sizes = [8, 1], strides = [1, 1]} : vector<8x4xf32> to vector<8x1xf32>
    %cst_238 = arith.constant 0.000000e+00 : f32
    %1095 = vector.shape_cast %1094 : vector<8x1xf32> to vector<8x1xf32>
    %1096 = vector.broadcast %1095 : vector<8x1xf32> to vector<8x8xf32>
    %1097 = vector.broadcast %cst_238 : f32 to vector<8x8xf32>
    %1098 = arith.select %1093, %1096, %1097 : vector<8x8xi1>, vector<8x8xf32>
    %1099 = arith.addf %1089, %1098 : vector<8x8xf32>
    %1100 = vector.extract_strided_slice %1079 {offsets = [0, 2], sizes = [8, 1], strides = [1, 1]} : vector<8x4xi32> to vector<8x1xi32>
    %1101 = vector.broadcast %1100 : vector<8x1xi32> to vector<8x8xi32>
    %1102 = vector.broadcast %824 : vector<1x8xi32> to vector<8x8xi32>
    %1103 = arith.cmpi eq, %1101, %1102 : vector<8x8xi32>
    %1104 = vector.extract_strided_slice %799 {offsets = [0, 2], sizes = [8, 1], strides = [1, 1]} : vector<8x4xf32> to vector<8x1xf32>
    %cst_239 = arith.constant 0.000000e+00 : f32
    %1105 = vector.shape_cast %1104 : vector<8x1xf32> to vector<8x1xf32>
    %1106 = vector.broadcast %1105 : vector<8x1xf32> to vector<8x8xf32>
    %1107 = vector.broadcast %cst_239 : f32 to vector<8x8xf32>
    %1108 = arith.select %1103, %1106, %1107 : vector<8x8xi1>, vector<8x8xf32>
    %1109 = arith.addf %1099, %1108 : vector<8x8xf32>
    %1110 = vector.extract_strided_slice %1079 {offsets = [0, 3], sizes = [8, 1], strides = [1, 1]} : vector<8x4xi32> to vector<8x1xi32>
    %1111 = vector.broadcast %1110 : vector<8x1xi32> to vector<8x8xi32>
    %1112 = vector.broadcast %824 : vector<1x8xi32> to vector<8x8xi32>
    %1113 = arith.cmpi eq, %1111, %1112 : vector<8x8xi32>
    %1114 = vector.extract_strided_slice %799 {offsets = [0, 3], sizes = [8, 1], strides = [1, 1]} : vector<8x4xf32> to vector<8x1xf32>
    %cst_240 = arith.constant 0.000000e+00 : f32
    %1115 = vector.shape_cast %1114 : vector<8x1xf32> to vector<8x1xf32>
    %1116 = vector.broadcast %1115 : vector<8x1xf32> to vector<8x8xf32>
    %1117 = vector.broadcast %cst_240 : f32 to vector<8x8xf32>
    %1118 = arith.select %1113, %1116, %1117 : vector<8x8xi1>, vector<8x8xf32>
    %1119 = arith.addf %1109, %1118 : vector<8x8xf32>
    %c0_i32_241 = arith.constant 0 : i32
    %1120 = vector.broadcast %c0_i32_241 : i32 to vector<8x4xi32>
    %1121 = arith.subi %823, %1120 : vector<8x4xi32>
    %1122 = vector.extract_strided_slice %1121 {offsets = [0, 0], sizes = [8, 1], strides = [1, 1]} : vector<8x4xi32> to vector<8x1xi32>
    %1123 = vector.broadcast %1122 : vector<8x1xi32> to vector<8x8xi32>
    %1124 = vector.broadcast %824 : vector<1x8xi32> to vector<8x8xi32>
    %1125 = arith.cmpi eq, %1123, %1124 : vector<8x8xi32>
    %1126 = vector.extract_strided_slice %817 {offsets = [0, 0], sizes = [8, 1], strides = [1, 1]} : vector<8x4xf32> to vector<8x1xf32>
    %cst_242 = arith.constant 0.000000e+00 : f32
    %1127 = vector.shape_cast %1126 : vector<8x1xf32> to vector<8x1xf32>
    %1128 = vector.broadcast %1127 : vector<8x1xf32> to vector<8x8xf32>
    %1129 = vector.broadcast %cst_242 : f32 to vector<8x8xf32>
    %1130 = arith.select %1125, %1128, %1129 : vector<8x8xi1>, vector<8x8xf32>
    %1131 = arith.addf %1119, %1130 : vector<8x8xf32>
    %1132 = vector.extract_strided_slice %1121 {offsets = [0, 1], sizes = [8, 1], strides = [1, 1]} : vector<8x4xi32> to vector<8x1xi32>
    %1133 = vector.broadcast %1132 : vector<8x1xi32> to vector<8x8xi32>
    %1134 = vector.broadcast %824 : vector<1x8xi32> to vector<8x8xi32>
    %1135 = arith.cmpi eq, %1133, %1134 : vector<8x8xi32>
    %1136 = vector.extract_strided_slice %817 {offsets = [0, 1], sizes = [8, 1], strides = [1, 1]} : vector<8x4xf32> to vector<8x1xf32>
    %cst_243 = arith.constant 0.000000e+00 : f32
    %1137 = vector.shape_cast %1136 : vector<8x1xf32> to vector<8x1xf32>
    %1138 = vector.broadcast %1137 : vector<8x1xf32> to vector<8x8xf32>
    %1139 = vector.broadcast %cst_243 : f32 to vector<8x8xf32>
    %1140 = arith.select %1135, %1138, %1139 : vector<8x8xi1>, vector<8x8xf32>
    %1141 = arith.addf %1131, %1140 : vector<8x8xf32>
    %1142 = vector.extract_strided_slice %1121 {offsets = [0, 2], sizes = [8, 1], strides = [1, 1]} : vector<8x4xi32> to vector<8x1xi32>
    %1143 = vector.broadcast %1142 : vector<8x1xi32> to vector<8x8xi32>
    %1144 = vector.broadcast %824 : vector<1x8xi32> to vector<8x8xi32>
    %1145 = arith.cmpi eq, %1143, %1144 : vector<8x8xi32>
    %1146 = vector.extract_strided_slice %817 {offsets = [0, 2], sizes = [8, 1], strides = [1, 1]} : vector<8x4xf32> to vector<8x1xf32>
    %cst_244 = arith.constant 0.000000e+00 : f32
    %1147 = vector.shape_cast %1146 : vector<8x1xf32> to vector<8x1xf32>
    %1148 = vector.broadcast %1147 : vector<8x1xf32> to vector<8x8xf32>
    %1149 = vector.broadcast %cst_244 : f32 to vector<8x8xf32>
    %1150 = arith.select %1145, %1148, %1149 : vector<8x8xi1>, vector<8x8xf32>
    %1151 = arith.addf %1141, %1150 : vector<8x8xf32>
    %1152 = vector.extract_strided_slice %1121 {offsets = [0, 3], sizes = [8, 1], strides = [1, 1]} : vector<8x4xi32> to vector<8x1xi32>
    %1153 = vector.broadcast %1152 : vector<8x1xi32> to vector<8x8xi32>
    %1154 = vector.broadcast %824 : vector<1x8xi32> to vector<8x8xi32>
    %1155 = arith.cmpi eq, %1153, %1154 : vector<8x8xi32>
    %1156 = vector.extract_strided_slice %817 {offsets = [0, 3], sizes = [8, 1], strides = [1, 1]} : vector<8x4xf32> to vector<8x1xf32>
    %cst_245 = arith.constant 0.000000e+00 : f32
    %1157 = vector.shape_cast %1156 : vector<8x1xf32> to vector<8x1xf32>
    %1158 = vector.broadcast %1157 : vector<8x1xf32> to vector<8x8xf32>
    %1159 = vector.broadcast %cst_245 : f32 to vector<8x8xf32>
    %1160 = arith.select %1155, %1158, %1159 : vector<8x8xi1>, vector<8x8xf32>
    %1161 = arith.addf %1151, %1160 : vector<8x8xf32>
    %c0_246 = arith.constant 0 : index
    %c0_247 = arith.constant 0 : index
    %c32 = arith.constant 32 : index
    %c0_248 = arith.constant 0 : index
    %1162 = vector.load %arg4[%c0_246, %c0_247, %c32, %c0_248] : memref<1x1x40x8xbf16, #tpu.memory_space<vmem>>, vector<1x1x8x8xbf16>
    %1163 = vector.shape_cast %1162 : vector<1x1x8x8xbf16> to vector<8x8xbf16>
    %1164 = arith.truncf %1161 : vector<8x8xf32> to vector<8x8xbf16>
    %cst_249 = arith.constant dense<0.000000e+00> : vector<8x8xf32>
    %1165 = tpu.matmul %1164, %1163, %cst_249 {dimension_numbers = #tpu.dot_dimension_numbers<[1], [0], [0], [1], [0, 0, 1, 1], [], []>} : vector<8x8xbf16>, vector<8x8xbf16>, vector<8x8xf32> -> vector<8x8xf32>
    %1166 = arith.addf %590, %1165 : vector<8x8xf32>
    %1167 = arith.index_cast %arg2 : i32 to index
    %c0_250 = arith.constant 0 : index
    %c0_251 = arith.constant 0 : index
    %1168 = vector.load %arg8[%1167, %c0_250, %c0_251] : memref<4x8x8xf32, #tpu.memory_space<vmem>>, vector<1x8x8xf32>
    %1169 = vector.shape_cast %1168 : vector<1x8x8xf32> to vector<8x8xf32>
    %1170 = vector.shape_cast %1166 : vector<8x8xf32> to vector<1x8x8xf32>
    tpu.vector_store %arg8[%1167, %c0_250, %c0_251], %1170 {strides = array<i32>} : memref<4x8x8xf32, #tpu.memory_space<vmem>>, vector<1x8x8xf32>,
    %c3_i32 = arith.constant 3 : i32
    %1171 = arith.cmpi eq, %arg2, %c3_i32 : i32
    %1172 = arith.extui %1171 : i1 to i32
    %c0_i32_252 = arith.constant 0 : i32
    %1173 = arith.cmpi ne, %1172, %c0_i32_252 : i32
    scf.if %1173 {
      %c0_253 = arith.constant 0 : index
      %c0_254 = arith.constant 0 : index
      %c0_255 = arith.constant 0 : index
      %1174 = vector.load %arg8[%c0_253, %c0_254, %c0_255] : memref<4x8x8xf32, #tpu.memory_space<vmem>>, vector<1x8x8xf32>
      %1175 = vector.shape_cast %1174 : vector<1x8x8xf32> to vector<8x8xf32>
      %c1 = arith.constant 1 : index
      %c0_256 = arith.constant 0 : index
      %c0_257 = arith.constant 0 : index
      %1176 = vector.load %arg8[%c1, %c0_256, %c0_257] : memref<4x8x8xf32, #tpu.memory_space<vmem>>, vector<1x8x8xf32>
      %1177 = vector.shape_cast %1176 : vector<1x8x8xf32> to vector<8x8xf32>
      %c2 = arith.constant 2 : index
      %c0_258 = arith.constant 0 : index
      %c0_259 = arith.constant 0 : index
      %1178 = vector.load %arg8[%c2, %c0_258, %c0_259] : memref<4x8x8xf32, #tpu.memory_space<vmem>>, vector<1x8x8xf32>
      %1179 = vector.shape_cast %1178 : vector<1x8x8xf32> to vector<8x8xf32>
      %c3 = arith.constant 3 : index
      %c0_260 = arith.constant 0 : index
      %c0_261 = arith.constant 0 : index
      %1180 = vector.load %arg8[%c3, %c0_260, %c0_261] : memref<4x8x8xf32, #tpu.memory_space<vmem>>, vector<1x8x8xf32>
      %1181 = vector.shape_cast %1180 : vector<1x8x8xf32> to vector<8x8xf32>
      %1182 = tpu.concatenate %1175, %1177, %1179, %1181 in 1 : vector<8x8xf32>, vector<8x8xf32>, vector<8x8xf32>, vector<8x8xf32> -> vector<8x32xf32>
      %c0_262 = arith.constant 0 : index
      %c0_263 = arith.constant 0 : index
      %1183 = vector.load %arg5[%c0_262, %c0_263] : memref<32x32xf32, #tpu.memory_space<vmem>>, vector<32x32xf32>
      %cst_264 = arith.constant dense<0.000000e+00> : vector<8x32xf32>
      %1184 = tpu.matmul %1182, %1183, %cst_264 {dimension_numbers = #tpu.dot_dimension_numbers<[1], [0], [0], [1], [0, 0, 1, 1], [], []>} : vector<8x32xf32>, vector<32x32xf32>, vector<8x32xf32> -> vector<8x32xf32>
      %c0_265 = arith.constant 0 : index
      %c0_266 = arith.constant 0 : index
      %1185 = vector.load %arg6[%c0_265, %c0_266] : memref<1x32xf32, #tpu.memory_space<vmem>>, vector<1x32xf32>
      %1186 = vector.broadcast %1185 : vector<1x32xf32> to vector<8x32xf32>
      %1187 = arith.addf %1184, %1186 : vector<8x32xf32>
      %c0_267 = arith.constant 0 : index
      %c0_268 = arith.constant 0 : index
      %c0_269 = arith.constant 0 : index
      %1188 = vector.load %arg7[%c0_267, %c0_268, %c0_269] : memref<1x8x32xf32, #tpu.memory_space<vmem>>, vector<1x8x32xf32>
      %1189 = vector.shape_cast %1188 : vector<1x8x32xf32> to vector<8x32xf32>
      %1190 = vector.shape_cast %1187 : vector<8x32xf32> to vector<1x8x32xf32>
      tpu.vector_store %arg7[%c0_267, %c0_268, %c0_269], %1190 {strides = array<i32>} : memref<1x8x32xf32, #tpu.memory_space<vmem>>, vector<1x8x32xf32>,
    } else {
    }
    return
  }
  func.func @transform_0(%arg0: i32, %arg1: i32, %arg2: i32) -> (i32, i32, i32, i32) {
    %c0_i32 = arith.constant 0 : i32
    %c0_i32_0 = arith.constant 0 : i32
    return %arg0, %arg2, %c0_i32, %arg1 : i32, i32, i32, i32
  }
  func.func @transform_1(%arg0: i32, %arg1: i32, %arg2: i32) -> (i32, i32, i32, i32) {
    %c0_i32 = arith.constant 0 : i32
    %c0_i32_0 = arith.constant 0 : i32
    %c0_i32_1 = arith.constant 0 : i32
    return %arg0, %arg2, %c0_i32, %c0_i32_0 : i32, i32, i32, i32
  }
  func.func @transform_2(%arg0: i32, %arg1: i32, %arg2: i32) -> (i32, i32) {
    %c0_i32 = arith.constant 0 : i32
    %c0_i32_0 = arith.constant 0 : i32
    %c0_i32_1 = arith.constant 0 : i32
    return %c0_i32, %c0_i32_0 : i32, i32
  }
  func.func @transform_3(%arg0: i32, %arg1: i32, %arg2: i32) -> (i32, i32) {
    %c0_i32 = arith.constant 0 : i32
    %c0_i32_0 = arith.constant 0 : i32
    %c0_i32_1 = arith.constant 0 : i32
    return %c0_i32, %c0_i32_0 : i32, i32
  }
  func.func @transform_4(%arg0: i32, %arg1: i32, %arg2: i32) -> (i32, i32, i32) {
    %c0_i32 = arith.constant 0 : i32
    %c0_i32_0 = arith.constant 0 : i32
    return %arg0, %arg1, %c0_i32 : i32, i32, i32
  }
}

</mosaic_0001>

<bundles_post_ra>
// kernel: tpu_custom_call.1
= control target key start
LH: loop header
LB: loop body
LE: loop exit
PB: predicated region body
PF: predicated region fallthrough
CT: control target
= control target key end

     0   :  { %9 = vsyncpa [#allocation4], 0  ;;  %s3184_s0 = inlined_call_operand.vmem [shape: f32[2,4,32,8], index: 0, kind: input, shape index: {}]   ;;  %s3185_s1 = inlined_call_operand.vmem [shape: bf16[2,4,40,8], index: 1, kind: input, shape index: {}]   ;;  %s3186_s2 = inlined_call_operand.vmem [shape: f32[32,32], index: 2, kind: input, shape index: {}]   ;;  %s3187_s3 = inlined_call_operand.vmem [shape: f32[1,32], index: 3, kind: input, shape index: {}]   ;;  %s3188_s4 = inlined_call_operand.hbm [shape: f32[2,8,32], index: 4, kind: output, shape index: {}]  }
   0x1   :  { %11 = vsyncpa [#allocation4 + $0x1], 0  ;;  %s2029_s15 = smov 0   ;;  %s2031_s16 = smov 0  }
   0x2   :  { %s2033_s17 = smov 0   ;;  %s2035_s18 = smov 0  }
   0x3   :  { %s2037_s19 = smov 0   ;;  %s2039_s20 = smov 0  }
   0x4   :  { %s2041_s21 = smov 0   ;;  %s2043_s22 = smov 0  }
   0x5 LB: > { %s1606_s23 = sadd.s32 4294967295, %s1980_s22   ;;  %s1607_s24 = sadd.s32 4294967294, %s1980_s22   ;;  %s1980_s22 = sphi %s2043_s22, %s17_s22   ;;  %s1976_s21 = sphi %s2041_s21, %s3375_s21   ;;  %s1972_s20 = sphi %s2039_s20, %s3374_s20   ;;  %s1968_s19 = sphi %s2037_s19, %s3373_s19   ;;  %s1964_s18 = sphi %s2035_s18, %s3372_s18   ;;  %s1960_s17 = sphi %s2033_s17, %s3371_s17   ;;  %s1956_s16 = sphi %s2031_s16, %s3370_s16   ;;  %s1952_s15 = sphi %s2029_s15, %s3369_s15  }
   0x6   : > { %s29_s25 = sadd.s32 1, %s1972_s20  ;;  %s36_s26 = sadd.s32 1, %s1976_s21 }
   0x7   : > { %p30_p0 = scmp.ge.s32.totalorder %s29_s25, 4  ;;  %p155_p1 = scmp.ne.s32.totalorder %s1960_s17, %s1956_s16 }
   0x8   : > { %p156_p2 = scmp.eq.s32.totalorder %s1606_s23, 7  ;;  %p161_p4 = scmp.ne.s32.totalorder %s1956_s16, %s1952_s15 }
   0x9   : > { %s3377_s25 = smov (%p30_p0, %s29_s25), 0  ;;  %s3379_s26 = smov (!%p30_p0, %s36_s26), %s1976_s21 }
   0xa   : > { %p2078_p3 = por %p156_p2, %p155_p1  ;;  %p38_p5 = scmp.ge.s32.totalorder %s3379_s26, 2 }
   0xb   : > { %p162_p6 = scmp.eq.s32.totalorder %s1607_s24, 7  ;;  %p1610_p7 = scmp.ge.s32.totalorder %s1980_s22, 1 }
   0xc   : > { %p213_p8 = scmp.lt.s32.totalorder %s1980_s22, 9  ;;  %s3381_s26 = smov (%p38_p5, %s3379_s26), 0 }
   0xd   : > { %p2088_p9 = por %p162_p6, %p161_p4  ;;  %s140_s29 = ssub.s32 %s1976_s21, %s3381_s26 }
   0xe   : > { %p214_p10 = pnand %p1610_p7, %p213_p8  ;;  %s145_s30 = sadd.s32 1, %s1960_s17 }
   0xf   : > { %p143_p11 = scmp.eq.s32.totalorder %s140_s29, 0 }
  0x10   : > { %217 = sbr.rel (%p214_p10) target bundleno = 1774 (0x6ee), region = 36 }
  0x11   : > { %s2096_s5 = scalar_select %p143_p11, %s1960_s17, %s145_s30  }
  0x17   : > { %p255_p12 = scmp.lt.s32.totalorder %s1968_s19, 1  ;;  %p257_p13 = scmp.lt.s32.totalorder %s1964_s18, 3  ;;  %vm313_vm0 = vcmask 261312   ;;  %v1984_v22 = vmov 0   ;;  %v3202_v31 = vmov 17   ;;  %v3196_v32 = vmov 21  }
  0x18   : > { %s1982_s23 = smov 16   ;;  %s1983_s24 = smov 8   ;;  %1770 = vset.pattern.permute.xlu1 %v3202_v31  ;;  %v3206_v51 = vmov 18   ;;  %v3208_v57 = vmov 16   ;;  %v3313_v63 = vmov 18  }
  0x19   : > { %s2101_s6 = scalar_select %p255_p12, %s1968_s19, 1 }
  0x1a   : > { %s2104_s7 = scalar_select %p257_p13, %s1964_s18, 3 }
  0x1b   : > { %s1613_s8 = sshll.u32 %s2101_s6, 4  ;;  %s1993_s29 = smov 104  }
  0x1c   : > { %s1612_s9 = sshll.u32 %s2104_s7, 2  ;;  %s1994_s30 = smov 120  }
  0x1d   : > { %s264_s10 = sadd.s32 %s1613_s8, %s1612_s9  ;;  %s1673_s8 = smul.u32 20, %s2101_s6 }
  0x1e   : > { %s1614_s11 = sshll.u32 %s264_s10, 3  ;;  %s1672_s9 = smul.u32 5, %s2104_s7 }
  0x1f   : > { %s266_s14 = scalar_lea.vmem %s3184_s0, %s1614_s11  ;;  %s252_s10 = sand.u32 1, %s1956_s16  }
  0x20   : > { %v277_v0 = vld [vmem:[%s266_s14] sm:$0xff]  ;;  %v278_v1 = vld [vmem:[%s266_s14 + $0x8] sm:$0xff]  ;;  %v279_v2 = vld [vmem:[%s266_s14 + $0x10] sm:$0xff]  ;;  %s273_s11 = sadd.s32 %s1673_s8, %s1672_s9  ;;  %s3020_s6 = sshll.u32 %s252_s10, 3 }
  0x21   : > { %281 = vxpose.xlu0.b32.start [1/4] (short) (narrow) %v277_v0, 8  ;;  %v280_v3 = vld [vmem:[%s266_s14 + $0x18] sm:$0xff]  ;;  %s1615_s7 = sshll.u32 %s273_s11, 2  ;;  %p1623_p0 = scmp.ne.s32.totalorder %s1964_s18, 3 }
  0x22   : > { %s275_s14 = scalar_lea.vmem %s3185_s1, %s1615_s7  ;;  %s1999_s12 = smov (!%p1623_p0), 24  }
  0x25   : > { %282 = vxpose.xlu0.b32.cont [2/4] (short) (narrow) %v278_v1, 8  ;;  %v3222_v1 = vmov 0 }
  0x29   : > { %283 = vxpose.xlu0.b32.cont [3/4] (short) (narrow) %v279_v2, 8 }
  0x2d   : > { %284 = vxpose.xlu0.b32.end [4/4] (short) (narrow) %v280_v3, 8  ;;  %v3224_v3 = vmov 0 }
  0x56   : > { %1779 = vset.pattern.permute.xlu0 %v3196_v32 }
  0xa1   : > { %v2111_v4 = vpop.trf.xlu0 }
  0xa2   : > { %v332_v5 = vmul.f32 2.0, %v2111_v4  ;;  %v314_v6 = vsel %vm313_vm0, %v2111_v4, -inf  ;;  %v330_v7 = vmul.f32 4.0, %v2111_v4 }
  0xa3   : > { %315 = vmax.xlane.f32.xlu1 %v314_v6 }
  0xa4   : > { %v1617_v8 = vadd.f32 -0.5, %v332_v5  ;;  %v1616_v9 = vadd.f32 -0.5, %v330_v7 }
  0xa6   : > { %v335_v10 = vfloor.f32 %v1617_v8  ;;  %v334_v11 = vfloor.f32 %v1616_v9 }
  0xa8   : > { %v2116_v12 = vsub.f32 %v1617_v8, %v335_v10  ;;  %v1676_v13 = vtrunc.f32 %v335_v10  ;;  %v1674_v14 = vtrunc.f32 %v334_v11  ;;  %v336_v24 = vsub.f32 %v1616_v9, %v334_v11 }
  0xaa   : > { %v2118_v15 = vcvt.f32.s32 %v1676_v13  ;;  %851 = vrot.lane.b32.xlu0 %v2116_v12, %s1982_s23  ;;  %v1675_v16 = vcvt.f32.s32 %v1674_v14  ;;  %v2148_v21 = vsub.f32 1.0, %v2116_v12  ;;  %v344_v27 = vsub.f32 1.0, %v336_v24 }
  0xac   : > { %vm341_vm1 = vcmp.ge.s32.totalorder %v2118_v15, 0  ;;  %vm342_vm2 = vcmp.lt.s32.totalorder %v2118_v15, 2  ;;  %v388_v17 = vadd.s32 1, %v1675_v16  ;;  %v2125_v18 = vadd.s32 1, %v2118_v15 }
  0xad   : > { %vm2131_vm3 = vmand %vm341_vm1, %vm342_vm2  ;;  %v818_v25 = vsel %vm341_vm1, 1, %v1984_v22  ;;  %v823_v26 = vsel %vm342_vm2, 1, %v1984_v22  ;;  %vm350_vm9 = vcmp.ge.s32.totalorder %v1675_v16, 0  ;;  %vm356_vm10 = vcmp.lt.s32.totalorder %v1675_v16, 4 }
  0xae   : > { %870 = vrot.lane.b32.xlu0 %v2116_v12, %s1983_s24  ;;  %vm441_vm4 = vcmp.lt.s32.totalorder %v2125_v18, 2  ;;  %vm440_vm5 = vcmp.ge.s32.totalorder %v2125_v18, 0  ;;  %vm400_vm7 = vcmp.lt.s32.totalorder %v388_v17, 4  ;;  %vm394_vm8 = vcmp.ge.s32.totalorder %v388_v17, 0 }
  0xaf   : > { %vm2143_vm6 = vmand %vm440_vm5, %vm441_vm4  ;;  %v401_v23 = vsel %vm400_vm7, 1, %v1984_v22  ;;  %v395_v28 = vsel %vm394_vm8, 1, %v1984_v22  ;;  %v860_v29 = vsel %vm441_vm4, 1, %v1984_v22  ;;  %v855_v30 = vsel %vm440_vm5, 1, %v1984_v22 }
  0xb0   : > { %v351_v33 = vsel %vm350_vm9, 1, %v1984_v22  ;;  %v357_v34 = vsel %vm356_vm10, 1, %v1984_v22  ;;  %v380_v42 = vmul.u32 4, %v2118_v15  ;;  %v842_v52 = vmul.u32 2, %v2118_v15 }
  0xb1   : > { %v451_v9 = vmul.u32 4, %v2125_v18  ;;  %v906_v13 = vmul.u32 2, %v2125_v18 }
  0xb2   : > { %828 = vrot.lane.b32.xlu0 %v2148_v21, %s1982_s23 }
  0xb4   : > { %390 = vrot.lane.b32.xlu1 %v336_v24, %s1982_s23 }
  0xb6   : > { %819 = vrot.lane.b32.xlu0 %v818_v25, %s1983_s24 }
  0xb8   : > { %411 = vrot.lane.b32.xlu1 %v336_v24, %s1983_s24 }
  0xba   : > { %836 = vrot.lane.b32.xlu0 %v823_v26, %s1982_s23 }
  0xbc   : > { %346 = vrot.lane.b32.xlu1 %v344_v27, %s1983_s24 }
  0xbe   : > { %396 = vrot.lane.b32.xlu0 %v395_v28, %s1982_s23 }
  0xc0   : > { %362 = vrot.lane.b32.xlu1 %v344_v27, %s1982_s23 }
  0xc2   : > { %861 = vrot.lane.b32.xlu0 %v860_v29, %s1982_s23 }
  0xc4   : > { %381 = vrot.lane.b32.xlu1 %v1675_v16, %s1983_s24 }
  0xc6   : > { %874 = vrot.lane.b32.xlu0 %v855_v30, %s1983_s24 }
  0xc8   : > { %385 = vrot.lane.b32.xlu1 %v1675_v16, %s1982_s23 }
  0xcc   : > { %814 = vrot.lane.b32.xlu1 %v2148_v21, %s1983_s24 }
  0xd0   : > { %843 = vrot.lane.b32.xlu1 %v2118_v15, %s1983_s24 }
  0xd4   : > { %847 = vrot.lane.b32.xlu1 %v2118_v15, %s1982_s23 }
  0xd8   : > { %352 = vrot.lane.b32.xlu1 %v351_v33, %s1983_s24 }
  0xdc   : > { %358 = vrot.lane.b32.xlu1 %v357_v34, %s1983_s24 }
  0xe0   : > { %366 = vrot.lane.b32.xlu1 %v351_v33, %s1982_s23 }
  0xe4   : > { %370 = vrot.lane.b32.xlu1 %v357_v34, %s1982_s23 }
  0xe8   : > { %408 = vrot.lane.b32.xlu1 %v388_v17, %s1982_s23 }
  0xec   : > { %428 = vrot.lane.b32.xlu1 %v388_v17, %s1983_s24  ;;  %v3204_v17 = vmov 19  }
  0xf0   : > { %824 = vrot.lane.b32.xlu1 %v823_v26, %s1983_s24 }
  0xf4   : > { %832 = vrot.lane.b32.xlu1 %v818_v25, %s1982_s23  ;;  %v3230_v25 = vmov 0 }
  0xf8   : > { %867 = vrot.lane.b32.xlu1 %v2125_v18, %s1982_s23 }
  0xfc   : > { %887 = vrot.lane.b32.xlu1 %v2125_v18, %s1983_s24 }
 0x100   : > { %402 = vrot.lane.b32.xlu1 %v401_v23, %s1982_s23 }
 0x104   : > { %415 = vrot.lane.b32.xlu1 %v395_v28, %s1983_s24 }
 0x108   : > { %419 = vrot.lane.b32.xlu1 %v401_v23, %s1983_s24 }
 0x10c   : > { %856 = vrot.lane.b32.xlu1 %v855_v30, %s1982_s23  ;;  %v3232_v30 = vmov 0  ;;  %s1622_s23 = sshll.u32 %s1964_s18, 3 }
 0x110   : > { %878 = vrot.lane.b32.xlu1 %v860_v29, %s1983_s24  ;;  %s1367_s24 = scalar_lea.vmem [#allocation2], %s1622_s23 }
 0x11c   : > { %v2204_v39 = vpop.permute.xlu0 %851 }
 0x120   : > { %v2208_v41 = vpop.permute.xlu0 %870 }
 0x124   : > { %v2215_v47 = vpop.permute.xlu0 %828 }
 0x128   : > { %v820_v50 = vpop.permute.xlu0 %819 }
 0x129   : > { %vm821_vm5 = vcmp.ne.s32.totalorder %v820_v50, 0 }
 0x12a   : > { %vm822_vm7 = vmand %vm2131_vm3, %vm821_vm5 }
 0x12b   : > { %vm899_vm9 = vmand %vm2143_vm6, %vm821_vm5 }
 0x12c   : > { %v2231_v58 = vpop.permute.xlu0 %836 }
 0x130   : > { %v2196_v35 = vpop.xlane.xlu1 %315  ;;  %v2237_v61 = vpop.permute.xlu0 %396 }
 0x131   : > { %vm398_vm15 = vcmp.ne.s32.totalorder %v2237_v61, 0 }
 0x134   : > { %v2198_v36 = vpop.permute.xlu1 %390 }
 0x138   : > { %v2200_v37 = vpop.permute.xlu1 %411 }
 0x13c   : > { %v2202_v38 = vpop.permute.xlu1 %346 }
 0x140   : > { %v2206_v40 = vpop.permute.xlu1 %362 }
 0x144   : > { %v382_v43 = vpop.permute.xlu1 %381 }
 0x145   : > { %v383_v44 = vadd.s32 %v382_v43, %v380_v42  ;;  %v452_v10 = vadd.s32 %v451_v9, %v382_v43 }
 0x147   : > { %v384_v45 = vmul.u32 4, %v383_v44  ;;  %v453_v14 = vmul.u32 4, %v452_v10 }
 0x148   : > { %v2213_v46 = vpop.permute.xlu1 %385 }
 0x149   : > { %v2218_v48 = vadd.s32 %v2213_v46, %v384_v45  ;;  %v2312_v27 = vadd.s32 %v453_v14, %v2213_v46 }
 0x14b   : > { %492 = vperm.xlu1 %1770, %v2218_v48  }
 0x14c   : > { %v2221_v49 = vpop.permute.xlu1 %814 }
 0x14f   : > { %1771 = vset.pattern.permute.xlu1 %v3206_v51 }
 0x150   : > { %502 = vperm.xlu1 %1771, %v2218_v48   ;;  %v844_v53 = vpop.permute.xlu1 %843 }
 0x151   : > { %v845_v54 = vadd.s32 %v844_v53, %v842_v52  ;;  %v907_v23 = vadd.s32 %v906_v13, %v844_v53 }
 0x153   : > { %v846_v55 = vmul.u32 2, %v845_v54  ;;  %v908_v28 = vmul.u32 2, %v907_v23 }
 0x154   : > { %v2228_v56 = vpop.permute.xlu1 %847  ;;  %1772 = vset.pattern.permute.xlu1 %v3208_v57 }
 0x155   : > { %v2234_v59 = vadd.s32 %v2228_v56, %v846_v55  ;;  %v2331_v34 = vadd.s32 %v908_v28, %v2228_v56 }
 0x157   : > { %945 = vperm.xlu0 %1779, %v2234_v59  }
 0x158   : > { %v353_v60 = vpop.permute.xlu1 %352 }
 0x159   : > { %vm354_vm11 = vcmp.ne.s32.totalorder %v353_v60, 0 }
 0x15a   : > { %vm355_vm12 = vmand %vm2131_vm3, %vm354_vm11 }
 0x15b   : > { %vm444_vm13 = vmand %vm2143_vm6, %vm354_vm11 }
 0x15c   : > { %v359_v62 = vpop.permute.xlu1 %358 }
 0x15d   : > { %vm360_vm14 = vcmp.ne.s32.totalorder %v359_v62, 0  ;;  %v3236_v62 = vmov 0 }
 0x15e   : > { %vm2244_vm0 = vmand %vm355_vm12, %vm360_vm14 }
 0x15f   : > { %vm2252_vm1 = vmand %vm2244_vm0, %vm398_vm15 }
 0x160   : > { %vm2256_vm2 = vmand %vm444_vm13, %vm360_vm14  ;;  %v2260_v2 = vpop.permute.xlu1 %366  ;;  %vm3189_vm13 = vcmp.ne.s32.totalorder %v2231_v58, 0 }
 0x161   : > { %v3223_v1 = vsel %vm2256_vm2, 4294967295, %v3222_v1  ;;  %vm2266_vm4 = vmand %vm2256_vm2, %vm398_vm15 }
 0x162   : > { %v3225_v3 = vsel %vm2266_vm4, 4294967295, %v3224_v3 }
 0x164   : > { %v2270_v5 = vpop.permute.xlu1 %370 }
 0x168   : > { %v2272_v6 = vpop.permute.xlu1 %408 }
 0x169   : > { %v410_v7 = vadd.s32 %v2272_v6, %v384_v45  ;;  %v2343_v45 = vpop.permute.xlu0 %861  ;;  %v2366_v10 = vadd.s32 %v453_v14, %v2272_v6  ;;  %v3200_v14 = vmov 23  }
 0x16b   : > { %522 = vperm.xlu1 %1772, %v410_v7  }
 0x16c   : > { %v2275_v8 = vpop.permute.xlu1 %428 }
 0x16d   : > { %v469_v20 = vadd.s32 %v451_v9, %v2275_v8 }
 0x16f   : > { %1773 = vset.pattern.permute.xlu1 %v3202_v31 }
 0x170   : > { %533 = vperm.xlu1 %1773, %v410_v7   ;;  %v825_v11 = vpop.permute.xlu1 %824 }
 0x171   : > { %vm826_vm8 = vcmp.ne.s32.totalorder %v825_v11, 0 }
 0x172   : > { %vm2286_vm10 = vmand %vm822_vm7, %vm826_vm8 }
 0x173   : > { %vm2293_vm11 = vmand %vm899_vm9, %vm826_vm8 }
 0x174   : > { %1774 = vset.pattern.permute.xlu1 %v3204_v17  ;;  %v2291_v22 = vpop.permute.xlu1 %832 }
 0x175   : > { %vm3190_vm12 = vcmp.ne.s32.totalorder %v2291_v22, 0  ;;  %553 = vperm.xlu1 %1774, %v410_v7  }
 0x176   : > { %vm835_vm14 = vmand %vm2286_vm10, %vm3190_vm12 }
 0x177   : > { %vm2305_vm5 = vmand %vm835_vm14, %vm3189_vm13 }
 0x178   : > { %v3231_v25 = vsel %vm2305_vm5, 4294967295, %v3230_v25  ;;  %v2309_v26 = vpop.permute.xlu1 %867  ;;  %vm902_vm7 = vmand %vm2293_vm11, %vm3190_vm12 }
 0x179   : > { %1775 = vset.pattern.permute.xlu1 %v3208_v57  ;;  %v2320_v29 = vadd.s32 %v2309_v26, %v846_v55  ;;  %vm2324_vm8 = vmand %vm902_vm7, %vm3189_vm13  ;;  %v2339_v44 = vadd.s32 %v908_v28, %v2309_v26  ;;  %v3194_v55 = vmov 20  }
 0x17a   : > { %v3233_v30 = vsel %vm2324_vm8, 4294967295, %v3232_v30  ;;  %645 = vperm.xlu1 %1775, %v2312_v27  }
 0x17b   : > { %986 = vperm.xlu0 %1779, %v2320_v29  }
 0x17c   : > { %v888_v33 = vpop.permute.xlu1 %887 }
 0x17d   : > { %v2348_v53 = vadd.s32 %v888_v33, %v842_v52  ;;  %v875_v52 = vpop.permute.xlu0 %874 }
 0x17e   : > { %1776 = vset.pattern.permute.xlu1 %v3206_v51 }
 0x17f   : > { %666 = vperm.xlu1 %1776, %v2312_v27   ;;  %1109 = vperm.xlu0 %1779, %v2331_v34   ;;  %v890_v11 = vmul.u32 2, %v2348_v53 }
 0x180   : > { %v2336_v43 = vpop.permute.xlu1 %402 }
 0x183   : > { %1777 = vset.pattern.permute.xlu1 %v3204_v17  ;;  %1150 = vperm.xlu0 %1779, %v2339_v44  }
 0x184   : > { %676 = vperm.xlu1 %1777, %v2312_v27   ;;  %v416_v50 = vpop.permute.xlu1 %415 }
 0x185   : > { %vm417_vm9 = vcmp.ne.s32.totalorder %v416_v50, 0  ;;  %v2392_v50 = vadd.s32 %v890_v11, %v2228_v56 }
 0x186   : > { %vm2352_vm14 = vmand %vm2143_vm6, %vm417_vm9 }
 0x187   : > { %1798 = vset.pattern.permute.xlu0 %v3206_v51  ;;  %vm418_vm7 = vmand %vm2131_vm3, %vm417_vm9  ;;  %vm876_vm9 = vcmp.ne.s32.totalorder %v875_v52, 0 }
 0x188   : > { %1778 = vset.pattern.permute.xlu1 %v3194_v55  ;;  %543 = vperm.xlu0 %1798, %v410_v7   ;;  %v420_v60 = vpop.permute.xlu1 %419  ;;  %v3238_v7 = vmov 0 }
 0x189   : > { %vm421_vm13 = vcmp.ne.s32.totalorder %v420_v60, 0  ;;  %934 = vperm.xlu1 %1778, %v2234_v59   ;;  %v2394_v60 = vadd.s32 %v906_v13, %v888_v33 }
 0x18a   : > { %vm2361_vm12 = vmand %vm418_vm7, %vm421_vm13  ;;  %vm3191_vm7 = vcmp.ne.s32.totalorder %v2260_v2, 0 }
 0x18b   : > { %v3237_v62 = vsel %vm2361_vm12, 4294967295, %v3236_v62  ;;  %vm2373_vm4 = vmand %vm2361_vm12, %vm398_vm15  ;;  %v925_v61 = vmul.u32 2, %v2394_v60 }
 0x18c   : > { %v3239_v7 = vsel %vm2373_vm4, 4294967295, %v3238_v7  ;;  %707 = vperm.xlu0 %1798, %v2366_v10   ;;  %v857_v23 = vpop.permute.xlu1 %856  ;;  %vm463_vm8 = vmand %vm2352_vm14, %vm421_vm13 }
 0x18d   : > { %1780 = vset.pattern.permute.xlu1 %v3200_v14  ;;  %vm2384_vm5 = vmand %vm463_vm8, %vm3191_vm7  ;;  %v2432_v33 = vadd.s32 %v925_v61, %v2228_v56 }
 0x18e   : > { %965 = vperm.xlu1 %1780, %v2234_v59   ;;  %vm2398_vm13 = vmand %vm463_vm8, %vm398_vm15  ;;  %vm858_vm15 = vcmp.ne.s32.totalorder %v857_v23, 0  ;;  %vm3244_vm8 = vcmp.ne.s32.totalorder %v2291_v22, 0  ;;  %v430_v22 = vadd.s32 %v2275_v8, %v380_v42  ;;  %v3259_v42 = vmov 0 }
 0x18f   : > { %vm877_vm14 = vmand %vm2131_vm3, %vm876_vm9 }
 0x190   : > { %1799 = vset.pattern.permute.xlu0 %v3194_v55  ;;  %v879_v52 = vpop.permute.xlu1 %878  ;;  %vm917_vm7 = vmand %vm2143_vm6, %vm876_vm9  ;;  %v431_v16 = vmul.u32 4, %v430_v22 }
 0x191   : > { %vm880_vm2 = vcmp.ne.s32.totalorder %v879_v52, 0  ;;  %1016 = vperm.xlu0 %1799, %v2392_v50   ;;  %vm3249_vm9 = vmmov %vm3244_vm8  ;;  %v470_v52 = vmul.u32 4, %v469_v20 }
 0x192   : > { %vm881_vm4 = vmand %vm877_vm14, %vm880_vm2  ;;  %1781 = vset.pattern.permute.xlu1 %v3194_v55  ;;  %v3198_v55 = vmov 22   ;;  %v2502_v23 = vadd.s32 %v431_v16, %v2213_v46  ;;  %v2531_v54 = vadd.s32 %v431_v16, %v2272_v6 }
 0x193   : > { %vm2412_vm12 = vmand %vm881_vm4, %vm3244_vm8  ;;  %975 = vperm.xlu1 %1781, %v2320_v29  }
 0x194   : > { %vm2418_vm3 = vmand %vm881_vm4, %vm858_vm15 }
 0x195   : > { %vm918_vm6 = vmand %vm917_vm7, %vm880_vm2  ;;  %1139 = vperm.xlu0 %1799, %v2339_v44   ;;  %vm863_vm2 = vcmp.ne.s32.totalorder %v2343_v45, 0  ;;  %v317_v45 = vsub.f32 %v2111_v4, %v2196_v35  ;;  %v2542_v4 = vadd.s32 %v470_v52, %v2272_v6  ;;  %v897_v35 = vadd.s32 %v890_v11, %v2309_v26 }
 0x196   : > { %vm2425_vm14 = vmand %vm918_vm6, %vm3249_vm9  ;;  %v932_v6 = vadd.s32 %v925_v61, %v2309_v26  ;;  %v471_v11 = vadd.s32 %v470_v52, %v2213_v46 }
 0x197   : > { %vm2435_vm8 = vmand %vm918_vm6, %vm858_vm15  ;;  %1782 = vset.pattern.permute.xlu1 %v3198_v55  ;;  %vm3256_vm6 = vcmp.ne.s32.totalorder %v2231_v58, 0  ;;  %v318_v13 = vmul.f32 1.442695, %v317_v45 }
 0x198   : > { %996 = vperm.xlu1 %1782, %v2320_v29   ;;  %vm859_vm4 = vmand %vm2286_vm10, %vm858_vm15 }
 0x199   : > { %1180 = vperm.xlu0 %1799, %v2432_v33   ;;  %vm2451_vm7 = vmand %vm859_vm4, %vm863_vm2  ;;  %1882 = vpow2.f32 %v318_v13 }
 0x19a   : > { %vm2459_vm9 = vmand %vm2412_vm12, %vm3256_vm6 }
 0x19b   : > { %vm2467_vm10 = vmand %vm2418_vm3, %vm863_vm2  ;;  %vm372_vm3 = vcmp.ne.s32.totalorder %v2270_v5, 0  ;;  %v3320_v5 = vmov 23  }
 0x19c   : > { %v3260_v42 = vsel %vm2467_vm10, 4294967295, %v3259_v42  ;;  %1783 = vset.pattern.permute.xlu1 %v3200_v14  ;;  %vm911_vm4 = vmand %vm2293_vm11, %vm858_vm15  ;;  %vm404_vm15 = vcmp.ne.s32.totalorder %v2336_v43, 0  ;;  %v461_v43 = vmul.f32 %v2200_v37, %v2116_v12 }
 0x19d   : > { %1006 = vperm.xlu1 %1783, %v2320_v29   ;;  %1804 = vset.pattern.permute.xlu0 %v3200_v14  ;;  %vm2479_vm12 = vmand %vm911_vm4, %vm863_vm2 }
 0x19e   : > { %1047 = vperm.xlu0 %1804, %v2392_v50   ;;  %vm2489_vm10 = vmand %vm2425_vm14, %vm3256_vm6  ;;  %v472_v24 = vmul.f32 %v461_v43, %v2198_v36 }
 0x19f   : > { %vm2497_vm11 = vmand %vm2384_vm5, %vm372_vm3 }
 0x1a0   : > { %vm2509_vm14 = vmand %vm2435_vm8, %vm863_vm2  ;;  %vm3311_vm2 = vcmp.ne.s32.totalorder %v2260_v2, 0 }
 0x1a1   : > { %1784 = vset.pattern.permute.xlu1 %v3208_v57  ;;  %vm2518_vm5 = vmand %vm2398_vm13, %vm404_vm15  ;;  %vm3211_vm13 = vcmask 64512  }
 0x1a2   : > { %563 = vperm.xlu1 %1784, %v2502_v23   ;;  %1211 = vperm.xlu0 %1804, %v2432_v33   ;;  %vm369_vm4 = vmand %vm2244_vm0, %vm3311_vm2 }
 0x1a3   : > { %v2550_v18 = vpop.eup %1882  ;;  %vm373_vm6 = vmand %vm369_vm4, %vm372_vm3  ;;  %vm3318_vm4 = vnez %v3239_v7 }
 0x1a4   : > { %vm3315_vm0 = vmmov %vm3311_vm2 }
 0x1a6   : > { %1785 = vset.pattern.permute.xlu1 %v3206_v51  ;;  %1809 = vset.pattern.permute.xlu0 %v3208_v57 }
 0x1a7   : > { %584 = vperm.xlu1 %1785, %v2502_v23   ;;  %481 = vperm.xlu0 %1809, %v2218_v48  }
 0x1ab   : > { %1786 = vset.pattern.permute.xlu1 %v3204_v17  ;;  %604 = vperm.xlu0 %1809, %v2531_v54  }
 0x1ac   : > { %594 = vperm.xlu1 %1786, %v2502_v23  }
 0x1af   : > { %686 = vperm.xlu0 %1809, %v2366_v10  }
 0x1b0   : > { %1787 = vset.pattern.permute.xlu1 %v3202_v31 }
 0x1b1   : > { %615 = vperm.xlu1 %1787, %v2531_v54  }
 0x1b3   : > { %768 = vperm.xlu0 %1809, %v2542_v4  }
 0x1b5   : > { %1788 = vset.pattern.permute.xlu1 %v3206_v51 }
 0x1b6   : > { %625 = vperm.xlu1 %1788, %v2531_v54  }
 0x1b7   : > { %1810 = vset.pattern.permute.xlu0 %v3198_v55 }
 0x1b8   : > { %955 = vperm.xlu0 %1810, %v2234_v59   ;;  %v3271_v59 = vmov 20  }
 0x1ba   : > { %321 = vrot.lane.b32.xlu1 %v2550_v18, %s1993_s29  ;;  %s254_s29 = scalar_lea.vmem [#allocation3], %s3020_s6 }
 0x1bb   : > { %1789 = vset.pattern.permute.xlu1 %v3196_v32 }
 0x1bc   : > { %1078 = vperm.xlu0 %1810, %v897_v35  }
 0x1be   : > { %1027 = vperm.xlu1 %1789, %v2392_v50  }
 0x1c0   : > { %1242 = vperm.xlu0 %1810, %v932_v6  }
 0x1c2   : > { %1790 = vset.pattern.permute.xlu1 %v3198_v55 }
 0x1c3   : > { %1037 = vperm.xlu1 %1790, %v2392_v50  }
 0x1c4   : > { %1815 = vset.pattern.permute.xlu0 %v3204_v17 }
 0x1c7   : > { %1791 = vset.pattern.permute.xlu1 %v3271_v59 }
 0x1c8   : > { %1057 = vperm.xlu1 %1791, %v897_v35  }
 0x1ca   : > { %v2571_v8 = vpop.permute.xlu1 %492 }
 0x1cc   : > { %1792 = vset.pattern.permute.xlu1 %v3196_v32 }
 0x1cd   : > { %1068 = vperm.xlu1 %1792, %v897_v35  }
 0x1cf   : > { %v2576_v9 = vpop.permute.xlu1 %502 }
 0x1d1   : > { %1793 = vset.pattern.permute.xlu1 %v3200_v14 }
 0x1d2   : > { %1088 = vperm.xlu1 %1793, %v897_v35  }
 0x1d6   : > { %1794 = vset.pattern.permute.xlu1 %v3271_v59 }
 0x1d7   : > { %1098 = vperm.xlu1 %1794, %v2331_v34  }
 0x1db   : > { %1795 = vset.pattern.permute.xlu1 %v3198_v55 }
 0x1dc   : > { %1119 = vperm.xlu1 %1795, %v2331_v34  }
 0x1e0   : > { %1796 = vset.pattern.permute.xlu1 %v3200_v14 }
 0x1e1   : > { %1129 = vperm.xlu1 %1796, %v2331_v34  }
 0x1e5   : > { %1797 = vset.pattern.permute.xlu1 %v3202_v31 }
 0x1e6   : > { %697 = vperm.xlu1 %1797, %v2366_v10  }
 0x1ea   : > { %1800 = vset.pattern.permute.xlu1 %v3198_v55  ;;  %v2580_v26 = vpop.permute.xlu1 %522 }
 0x1eb   : > { %1160 = vperm.xlu1 %1800, %v2339_v44  }
 0x1ef   : > { %1801 = vset.pattern.permute.xlu1 %v3204_v17  ;;  %v2584_v53 = vpop.permute.xlu1 %533 }
 0x1f0   : > { %717 = vperm.xlu1 %1801, %v2366_v10  }
 0x1f4   : > { %1802 = vset.pattern.permute.xlu1 %v3200_v14  ;;  %v2588_v34 = vpop.permute.xlu1 %553 }
 0x1f5   : > { %1170 = vperm.xlu1 %1802, %v2339_v44  }
 0x1f9   : > { %1803 = vset.pattern.permute.xlu1 %v3208_v57  ;;  %v2593_v50 = vpop.permute.xlu1 %645 }
 0x1fa   : > { %727 = vperm.xlu1 %1803, %v471_v11  }
 0x1fe   : > { %1805 = vset.pattern.permute.xlu1 %v3196_v32  ;;  %v2596_v60 = vpop.permute.xlu1 %666 }
 0x1ff   : > { %1191 = vperm.xlu1 %1805, %v2432_v33  }
 0x203   : > { %1806 = vset.pattern.permute.xlu1 %v3206_v51  ;;  %v2600_v10 = vpop.permute.xlu1 %676 }
 0x204   : > { %748 = vperm.xlu1 %1806, %v471_v11  }
 0x208   : > { %1807 = vset.pattern.permute.xlu1 %v3198_v55  ;;  %v2603_v44 = vpop.permute.xlu1 %934 }
 0x209   : > { %1201 = vperm.xlu1 %1807, %v2432_v33  }
 0x20d   : > { %1808 = vset.pattern.permute.xlu1 %v3204_v17  ;;  %v2607_v46 = vpop.permute.xlu1 %965 }
 0x20e   : > { %3272 = vst [vmem:[#allocation6_spill] sm:$0xff] %v2607_v46  ;;  %758 = vperm.xlu1 %1808, %v471_v11  }
 0x212   : > { %1811 = vset.pattern.permute.xlu1 %v3271_v59  ;;  %v2610_v61 = vpop.permute.xlu1 %975 }
 0x213   : > { %3273 = vst [vmem:[#allocation7_spill] sm:$0xff] %v2610_v61  ;;  %1221 = vperm.xlu1 %1811, %v932_v6  }
 0x217   : > { %1812 = vset.pattern.permute.xlu1 %v3202_v31  ;;  %v2613_v22 = vpop.permute.xlu1 %996 }
 0x218   : > { %3274 = vst [vmem:[#allocation8_spill] sm:$0xff] %v2613_v22  ;;  %779 = vperm.xlu1 %1812, %v2542_v4   ;;  %v478_v22 = vlaneseq }
 0x21c   : > { %1813 = vset.pattern.permute.xlu1 %v3196_v32  ;;  %v2617_v16 = vpop.permute.xlu1 %1006 }
 0x21d   : > { %3275 = vst [vmem:[#allocation9_spill] sm:$0xff] %v2617_v16  ;;  %1232 = vperm.xlu1 %1813, %v932_v6  }
 0x221   : > { %1814 = vset.pattern.permute.xlu1 %v3206_v51  ;;  %v2620_v33 = vpop.permute.xlu1 %563 }
 0x222   : > { %789 = vperm.xlu1 %1814, %v2542_v4  }
 0x226   : > { %1817 = vset.pattern.permute.xlu1 %v3200_v14  ;;  %v2624_v45 = vpop.permute.xlu1 %584 }
 0x227   : > { %1252 = vperm.xlu1 %1817, %v932_v6   ;;  %v2639_v6 = vpop.permute.xlu0 %945 }
 0x22b   : > { %v2626_v20 = vpop.permute.xlu1 %594  ;;  %1818 = vset.pattern.permute.xlu1 %v3208_v57  ;;  %v2642_v55 = vpop.permute.xlu0 %986 }
 0x22c   : > { %3276 = vst [vmem:[#allocation10_spill] sm:$0xff] %v2642_v55 }
 0x22f   : > { %v2644_v14 = vpop.permute.xlu0 %1109 }
 0x230   : > { %v2629_v13 = vpop.permute.xlu1 %615  ;;  %3277 = vst [vmem:[#allocation11_spill] sm:$0xff] %v2644_v14 }
 0x235   : > { %v2631_v52 = vpop.permute.xlu1 %625 }
 0x239   : > { %v322_v35 = vpop.permute.xlu1 %321 }
 0x23a   : > { %v325_v32 = vsel %vm3211_vm13, %v322_v35, 0.0  ;;  %vm405_vm13 = vmand %vm2252_vm1, %vm404_vm15  ;;  %vm3316_vm1 = vnez %v3237_v62  ;;  %v443_v62 = vmul.f32 %v2202_v38, %v2116_v12 }
 0x23b   : > { %326 = vadd.xlane.f32.xlu0 %v325_v32  ;;  %v2646_v32 = vpop.permute.xlu0 %1150  ;;  %vm424_vm2 = vmand %vm3316_vm1, %vm3315_vm0  ;;  %vm3319_vm1 = vnez %v3223_v1 }
 0x23c   : > { %3278 = vst [vmem:[#allocation12_spill] sm:$0xff] %v2646_v32 }
 0x251   : > { %512 = vperm.xlu0 %1815, %v2218_v48   ;;  %v2648_v48 = vpop.permute.xlu0 %543 }
 0x255   : > { %635 = vperm.xlu0 %1815, %v2531_v54   ;;  %v2650_v54 = vpop.permute.xlu0 %707 }
 0x256   : > { %3279 = vst [vmem:[#allocation13_spill] sm:$0xff] %v2650_v54 }
 0x259   : > { %799 = vperm.xlu0 %1815, %v2542_v4   ;;  %v2652_v4 = vpop.permute.xlu0 %1016 }
 0x25a   : > { %3280 = vst [vmem:[#allocation14_spill] sm:$0xff] %v2652_v4 }
 0x25d   : > { %1816 = vset.pattern.permute.xlu0 %v3202_v31  ;;  %v2654_v35 = vpop.permute.xlu0 %1139 }
 0x25e   : > { %574 = vperm.xlu0 %1816, %v2502_v23   ;;  %3281 = vst [vmem:[#allocation15_spill] sm:$0xff] %v2654_v35  ;;  %v2676_v35 = vpop.permute.xlu1 %1027 }
 0x25f   : > { %3288 = vst [vmem:[#allocation22_spill] sm:$0xff] %v2676_v35 }
 0x261   : > { %v2656_v23 = vpop.permute.xlu0 %1180 }
 0x262   : > { %656 = vperm.xlu0 %1816, %v2312_v27   ;;  %3282 = vst [vmem:[#allocation16_spill] sm:$0xff] %v2656_v23 }
 0x265   : > { %v2658_v31 = vpop.permute.xlu0 %1047 }
 0x266   : > { %738 = vperm.xlu0 %1816, %v471_v11   ;;  %3283 = vst [vmem:[#allocation17_spill] sm:$0xff] %v2658_v31  ;;  %v2678_v31 = vpop.permute.xlu1 %1037 }
 0x267   : > { %3289 = vst [vmem:[#allocation23_spill] sm:$0xff] %v2678_v31 }
 0x269   : > { %v2660_v27 = vpop.permute.xlu0 %1211 }
 0x26a   : > { %3284 = vst [vmem:[#allocation18_spill] sm:$0xff] %v2660_v27  ;;  %v2682_v4 = vpop.permute.xlu1 %1057 }
 0x26b   : > { %3290 = vst [vmem:[#allocation24_spill] sm:$0xff] %v2682_v4 }
 0x26d   : > { %v2662_v17 = vpop.permute.xlu0 %481 }
 0x271   : > { %v2664_v11 = vpop.permute.xlu0 %604 }
 0x275   : > { %v2666_v51 = vpop.permute.xlu0 %686 }
 0x279   : > { %v2668_v57 = vpop.permute.xlu0 %768 }
 0x27a   : > { %3285 = vst [vmem:[#allocation19_spill] sm:$0xff] %v2668_v57 }
 0x27d   : > { %v2670_v32 = vpop.permute.xlu0 %955 }
 0x281   : > { %v2672_v54 = vpop.permute.xlu0 %1078 }
 0x282   : > { %3286 = vst [vmem:[#allocation20_spill] sm:$0xff] %v2672_v54  ;;  %v2687_v54 = vand.u32 127, %v478_v22 }
 0x285   : > { %v2674_v14 = vpop.permute.xlu0 %1242 }
 0x286   : > { %3287 = vst [vmem:[#allocation21_spill] sm:$0xff] %v2674_v14  ;;  %v2689_v14 = vpop.permute.xlu1 %1068 }
 0x287   : > { %3291 = vst [vmem:[#allocation25_spill] sm:$0xff] %v2689_v14 }
 0x2c8   : > { %v327_v23 = vpop.xlane.xlu0 %326 }
 0x2c9   : > { %1884 = vrcp.f32 %v327_v23  ;;  %v2695_v23 = vpop.permute.xlu1 %1088 }
 0x2ca   : > { %3293 = vst [vmem:[#allocation27_spill] sm:$0xff] %v2695_v23 }
 0x2cd   : > { %v2697_v4 = vpop.permute.xlu1 %1098 }
 0x2ce   : > { %3294 = vst [vmem:[#allocation28_spill] sm:$0xff] %v2697_v4 }
 0x2d0   : > { %v2680_v27 = vpop.permute.xlu0 %512 }
 0x2d1   : > { %v2699_v31 = vpop.permute.xlu1 %1119 }
 0x2d2   : > { %3295 = vst [vmem:[#allocation29_spill] sm:$0xff] %v2699_v31 }
 0x2d3   : > { %v1885_v16 = vpop.eup %1884 }
 0x2d4   : > { %v2684_v55 = vpop.permute.xlu0 %635  ;;  %v329_v57 = vmul.f32 %v1885_v16, %v2550_v18 }
 0x2d5   : > { %v2701_v61 = vpop.permute.xlu1 %1129 }
 0x2d6   : > { %375 = vrot.lane.b32.xlu1 %v329_v57, %s1994_s30  ;;  %3296 = vst [vmem:[#allocation30_spill] sm:$0xff] %v2701_v61  ;;  %s1997_s30 = smov (!%p1623_p0), 8  }
 0x2d8   : > { %v2691_v35 = vpop.permute.xlu0 %799 }
 0x2d9   : > { %3292 = vst [vmem:[#allocation26_spill] sm:$0xff] %v2691_v35  ;;  %vm801_vm8 = vcmp.eq.s32.totalorder %v2691_v35, %v2687_v54  ;;  %v2703_v18 = vpop.permute.xlu1 %697 }
 0x2da   : > { %3297 = vst [vmem:[#allocation31_spill] sm:$0xff] %v2703_v18 }
 0x2dd   : > { %v2705_v57 = vpop.permute.xlu1 %1160 }
 0x2de   : > { %3298 = vst [vmem:[#allocation32_spill] sm:$0xff] %v2705_v57 }
 0x2e1   : > { %v2707_v22 = vpop.permute.xlu1 %717 }
 0x2e2   : > { %3299 = vst [vmem:[#allocation33_spill] sm:$0xff] %v2707_v22 }
 0x2e5   : > { %v2709_v16 = vpop.permute.xlu1 %1170 }
 0x2e6   : > { %3300 = vst [vmem:[#allocation34_spill] sm:$0xff] %v2709_v16 }
 0x2e9   : > { %v2711_v14 = vpop.permute.xlu1 %727 }
 0x2ea   : > { %3301 = vst [vmem:[#allocation35_spill] sm:$0xff] %v2711_v14  ;;  %v349_v14 = vmul.f32 %v2202_v38, %v2148_v21  ;;  %v817_v38 = vmul.f32 %v2221_v49, %v2148_v21 }
 0x2ec   : > { %v854_v2 = vmul.f32 %v2204_v39, %v817_v38 }
 0x2ed   : > { %v2713_v46 = vpop.permute.xlu1 %1191 }
 0x2ee   : > { %3302 = vst [vmem:[#allocation36_spill] sm:$0xff] %v2713_v46  ;;  %v365_v46 = vmul.f32 %v2206_v40, %v349_v14 }
 0x2f1   : > { %v2715_v35 = vpop.permute.xlu1 %748 }
 0x2f2   : > { %3303 = vst [vmem:[#allocation37_spill] sm:$0xff] %v2715_v35 }
 0x2f5   : > { %v2717_v23 = vpop.permute.xlu1 %1201 }
 0x2f6   : > { %3304 = vst [vmem:[#allocation38_spill] sm:$0xff] %v2717_v23 }
 0x2f9   : > { %v2719_v4 = vpop.permute.xlu1 %758 }
 0x2fa   : > { %3305 = vst [vmem:[#allocation39_spill] sm:$0xff] %v2719_v4  ;;  %v3314_v4 = vmov 19  }
 0x2fd   : > { %v2721_v31 = vpop.permute.xlu1 %1221 }
 0x2fe   : > { %3306 = vst [vmem:[#allocation40_spill] sm:$0xff] %v2721_v31 }
 0x301   : > { %v2723_v61 = vpop.permute.xlu1 %779 }
 0x302   : > { %3307 = vst [vmem:[#allocation41_spill] sm:$0xff] %v2723_v61  ;;  %v3312_v61 = vmov 16  }
 0x305   : > { %v2725_v18 = vpop.permute.xlu1 %1232 }
 0x306   : > { %3308 = vst [vmem:[#allocation42_spill] sm:$0xff] %v2725_v18  ;;  %v393_v18 = vmul.f32 %v2198_v36, %v349_v14  ;;  %v414_v14 = vmul.f32 %v2200_v37, %v2148_v21 }
 0x309   : > { %v2727_v57 = vpop.permute.xlu1 %789 }
 0x30a   : > { %3309 = vst [vmem:[#allocation43_spill] sm:$0xff] %v2727_v57 }
 0x30d   : > { %v2729_v22 = vpop.permute.xlu1 %1252 }
 0x30e   : > { %3310 = vst [vmem:[#allocation44_spill] sm:$0xff] %v2729_v22 }
 0x348   : > { %v2734_v35 = vpop.permute.xlu1 %375 }
 0x349   : > { %v378_v31 = vmul.f32 %v2734_v35, %v365_v46  ;;  %v406_v57 = vmul.f32 %v393_v18, %v2734_v35  ;;  %v433_v18 = vmul.f32 %v414_v14, %v2198_v36  ;;  %v475_v29 = vmul.f32 %v472_v24, %v2734_v35 }
 0x34b   : > { %v379_v22 = vsel %vm373_vm6, %v378_v31, 0.0  ;;  %v407_v46 = vsel %vm405_vm13, %v406_v57, 0.0  ;;  %v423_v31 = vmul.f32 %v414_v14, %v2206_v40  ;;  %vm425_vm13 = vmand %vm424_vm2, %vm372_vm3  ;;  %v3317_v57 = vmov 17  }
 0x34c   : > { %496 = vperm.xlu0 %1816, %v379_v22   ;;  %486 = vperm.xlu1 %1818, %v379_v22   ;;  %v436_v16 = vmul.f32 %v433_v18, %v2734_v35  ;;  %vm435_vm6 = vmand %vm3318_vm4, %vm404_vm15  ;;  %v873_v18 = vmul.f32 %v2208_v41, %v2148_v21  ;;  %v3323_v21 = vmov 21   ;;  %vm3326_vm4 = vnez %v3225_v3 }
 0x34d   : > { %v426_v0 = vmul.f32 %v423_v31, %v2734_v35  ;;  %vm447_vm2 = vmand %vm3319_vm1, %vm3315_vm0  ;;  %vm545_vm0 = vcmp.eq.s32.totalorder %v2648_v48, %v2687_v54  ;;  %vm555_vm1 = vcmp.eq.s32.totalorder %v2588_v34, %v2687_v54 }
 0x34e   : > { %v437_v14 = vsel %vm435_vm6, %v436_v16, 0.0  ;;  %v831_v16 = vmul.f32 %v2215_v47, %v817_v38  ;;  %vm457_vm6 = vmand %vm3326_vm4, %vm404_vm15  ;;  %vm514_vm15 = vcmp.eq.s32.totalorder %v2680_v27, %v2687_v54  ;;  %vm617_vm4 = vcmp.eq.s32.totalorder %v2629_v13, %v2687_v54 }
 0x34f   : > { %v427_v23 = vsel %vm425_vm13, %v426_v0, 0.0  ;;  %vm448_vm13 = vmand %vm447_vm2, %vm372_vm3  ;;  %vm3321_vm3 = vnez %v3231_v25  ;;  %v865_v0 = vmul.f32 %v854_v2, %v2734_v35  ;;  %vm565_vm2 = vcmp.eq.s32.totalorder %v2620_v33, %v2687_v54 }
 0x350   : > { %1821 = vset.pattern.permute.xlu0 %v3312_v61  ;;  %1819 = vset.pattern.permute.xlu1 %v3313_v63  ;;  %v840_v1 = vmul.f32 %v831_v16, %v2734_v35 }
 0x351   : > { %506 = vperm.xlu1 %1819, %v379_v22   ;;  %527 = vperm.xlu0 %1821, %v407_v46   ;;  %v2807_v38 = vsel %vm2451_vm7, %v865_v0, 0.0  ;;  %vm3324_vm7 = vnez %v3260_v42  ;;  %v455_v42 = vmul.f32 %v443_v62, %v2198_v36  ;;  %v575_v36 = vpop.permute.xlu0 %574 }
 0x355   : > { %1820 = vset.pattern.permute.xlu1 %v3314_v4  ;;  %1824 = vset.pattern.permute.xlu0 %v3314_v4  ;;  %v2918_v58 = vpop.permute.xlu0 %656 }
 0x356   : > { %516 = vperm.xlu1 %1820, %v379_v22   ;;  %557 = vperm.xlu0 %1824, %v407_v46   ;;  %v446_v22 = vmul.f32 %v443_v62, %v2206_v40  ;;  %v916_v62 = vmul.f32 %v2208_v41, %v2116_v12 }
 0x358   : > { %v449_v31 = vmul.f32 %v446_v22, %v2734_v35  ;;  %v882_v22 = vmul.f32 %v873_v18, %v2215_v47  ;;  %v919_v19 = vmul.f32 %v916_v62, %v2215_v47 }
 0x359   : > { %v2922_v28 = vpop.permute.xlu0 %738 }
 0x35a   : > { %1822 = vset.pattern.permute.xlu1 %v3317_v57  ;;  %1827 = vset.pattern.permute.xlu0 %v3313_v63  ;;  %v450_v7 = vsel %vm448_vm13, %v449_v31, 0.0  ;;  %v3322_v31 = vmov 22   ;;  %v885_v25 = vmul.f32 %v882_v22, %v2734_v35  ;;  %v458_v22 = vmul.f32 %v455_v42, %v2734_v35 }
 0x35b   : > { %537 = vperm.xlu1 %1822, %v407_v46   ;;  %588 = vperm.xlu0 %1827, %v427_v23   ;;  %v922_v3 = vmul.f32 %v919_v19, %v2734_v35  ;;  %vm576_vm13 = vcmp.eq.s32.totalorder %v575_v36, %v2687_v54 }
 0x35c   : > { %v2816_v16 = vsel %vm2459_vm9, %v885_v25, 0.0  ;;  %vm3325_vm9 = vnez %v3233_v30  ;;  %v2855_v30 = vsel %vm457_vm6, %v458_v22, 0.0  ;;  %vm627_vm6 = vcmp.eq.s32.totalorder %v2631_v52, %v2687_v54 }
 0x35d   : > { %v2872_v41 = vsel %vm2489_vm10, %v922_v3, 0.0  ;;  %vm483_vm10 = vcmp.eq.s32.totalorder %v2662_v17, %v2687_v54 }
 0x35f   : > { %1823 = vset.pattern.permute.xlu1 %v3313_v63  ;;  %1830 = vset.pattern.permute.xlu0 %v3317_v57 }
 0x360   : > { %547 = vperm.xlu1 %1823, %v407_v46   ;;  %619 = vperm.xlu0 %1830, %v437_v14   ;;  %v2796_v46 = vsel %vm3321_vm3, %v840_v1, 0.0  ;;  %v898_v1 = vmul.f32 %v2221_v49, %v2116_v12  ;;  %v927_v12 = vmul.f32 %v916_v62, %v2204_v39  ;;  %vm586_vm3 = vcmp.eq.s32.totalorder %v2624_v45, %v2687_v54 }
 0x362   : > { %v901_v15 = vmul.f32 %v898_v1, %v2215_v47  ;;  %v910_v0 = vmul.f32 %v898_v1, %v2204_v39 }
 0x364   : > { %1825 = vset.pattern.permute.xlu1 %v3312_v61  ;;  %1833 = vset.pattern.permute.xlu0 %v3312_v61  ;;  %v904_v49 = vmul.f32 %v901_v15, %v2734_v35 }
 0x365   : > { %568 = vperm.xlu1 %1825, %v427_v23   ;;  %650 = vperm.xlu0 %1833, %v450_v7  }
 0x369   : > { %1826 = vset.pattern.permute.xlu1 %v3317_v57  ;;  %1835 = vset.pattern.permute.xlu0 %v3313_v63 }
 0x36a   : > { %578 = vperm.xlu1 %1826, %v427_v23   ;;  %670 = vperm.xlu0 %1835, %v450_v7  }
 0x36e   : > { %1828 = vset.pattern.permute.xlu1 %v3314_v4  ;;  %1841 = vset.pattern.permute.xlu0 %v3320_v5 }
 0x36f   : > { %598 = vperm.xlu1 %1828, %v427_v23   ;;  %969 = vperm.xlu0 %1841, %v2796_v46   ;;  %v892_v23 = vmul.f32 %v873_v18, %v2204_v39  ;;  %v913_v18 = vmul.f32 %v910_v0, %v2734_v35 }
 0x371   : > { %v895_v56 = vmul.f32 %v892_v23, %v2734_v35  ;;  %v2847_v25 = vsel %vm2479_vm12, %v913_v18, 0.0  ;;  %vm494_vm12 = vcmp.eq.s32.totalorder %v2571_v8, %v2687_v54 }
 0x373   : > { %1829 = vset.pattern.permute.xlu1 %v3312_v61  ;;  %1844 = vset.pattern.permute.xlu0 %v3322_v31  ;;  %v2826_v2 = vsel %vm3324_vm7, %v895_v56, 0.0  ;;  %vm596_vm7 = vcmp.eq.s32.totalorder %v2626_v20, %v2687_v54 }
 0x374   : > { %609 = vperm.xlu1 %1829, %v437_v14   ;;  %1000 = vperm.xlu0 %1844, %v2807_v38  }
 0x378   : > { %1831 = vset.pattern.permute.xlu1 %v3313_v63  ;;  %1847 = vset.pattern.permute.xlu0 %v3323_v21 }
 0x379   : > { %629 = vperm.xlu1 %1831, %v437_v14   ;;  %1031 = vperm.xlu0 %1847, %v2816_v16  }
 0x37d   : > { %1832 = vset.pattern.permute.xlu1 %v3314_v4  ;;  %1850 = vset.pattern.permute.xlu0 %v3271_v59 }
 0x37e   : > { %639 = vperm.xlu1 %1832, %v437_v14   ;;  %1062 = vperm.xlu0 %1850, %v2826_v2   ;;  %v2840_v14 = vsel %vm3325_vm9, %v904_v49, 0.0  ;;  %vm606_vm9 = vcmp.eq.s32.totalorder %v2664_v11, %v2687_v54 }
 0x382   : > { %1834 = vset.pattern.permute.xlu1 %v3317_v57  ;;  %1853 = vset.pattern.permute.xlu0 %v3320_v5 }
 0x383   : > { %660 = vperm.xlu1 %1834, %v450_v7   ;;  %1092 = vperm.xlu0 %1853, %v2826_v2  }
 0x387   : > { %1836 = vset.pattern.permute.xlu1 %v3314_v4  ;;  %1856 = vset.pattern.permute.xlu0 %v3322_v31 }
 0x388   : > { %680 = vperm.xlu1 %1836, %v450_v7   ;;  %1123 = vperm.xlu0 %1856, %v2840_v14   ;;  %v464_v7 = vmul.f32 %v461_v43, %v2206_v40  ;;  %v930_v40 = vmul.f32 %v927_v12, %v2734_v35 }
 0x38a   : > { %v467_v47 = vmul.f32 %v464_v7, %v2734_v35  ;;  %v2892_v39 = vsel %vm2509_vm14, %v930_v40, 0.0  ;;  %vm524_vm14 = vcmp.eq.s32.totalorder %v2580_v26, %v2687_v54 }
 0x38c   : > { %1837 = vset.pattern.permute.xlu1 %v3312_v61  ;;  %1164 = vperm.xlu0 %1856, %v2847_v25   ;;  %v2882_v37 = vsel %vm2497_vm11, %v467_v47, 0.0  ;;  %vm504_vm11 = vcmp.eq.s32.totalorder %v2576_v9, %v2687_v54 }
 0x38d   : > { %691 = vperm.xlu1 %1837, %v2855_v30  }
 0x390   : > { %1862 = vset.pattern.permute.xlu0 %v3314_v4 }
 0x391   : > { %1838 = vset.pattern.permute.xlu1 %v3271_v59  ;;  %721 = vperm.xlu0 %1862, %v2855_v30  }
 0x392   : > { %939 = vperm.xlu1 %1838, %v2796_v46  }
 0x395   : > { %1867 = vset.pattern.permute.xlu0 %v3323_v21 }
 0x396   : > { %1839 = vset.pattern.permute.xlu1 %v3323_v21  ;;  %1195 = vperm.xlu0 %1867, %v2872_v41  }
 0x397   : > { %949 = vperm.xlu1 %1839, %v2796_v46  }
 0x39a   : > { %1868 = vset.pattern.permute.xlu0 %v3313_v63 }
 0x39b   : > { %1840 = vset.pattern.permute.xlu1 %v3322_v31  ;;  %752 = vperm.xlu0 %1868, %v2882_v37  }
 0x39c   : > { %959 = vperm.xlu1 %1840, %v2796_v46   ;;  %v2901_v46 = vsel %vm2518_vm5, %v475_v29, 0.0  ;;  %vm535_vm5 = vcmp.eq.s32.totalorder %v2584_v53, %v2687_v54 }
 0x39f   : > { %1873 = vset.pattern.permute.xlu0 %v3271_v59 }
 0x3a0   : > { %1842 = vset.pattern.permute.xlu1 %v3271_v59  ;;  %1226 = vperm.xlu0 %1873, %v2892_v39  }
 0x3a1   : > { %980 = vperm.xlu1 %1842, %v2807_v38  }
 0x3a4   : > { %1874 = vset.pattern.permute.xlu0 %v3317_v57 }
 0x3a5   : > { %1843 = vset.pattern.permute.xlu1 %v3323_v21  ;;  %783 = vperm.xlu0 %1874, %v2901_v46  }
 0x3a6   : > { %990 = vperm.xlu1 %1843, %v2807_v38  }
 0x3a9   : > { %1879 = vset.pattern.permute.xlu0 %v3320_v5 }
 0x3aa   : > { %1845 = vset.pattern.permute.xlu1 %v3320_v5  ;;  %1256 = vperm.xlu0 %1879, %v2892_v39  }
 0x3ab   : > { %1010 = vperm.xlu1 %1845, %v2807_v38  }
 0x3af   : > { %1846 = vset.pattern.permute.xlu1 %v3271_v59 }
 0x3b0   : > { %1021 = vperm.xlu1 %1846, %v2816_v16  }
 0x3b4   : > { %1848 = vset.pattern.permute.xlu1 %v3322_v31 }
 0x3b5   : > { %1041 = vperm.xlu1 %1848, %v2816_v16  }
 0x3b9   : > { %1849 = vset.pattern.permute.xlu1 %v3320_v5 }
 0x3ba   : > { %1051 = vperm.xlu1 %1849, %v2816_v16  }
 0x3be   : > { %1851 = vset.pattern.permute.xlu1 %v3323_v21 }
 0x3bf   : > { %1072 = vperm.xlu1 %1851, %v2826_v2  }
 0x3c3   : > { %1852 = vset.pattern.permute.xlu1 %v3322_v31 }
 0x3c4   : > { %1082 = vperm.xlu1 %1852, %v2826_v2  }
 0x3c8   : > { %1854 = vset.pattern.permute.xlu1 %v3271_v59 }
 0x3c9   : > { %1103 = vperm.xlu1 %1854, %v2840_v14  }
 0x3cb   : > { %v497_v35 = vpop.permute.xlu0 %496  ;;  %v487_v38 = vpop.permute.xlu1 %486 }
 0x3cc   : > { %v489_v23 = vsel %vm483_vm10, %v487_v38, 0.0  ;;  %v499_v16 = vsel %vm494_vm12, %v497_v35, 0.0  ;;  %vm637_vm10 = vcmp.eq.s32.totalorder %v2684_v55, %v2687_v54  ;;  %vm647_vm12 = vcmp.eq.s32.totalorder %v2593_v50, %v2687_v54 }
 0x3cd   : > { %1855 = vset.pattern.permute.xlu1 %v3323_v21  ;;  %v500_v56 = vadd.f32 %v499_v16, %v489_v23 }
 0x3ce   : > { %1113 = vperm.xlu1 %1855, %v2840_v14  }
 0x3d0   : > { %v507_v1 = vpop.permute.xlu1 %506  ;;  %v528_v17 = vpop.permute.xlu0 %527 }
 0x3d1   : > { %v509_v2 = vsel %vm504_vm11, %v507_v1, 0.0  ;;  %v530_v9 = vsel %vm524_vm14, %v528_v17, 0.0  ;;  %vm658_vm11 = vcmp.eq.s32.totalorder %v2918_v58, %v2687_v54  ;;  %vm678_vm14 = vcmp.eq.s32.totalorder %v2600_v10, %v2687_v54 }
 0x3d2   : > { %v510_v15 = vadd.f32 %v509_v2, %v500_v56  ;;  %1857 = vset.pattern.permute.xlu1 %v3320_v5 }
 0x3d3   : > { %1133 = vperm.xlu1 %1857, %v2840_v14  }
 0x3d5   : > { %v517_v8 = vpop.permute.xlu1 %516  ;;  %v558_v26 = vpop.permute.xlu0 %557 }
 0x3d6   : > { %v519_v49 = vsel %vm514_vm15, %v517_v8, 0.0  ;;  %v560_v53 = vsel %vm555_vm1, %v558_v26, 0.0  ;;  %vm668_vm15 = vcmp.eq.s32.totalorder %v2596_v60, %v2687_v54  ;;  %vm936_vm1 = vcmp.eq.s32.totalorder %v2603_v44, %v2687_v54  ;;  %v3327_v44 = vld [vmem:[#allocation6_spill] sm:$0xff] }
 0x3d7   : > { %v520_v0 = vadd.f32 %v519_v49, %v510_v15  ;;  %1858 = vset.pattern.permute.xlu1 %v3271_v59 }
 0x3d8   : > { %1144 = vperm.xlu1 %1858, %v2847_v25  }
 0x3d9   : > { %v531_v42 = vadd.f32 %v530_v9, %v520_v0 }
 0x3da   : > { %v538_v14 = vpop.permute.xlu1 %537  ;;  %v589_v34 = vpop.permute.xlu0 %588 }
 0x3db   : > { %v540_v18 = vsel %vm535_vm5, %v538_v14, 0.0  ;;  %v591_v24 = vsel %vm586_vm3, %v589_v34, 0.0  ;;  %vm688_vm5 = vcmp.eq.s32.totalorder %v2666_v51, %v2687_v54  ;;  %v3330_v34 = vld [vmem:[#allocation8_spill] sm:$0xff] }
 0x3dc   : > { %v541_v22 = vadd.f32 %v540_v18, %v531_v42  ;;  %1859 = vset.pattern.permute.xlu1 %v3317_v57 }
 0x3dd   : > { %701 = vperm.xlu1 %1859, %v2855_v30  }
 0x3df   : > { %v548_v27 = vpop.permute.xlu1 %547  ;;  %v620_v45 = vpop.permute.xlu0 %619 }
 0x3e0   : > { %v550_v62 = vsel %vm545_vm0, %v548_v27, 0.0  ;;  %v622_v20 = vsel %vm617_vm4, %v620_v45, 0.0  ;;  %vm947_vm0 = vcmp.eq.s32.totalorder %v2639_v6, %v2687_v54  ;;  %vm1996_vm4 = vmmov 0  }
 0x3e1   : > { %v551_v19 = vadd.f32 %v550_v62, %v541_v22  ;;  %1860 = vset.pattern.permute.xlu1 %v3323_v21 }
 0x3e2   : > { %1154 = vperm.xlu1 %1860, %v2847_v25  }
 0x3e3   : > { %v561_v3 = vadd.f32 %v560_v53, %v551_v19 }
 0x3e4   : > { %v569_v43 = vpop.permute.xlu1 %568  ;;  %v651_v11 = vpop.permute.xlu0 %650 }
 0x3e5   : > { %v571_v7 = vsel %vm565_vm2, %v569_v43, 0.0  ;;  %v653_v52 = vsel %vm647_vm12, %v651_v11, 0.0  ;;  %vm957_vm2 = vcmp.eq.s32.totalorder %v2670_v32, %v2687_v54  ;;  %v3328_v32 = vld [vmem:[#allocation7_spill] sm:$0xff]  ;;  %v1261_v43 = vld [vmem:[%s275_s14 + $0x10] sm:$0xf]  ;;  %v3335_v11 = vld [vmem:[#allocation17_spill] sm:$0xff] }
 0x3e6   : > { %v572_v47 = vadd.f32 %v571_v7, %v561_v3  ;;  %1861 = vset.pattern.permute.xlu1 %v3313_v63  ;;  %vm977_vm3 = vcmp.eq.s32.totalorder %v3328_v32, %v2687_v54 }
 0x3e7   : > { %711 = vperm.xlu1 %1861, %v2855_v30  }
 0x3e9   : > { %v579_v48 = vpop.permute.xlu1 %578 }
 0x3ea   : > { %v581_v12 = vsel %vm576_vm13, %v579_v48, 0.0  ;;  %vm967_vm13 = vcmp.eq.s32.totalorder %v3327_v44, %v2687_v54 }
 0x3eb   : > { %v582_v40 = vadd.f32 %v581_v12, %v572_v47  ;;  %1863 = vset.pattern.permute.xlu1 %v3320_v5  ;;  %v1881_v47 = vld [vmem:[%s275_s14 + $0x8] sm:$0xff]  }
 0x3ec   : > { %1174 = vperm.xlu1 %1863, %v2847_v25  }
 0x3ed   : > { %v592_v33 = vadd.f32 %v591_v24, %v582_v40  ;;  %v3331_v40 = vld [vmem:[#allocation9_spill] sm:$0xff] }
 0x3ee   : > { %v599_v29 = vpop.permute.xlu1 %598 }
 0x3ef   : > { %v601_v30 = vsel %vm596_vm7, %v599_v29, 0.0  ;;  %v3332_v29 = vld [vmem:[#allocation14_spill] sm:$0xff] }
 0x3f0   : > { %v602_v35 = vadd.f32 %v601_v30, %v592_v33  ;;  %1864 = vset.pattern.permute.xlu1 %v3312_v61  ;;  %vm1018_vm12 = vcmp.eq.s32.totalorder %v3332_v29, %v2687_v54 }
 0x3f1   : > { %732 = vperm.xlu1 %1864, %v2882_v37  }
 0x3f3   : > { %v610_v36 = vpop.permute.xlu1 %609 }
 0x3f4   : > { %v612_v38 = vsel %vm606_vm9, %v610_v36, 0.0  ;;  %vm1266_vm9 = vcmask 1043456  }
 0x3f5   : > { %v613_v25 = vadd.f32 %v612_v38, %v602_v35  ;;  %1865 = vset.pattern.permute.xlu1 %v3271_v59  ;;  %v1268_v7 = vsel %vm1266_vm9, %v1261_v43, 0 }
 0x3f6   : > { %1185 = vperm.xlu1 %1865, %v2872_v41  }
 0x3f7   : > { %v623_v23 = vadd.f32 %v622_v20, %v613_v25  ;;  %v3333_v25 = vld [vmem:[#allocation22_spill] sm:$0xff] }
 0x3f8   : > { %v630_v16 = vpop.permute.xlu1 %629 }
 0x3f9   : > { %v632_v56 = vsel %vm627_vm6, %v630_v16, 0.0  ;;  %vm998_vm6 = vcmp.eq.s32.totalorder %v3330_v34, %v2687_v54  ;;  %v3334_v16 = vld [vmem:[#allocation23_spill] sm:$0xff] }
 0x3fa   : > { %v633_v1 = vadd.f32 %v632_v56, %v623_v23  ;;  %1866 = vset.pattern.permute.xlu1 %v3317_v57  ;;  %v671_v57 = vpop.permute.xlu0 %670 }
 0x3fb   : > { %742 = vperm.xlu1 %1866, %v2882_v37   ;;  %v673_v50 = vsel %vm668_vm15, %v671_v57, 0.0  ;;  %vm1039_vm15 = vcmp.eq.s32.totalorder %v3334_v16, %v2687_v54  ;;  %v3336_v57 = vld [vmem:[#allocation24_spill] sm:$0xff] }
 0x3fd   : > { %v640_v13 = vpop.permute.xlu1 %639 }
 0x3fe   : > { %v642_v59 = vsel %vm637_vm10, %v640_v13, 0.0  ;;  %v970_v18 = vpop.permute.xlu0 %969  ;;  %vm1008_vm10 = vcmp.eq.s32.totalorder %v3331_v40, %v2687_v54 }
 0x3ff   : > { %v643_v2 = vadd.f32 %v642_v59, %v633_v1  ;;  %1869 = vset.pattern.permute.xlu1 %v3322_v31  ;;  %v972_v6 = vsel %vm967_vm13, %v970_v18, 0.0  ;;  %v3341_v18 = vld [vmem:[#allocation11_spill] sm:$0xff] }
 0x400   : > { %1205 = vperm.xlu1 %1869, %v2872_v41  }
 0x401   : > { %v654_v15 = vadd.f32 %v653_v52, %v643_v2 }
 0x402   : > { %v661_v17 = vpop.permute.xlu1 %660  ;;  %v1001_v53 = vpop.permute.xlu0 %1000 }
 0x403   : > { %v663_v8 = vsel %vm658_vm11, %v661_v17, 0.0  ;;  %v1003_v48 = vsel %vm998_vm6, %v1001_v53, 0.0  ;;  %vm1029_vm11 = vcmp.eq.s32.totalorder %v3333_v25, %v2687_v54 }
 0x404   : > { %v664_v55 = vadd.f32 %v663_v8, %v654_v15  ;;  %1870 = vset.pattern.permute.xlu1 %v3314_v4 }
 0x405   : > { %762 = vperm.xlu1 %1870, %v2882_v37  }
 0x406   : > { %v674_v49 = vadd.f32 %v673_v50, %v664_v55  ;;  %v1032_v36 = vpop.permute.xlu0 %1031  ;;  %v3337_v55 = vld [vmem:[#allocation25_spill] sm:$0xff] }
 0x407   : > { %v681_v0 = vpop.permute.xlu1 %680  ;;  %v1034_v20 = vsel %vm1029_vm11, %v1032_v36, 0.0 }
 0x408   : > { %v683_v9 = vsel %vm678_vm14, %v681_v0, 0.0  ;;  %vm1049_vm14 = vcmp.eq.s32.totalorder %v3335_v11, %v2687_v54  ;;  %v3338_v0 = vld [vmem:[#allocation20_spill] sm:$0xff] }
 0x409   : > { %v684_v42 = vadd.f32 %v683_v9, %v674_v49  ;;  %1871 = vset.pattern.permute.xlu1 %v3320_v5  ;;  %v3350_v11 = vld [vmem:[#allocation16_spill] sm:$0xff] }
 0x40a   : > { %1215 = vperm.xlu1 %1871, %v2872_v41   ;;  %v1063_v52 = vpop.permute.xlu0 %1062 }
 0x40c   : > { %v692_v60 = vpop.permute.xlu1 %691 }
 0x40d   : > { %v694_v58 = vsel %vm688_vm5, %v692_v60, 0.0  ;;  %vm1059_vm5 = vcmp.eq.s32.totalorder %v3336_v57, %v2687_v54 }
 0x40e   : > { %v2993_v14 = vadd.f32 %v694_v58, %v684_v42  ;;  %1872 = vset.pattern.permute.xlu1 %v3312_v61  ;;  %v1065_v17 = vsel %vm1059_vm5, %v1063_v52, 0.0  ;;  %v1093_v58 = vpop.permute.xlu0 %1092 }
 0x40f   : > { %773 = vperm.xlu1 %1872, %v2901_v46  }
 0x411   : > { %v940_v37 = vpop.permute.xlu1 %939 }
 0x412   : > { %v942_v61 = vsel %vm936_vm1, %v940_v37, 0.0  ;;  %vm1080_vm1 = vcmp.eq.s32.totalorder %v3338_v0, %v2687_v54 }
 0x413   : > { %1875 = vset.pattern.permute.xlu1 %v3323_v21 }
 0x414   : > { %1236 = vperm.xlu1 %1875, %v2892_v39  }
 0x416   : > { %v950_v10 = vpop.permute.xlu1 %949 }
 0x417   : > { %v952_v51 = vsel %vm947_vm0, %v950_v10, 0.0  ;;  %vm1070_vm0 = vcmp.eq.s32.totalorder %v3337_v55, %v2687_v54  ;;  %v3339_v10 = vld [vmem:[#allocation27_spill] sm:$0xff] }
 0x418   : > { %1876 = vset.pattern.permute.xlu1 %v3313_v63  ;;  %v953_v5 = vadd.f32 %v952_v51, %v942_v61 }
 0x419   : > { %793 = vperm.xlu1 %1876, %v2901_v46  }
 0x41b   : > { %v960_v21 = vpop.permute.xlu1 %959 }
 0x41c   : > { %v962_v41 = vsel %vm957_vm2, %v960_v21, 0.0  ;;  %vm1090_vm2 = vcmp.eq.s32.totalorder %v3339_v10, %v2687_v54 }
 0x41d   : > { %v963_v22 = vadd.f32 %v962_v41, %v953_v5  ;;  %1877 = vset.pattern.permute.xlu1 %v3322_v31  ;;  %v1995_v31 = vmov 0.0   ;;  %v1095_v51 = vsel %vm1090_vm2, %v1093_v58, 0.0  ;;  %v3340_v5 = vld [vmem:[#allocation28_spill] sm:$0xff] }
 0x41e   : > { %1246 = vperm.xlu1 %1877, %v2892_v39   ;;  %1646 = vmatprep.subr.bf16.mxu0 %v1995_v31  ;;  %v3329_v39 = vld [vmem:[#allocation10_spill] sm:$0xff]  ;;  %vm1100_vm13 = vcmp.eq.s32.totalorder %v3340_v5, %v2687_v54 }
 0x41f   : > { %v973_v26 = vadd.f32 %v972_v6, %v963_v22  ;;  %1640 = vmatprep.subr.bf16.mxu1 %v1995_v31  ;;  %vm988_vm7 = vcmp.eq.s32.totalorder %v3329_v39, %v2687_v54  ;;  %1642 = vmatprep.mubr.msk.bf16.mxu1 %vm1996_vm4, %v1995_v31  ;;  %v3343_v39 = vld [vmem:[#allocation30_spill] sm:$0xff] }
 0x420   : > { %v981_v63 = vpop.permute.xlu1 %980  ;;  %1641 = vmatpush3.bf16.msra.mxu1 %v1268_v7  ;;  %1650 = vmatprep.mubr.msk.bf16.mxu0 %vm1996_vm4, %v1995_v31  ;;  %vm1131_vm9 = vcmp.eq.s32.totalorder %v3343_v39, %v2687_v54  ;;  %v3358_v39 = vld [vmem:[#allocation19_spill] sm:$0xff] }
 0x421   : > { %v983_v27 = vsel %vm977_vm3, %v981_v63, 0.0  ;;  %vm1111_vm3 = vcmp.eq.s32.totalorder %v3341_v18, %v2687_v54  ;;  %v1124_v63 = vpop.permute.xlu0 %1123  ;;  %v3355_v18 = vld [vmem:[#allocation18_spill] sm:$0xff] }
 0x422   : > { %1878 = vset.pattern.permute.xlu1 %v3314_v4  ;;  %v984_v62 = vadd.f32 %v983_v27, %v973_v26  ;;  %v3342_v26 = vld [vmem:[#allocation29_spill] sm:$0xff] }
 0x423   : > { %803 = vperm.xlu1 %1878, %v2901_v46   ;;  %v1880_v46 = vld [vmem:[%s275_s14] sm:$0xff]  }
 0x424   : > { %1647 = vmatpush3.bf16.msra.mxu0 %v1880_v46 }
 0x425   : > { %v991_v19 = vpop.permute.xlu1 %990  ;;  %1648 = vmatprep.subr.bf16.mxu0 %v1995_v31 }
 0x426   : > { %v993_v4 = vsel %vm988_vm7, %v991_v19, 0.0  ;;  %vm1121_vm7 = vcmp.eq.s32.totalorder %v3342_v26, %v2687_v54 }
 0x427   : > { %v994_v3 = vadd.f32 %v993_v4, %v984_v62  ;;  %v1126_v27 = vsel %vm1121_vm7, %v1124_v63, 0.0  ;;  %v3344_v4 = vld [vmem:[#allocation15_spill] sm:$0xff] }
 0x428   : > { %1649 = vmatpush3.bf16.msra.mxu0 %v1881_v47  ;;  %vm1141_vm4 = vcmp.eq.s32.totalorder %v3344_v4, %v2687_v54  ;;  %v3345_v47 = vld [vmem:[#allocation12_spill] sm:$0xff] }
 0x429   : > { %v1004_v24 = vadd.f32 %v1003_v48, %v994_v3  ;;  %vm1152_vm6 = vcmp.eq.s32.totalorder %v3345_v47, %v2687_v54  ;;  %v3346_v48 = vld [vmem:[#allocation31_spill] sm:$0xff] }
 0x42a   : > { %v1011_v12 = vpop.permute.xlu1 %1010 }
 0x42b   : > { %v1013_v33 = vsel %vm1008_vm10, %v1011_v12, 0.0  ;;  %vm699_vm10 = vcmp.eq.s32.totalorder %v3346_v48, %v2687_v54  ;;  %v3361_v48 = vld [vmem:[#allocation42_spill] sm:$0xff] }
 0x42c   : > { %v1014_v30 = vadd.f32 %v1013_v33, %v1004_v24  ;;  %v3347_v33 = vld [vmem:[#allocation13_spill] sm:$0xff] }
 0x42f   : > { %v1022_v35 = vpop.permute.xlu1 %1021 }
 0x430   : > { %v1024_v45 = vsel %vm1018_vm12, %v1022_v35, 0.0  ;;  %vm709_vm12 = vcmp.eq.s32.totalorder %v3347_v33, %v2687_v54 }
 0x431   : > { %v1025_v38 = vadd.f32 %v1024_v45, %v1014_v30 }
 0x433   : > { %v1035_v56 = vadd.f32 %v1034_v20, %v1025_v38  ;;  %v1165_v38 = vpop.permute.xlu0 %1164  ;;  %v3348_v20 = vld [vmem:[#allocation32_spill] sm:$0xff] }
 0x434   : > { %v1042_v23 = vpop.permute.xlu1 %1041  ;;  %vm1162_vm11 = vcmp.eq.s32.totalorder %v3348_v20, %v2687_v54 }
 0x435   : > { %v1044_v1 = vsel %vm1039_vm15, %v1042_v23, 0.0  ;;  %v3349_v23 = vld [vmem:[#allocation34_spill] sm:$0xff]  ;;  %v1167_v16 = vsel %vm1162_vm11, %v1165_v38, 0.0 }
 0x436   : > { %v1045_v13 = vadd.f32 %v1044_v1, %v1035_v56  ;;  %vm1172_vm15 = vcmp.eq.s32.totalorder %v3349_v23, %v2687_v54  ;;  %v3364_v23 = vld [vmem:[#allocation44_spill] sm:$0xff] }
 0x439   : > { %v1052_v59 = vpop.permute.xlu1 %1051 }
 0x43a   : > { %v1054_v2 = vsel %vm1049_vm14, %v1052_v59, 0.0  ;;  %vm1182_vm14 = vcmp.eq.s32.totalorder %v3350_v11, %v2687_v54  ;;  %v722_v59 = vpop.permute.xlu0 %721 }
 0x43b   : > { %v1055_v15 = vadd.f32 %v1054_v2, %v1045_v13 }
 0x43d   : > { %v1066_v50 = vadd.f32 %v1065_v17, %v1055_v15 }
 0x43e   : > { %v1073_v8 = vpop.permute.xlu1 %1072  ;;  %v1196_v57 = vpop.permute.xlu0 %1195 }
 0x43f   : > { %v1075_v49 = vsel %vm1070_vm0, %v1073_v8, 0.0  ;;  %v3351_v8 = vld [vmem:[#allocation33_spill] sm:$0xff] }
 0x440   : > { %v1076_v9 = vadd.f32 %v1075_v49, %v1066_v50  ;;  %vm719_vm5 = vcmp.eq.s32.totalorder %v3351_v8, %v2687_v54  ;;  %v3352_v50 = vld [vmem:[#allocation35_spill] sm:$0xff] }
 0x441   : > { %vm729_vm0 = vcmp.eq.s32.totalorder %v3352_v50, %v2687_v54  ;;  %v724_v49 = vsel %vm719_vm5, %v722_v59, 0.0  ;;  %vm3366_vm5 = vcmask 64512  }
 0x442   : > { %v753_v55 = vpop.permute.xlu0 %752 }
 0x443   : > { %v1083_v42 = vpop.permute.xlu1 %1082 }
 0x444   : > { %v1085_v60 = vsel %vm1080_vm1, %v1083_v42, 0.0  ;;  %vm740_vm1 = vcmp.eq.s32.totalorder %v2922_v28, %v2687_v54 }
 0x445   : > { %v1086_v37 = vadd.f32 %v1085_v60, %v1076_v9  ;;  %v3353_v60 = vld [vmem:[#allocation36_spill] sm:$0xff] }
 0x446   : > { %vm1193_vm2 = vcmp.eq.s32.totalorder %v3353_v60, %v2687_v54  ;;  %v1998_v60 = vmov (!%p1623_p0), 0.0|0.0  }
 0x447   : > { %v1096_v21 = vadd.f32 %v1095_v51, %v1086_v37  ;;  %v3354_v37 = vld [vmem:[#allocation38_spill] sm:$0xff]  ;;  %v1198_v10 = vsel %vm1193_vm2, %v1196_v57, 0.0  ;;  %1665 = vmatprep.subr.bf16.mxu0 (!%p1623_p0), %v1998_v60  ;;  %vm1393_vm2 = vcmask (!%p1623_p0), 130048  }
 0x448   : > { %v1104_v61 = vpop.permute.xlu1 %1103 }
 0x449   : > { %v1106_v41 = vsel %vm1100_vm13, %v1104_v61, 0.0  ;;  %vm1203_vm13 = vcmp.eq.s32.totalorder %v3354_v37, %v2687_v54  ;;  %v1398_v37 = vld [vmem:[%s3186_s2 + $0x8] sm:$0xff] (!%p1623_p0) }
 0x44a   : > { %v1107_v22 = vadd.f32 %v1106_v41, %v1096_v21  ;;  %v1227_v21 = vpop.permute.xlu0 %1226 }
 0x44d   : > { %v1114_v44 = vpop.permute.xlu1 %1113 }
 0x44e   : > { %v1116_v6 = vsel %vm1111_vm3, %v1114_v44, 0.0  ;;  %vm1213_vm3 = vcmp.eq.s32.totalorder %v3355_v18, %v2687_v54  ;;  %v3356_v44 = vld [vmem:[#allocation37_spill] sm:$0xff] }
 0x44f   : > { %v1117_v32 = vadd.f32 %v1116_v6, %v1107_v22  ;;  %vm750_vm7 = vcmp.eq.s32.totalorder %v3356_v44, %v2687_v54  ;;  %v3357_v6 = vld [vmem:[#allocation39_spill] sm:$0xff] }
 0x451   : > { %v1127_v62 = vadd.f32 %v1126_v27, %v1117_v32  ;;  %v755_v32 = vsel %vm750_vm7, %v753_v55, 0.0 }
 0x452   : > { %v1134_v31 = vpop.permute.xlu1 %1133 }
 0x453   : > { %v1136_v19 = vsel %vm1131_vm9, %v1134_v31, 0.0  ;;  %vm760_vm9 = vcmp.eq.s32.totalorder %v3357_v6, %v2687_v54 }
 0x454   : > { %v1137_v46 = vadd.f32 %v1136_v19, %v1127_v62  ;;  %v784_v62 = vpop.permute.xlu0 %783 }
 0x457   : > { %v1145_v53 = vpop.permute.xlu1 %1144 }
 0x458   : > { %v1147_v3 = vsel %vm1141_vm4, %v1145_v53, 0.0  ;;  %vm770_vm4 = vcmp.eq.s32.totalorder %v3358_v39, %v2687_v54  ;;  %v3359_v53 = vld [vmem:[#allocation41_spill] sm:$0xff]  ;;  %v1257_v38 = vpop.permute.xlu0 %1256 }
 0x459   : > { %v1148_v43 = vadd.f32 %v1147_v3, %v1137_v46 }
 0x45c   : > { %v702_v7 = vpop.permute.xlu1 %701 }
 0x45d   : > { %v704_v40 = vsel %vm699_vm10, %v702_v7, 0.0 }
 0x45e   : > { %v705_v29 = vadd.f32 %v704_v40, %v2993_v14 }
 0x461   : > { %v1155_v34 = vpop.permute.xlu1 %1154 }
 0x462   : > { %v1157_v12 = vsel %vm1152_vm6, %v1155_v34, 0.0  ;;  %vm781_vm6 = vcmp.eq.s32.totalorder %v3359_v53, %v2687_v54 }
 0x463   : > { %v1158_v24 = vadd.f32 %v1157_v12, %v1148_v43  ;;  %v3360_v43 = vld [vmem:[#allocation40_spill] sm:$0xff]  ;;  %v786_v7 = vsel %vm781_vm6, %v784_v62, 0.0 }
 0x464   : > { %vm1223_vm10 = vcmp.eq.s32.totalorder %v3360_v43, %v2687_v54 }
 0x465   : > { %v1168_v1 = vadd.f32 %v1167_v16, %v1158_v24  ;;  %v1229_v47 = vsel %vm1223_vm10, %v1227_v21, 0.0  ;;  %v2001_v21 = vmov (!%p1623_p0), 0.0  }
 0x466   : > { %v712_v30 = vpop.permute.xlu1 %711 }
 0x467   : > { %v714_v35 = vsel %vm709_vm12, %v712_v30, 0.0  ;;  %vm1234_vm12 = vcmp.eq.s32.totalorder %v3361_v48, %v2687_v54 }
 0x468   : > { %v715_v45 = vadd.f32 %v714_v35, %v705_v29  ;;  %v3362_v29 = vld [vmem:[#allocation43_spill] sm:$0xff] }
 0x469   : > { %vm791_vm11 = vcmp.eq.s32.totalorder %v3362_v29, %v2687_v54 }
 0x46a   : > { %v725_v9 = vadd.f32 %v724_v49, %v715_v45 }
 0x46b   : > { %v1175_v36 = vpop.permute.xlu1 %1174 }
 0x46c   : > { %v1177_v56 = vsel %vm1172_vm15, %v1175_v36, 0.0  ;;  %v3363_v36 = vld [vmem:[#allocation21_spill] sm:$0xff] }
 0x46d   : > { %v1178_v13 = vadd.f32 %v1177_v56, %v1168_v1  ;;  %vm1244_vm15 = vcmp.eq.s32.totalorder %v3363_v36, %v2687_v54 }
 0x470   : > { %v733_v25 = vpop.permute.xlu1 %732 }
 0x471   : > { %v735_v0 = vsel %vm729_vm0, %v733_v25, 0.0  ;;  %vm1322_vm0 = vcmask 261120  }
 0x472   : > { %v736_v51 = vadd.f32 %v735_v0, %v725_v9 }
 0x475   : > { %v1186_v14 = vpop.permute.xlu1 %1185 }
 0x476   : > { %v1188_v2 = vsel %vm1182_vm14, %v1186_v14, 0.0  ;;  %vm1254_vm14 = vcmp.eq.s32.totalorder %v3364_v23, %v2687_v54 }
 0x477   : > { %v1189_v52 = vadd.f32 %v1188_v2, %v1178_v13  ;;  %v1259_v56 = vsel %vm1254_vm14, %v1257_v38, 0.0 }
 0x479   : > { %v1199_v5 = vadd.f32 %v1198_v10, %v1189_v52 }
 0x47a   : > { %v743_v15 = vpop.permute.xlu1 %742 }
 0x47b   : > { %v745_v58 = vsel %vm740_vm1, %v743_v15, 0.0  ;;  %vm3367_vm1 = vmmov %vm3366_vm5 }
 0x47c   : > { %v746_v41 = vadd.f32 %v745_v58, %v736_v51  ;;  %v1397_v58 = vld [vmem:[%s3186_s2] sm:$0xff] (!%p1623_p0) }
 0x47d   : > { %v1666_v51 = vpack.c.bf16 (!%p1623_p0), %v1398_v37, %v1397_v58 }
 0x47e   : > { %v756_v31 = vadd.f32 %v755_v32, %v746_v41 }
 0x47f   : > { %v1206_v17 = vpop.permute.xlu1 %1205 }
 0x480   : > { %v1208_v61 = vsel %vm1203_vm13, %v1206_v17, 0.0  ;;  %vm1395_vm13 = vcmask (!%p1623_p0), 195584  }
 0x481   : > { %v1209_v22 = vadd.f32 %v1208_v61, %v1199_v5  ;;  %v1399_v61 = vld [vmem:[%s3186_s2 + $0x10] sm:$0xff] (!%p1623_p0)  ;;  %v1400_v5 = vld [vmem:[%s3186_s2 + $0x18] sm:$0xff] (!%p1623_p0) }
 0x482   : > { %v1669_v41 = vpack.c.bf16 (!%p1623_p0), %v1400_v5, %v1399_v61 }
 0x484   : > { %v763_v42 = vpop.permute.xlu1 %762 }
 0x485   : > { %v765_v26 = vsel %vm760_vm9, %v763_v42, 0.0 }
 0x486   : > { %v766_v19 = vadd.f32 %v765_v26, %v756_v31  ;;  %v1624_v26 = vld [vmem:[%s3187_s3] ss:$0 sm:$0xff] (!%p1623_p0) }
 0x489   : > { %v1216_v28 = vpop.permute.xlu1 %1215 }
 0x48a   : > { %v1218_v63 = vsel %vm1213_vm3, %v1216_v28, 0.0  ;;  %vm3368_vm3 = vcmask (!%p1623_p0), 64512  }
 0x48b   : > { %v1219_v27 = vadd.f32 %v1218_v63, %v1209_v22 }
 0x48d   : > { %v1230_v40 = vadd.f32 %v1229_v47, %v1219_v27 }
 0x48e   : > { %v774_v4 = vpop.permute.xlu1 %773 }
 0x48f   : > { %v776_v46 = vsel %vm770_vm4, %v774_v4, 0.0 }
 0x490   : > { %v777_v3 = vadd.f32 %v776_v46, %v766_v19 }
 0x492   : > { %v787_v34 = vadd.f32 %v786_v7, %v777_v3 }
 0x493   : > { %v1237_v12 = vpop.permute.xlu1 %1236 }
 0x494   : > { %v1239_v24 = vsel %vm1234_vm12, %v1237_v12, 0.0 }
 0x495   : > { %v1240_v33 = vadd.f32 %v1239_v24, %v1230_v40 }
 0x498   : > { %v794_v30 = vpop.permute.xlu1 %793 }
 0x499   : > { %v796_v35 = vsel %vm791_vm11, %v794_v30, 0.0 }
 0x49a   : > { %v797_v45 = vadd.f32 %v796_v35, %v787_v34 }
 0x49d   : > { %v1247_v25 = vpop.permute.xlu1 %1246 }
 0x49e   : > { %v1249_v20 = vsel %vm1244_vm15, %v1247_v25, 0.0 }
 0x49f   : > { %v1250_v16 = vadd.f32 %v1249_v20, %v1240_v33 }
 0x4a1   : > { %v1260_v1 = vadd.f32 %v1259_v56, %v1250_v16 }
 0x4a2   : > { %v804_v11 = vpop.permute.xlu1 %803 }
 0x4a3   : > { %v1262_v13 = vpack.c.bf16 %v1260_v1, %v1260_v1  ;;  %v806_v59 = vsel %vm801_vm8, %v804_v11, 0.0  ;;  %vm2000_vm8 = vmmov (!%p1623_p0), 0  }
 0x4a4   : > { %v807_v2 = vadd.f32 %v806_v59, %v797_v45 }
 0x4a5   : > { %1643 = vmatmul.mubr.msk.bf16.vlgmr.msra.gmra.mrb[0].mxu1 %vm3366_vm5, %v1262_v13 }
 0x4a6   : > { %v812_v52 = vpack.c.bf16 %v807_v2, %v807_v2 }
 0x4a8   : > { %1651 = vmatmul.mubr.msk.bf16.vlgmr.msra.gmra.mrb[0].mxu0 %vm1322_vm0, %v812_v52 }
 0x4a9   : > { %1662 = vmatprep.mubr.msk.f32.mxu0 (!%p1623_p0), %vm2000_vm8, %v2001_v21  ;;  %1667 = vmatpush3.bf16.msra.mxu0 (!%p1623_p0), %v1666_v51 }
 0x4aa   : > { %1668 = vmatprep.subr.bf16.mxu0 (!%p1623_p0), %v1998_v60 }
 0x4ad   : > { %1670 = vmatpush3.bf16.msra.mxu0 (!%p1623_p0), %v1669_v41 }
 0x578   : > { %v1304_v15 = vpop.f32.mrb[0].mxu1  ;;  %1372 = sbr.rel (%p1623_p0) target bundleno = 1750 (0x6d6), region = 40 }
 0x579   : > { %v1644_v57 = vpop.f32.mrb[1].mxu1 }
 0x57a   : > { %v1307_v17 = vpop.f32.mrb[2].mxu1 }
 0x57b   : > { %v1645_v8 = vpop.f32.mrb[3].mxu1  ;;  %v1360_v55 = vpop.f32.mrb[0].mxu0 }
 0x57c   : > { %v1361_v50 = vadd.f32 %v1360_v55, %v1304_v15  ;;  %v1652_v49 = vpop.f32.mrb[1].mxu0 }
 0x57d   : > { %v1363_v0 = vpop.f32.mrb[2].mxu0 }
 0x57e   : > { %1368 = vst.msk [vmem:[%s1367_s24] sm:$0xff] %vm3367_vm1, %v1361_v50  ;;  %v1653_v54 = vpop.f32.mrb[3].mxu0  ;;  %s2002_s24 = smov (!%p1623_p0), 16  }
 0x585   : > { %v1375_v9 = vld [vmem:[#allocation2 + $0x8] sm:$0xff]  ;;  %v1379_v42 = vld [vmem:[#allocation2 + $0x18] sm:$0xff]  ;;  %v1377_v10 = vld [vmem:[#allocation2 + $0x10] sm:$0xff] }
 0x586   : > { %1381 = vrot.lane.b32.xlu0 %v1375_v9, %s1997_s30  ;;  %1389 = vrot.lane.b32.xlu1 %v1379_v42, %s1999_s12  ;;  %v1373_v22 = vld [vmem:[#allocation2] sm:$0xff] }
 0x58a   : > { %1385 = vrot.lane.b32.xlu0 %v1377_v10, %s2002_s24 }
 0x5f8   : > { %v1382_v18 = vpop.permute.xlu0 %1381  ;;  %v1390_v28 = vpop.permute.xlu1 %1389 }
 0x5f9   : > { %v1392_v44 = vsel %vm3368_vm3, %v1373_v22, %v1382_v18 }
 0x5fc   : > { %v1386_v6 = vpop.permute.xlu0 %1385 }
 0x5fd   : > { %v1394_v63 = vsel %vm1393_vm2, %v1392_v44, %v1386_v6 }
 0x5fe   : > { %v1396_v32 = vsel %vm1395_vm13, %v1394_v63, %v1390_v28 }
 0x5ff   : > { %1663 = vmatmul.mubr.msk.f32.vlgmr.msra.gmra.mrb[0].mxu0 %vm1322_vm0, %v1396_v32 }
 0x6d2   : > { %v1477_v27 = vpop.f32.mrb[0].mxu0 }
 0x6d3   : > { %v1478_v31 = vadd.f32 %v1624_v26, %v1477_v27  ;;  %v1664_v39 = vpop.f32.mrb[1].mxu0 }
 0x6d5   : > { %1481 = vst.msk [vmem:[%s254_s29] sm:$0xff] %vm1322_vm0, %v1478_v31 }
 0x6d6 PF: > { %s1627_s9 = sshll.u32 %s1968_s19, 7  ;;  %s1497_s18 = sshll.u32 %s254_s29, 4  ;;  %s1498_s18 = int_to_ptr.vmem [resolvable:$true] %s1497_s18 }
 0x6d7   : > { %s3133_s12 = scalar_lea.hbm %s3188_s4, %s1627_s9  ;;  %s1483_s13 = scalar_lea.sflag [#allocation4], %s252_s10 }
 0x6d8   : > { %s1886_s14 = scalar_lea.vmem %s1498_s18, 128  ;;  %s2003_s23 = smov [#allocation3]  }
 0x6d9   : > { %p1887_p1 = scmp.ne.s32.totalorder %s1498_s18, %s1886_s14  ;;  %s1890_s24 = sshll.u32 %s2003_s23, 4  ;;  %s1891_s24 = int_to_ptr.vmem [resolvable:$false] %s1890_s24 }
 0x6da   : > { %s1892_s30 = scalar_lea.vmem %s1891_s24, 256  ;;  %p1893_p5 = scmp.lt.s32.totalorder %s1498_s18, %s1891_s24 }
 0x6db   : > { %p1888_p2 = pnand %p1887_p1, %p2078_p3  ;;  %p1894_p6 = scmp.lt.s32.totalorder %s1892_s30, %s1886_s14 }
 0x6dd   : > { %p1889_p4 = pneg %p1888_p2  ;;  %p1895_p7 = por %p1894_p6, %p1893_p5 }
 0x6df   : > { %p1896_p8 = pnand %p1895_p7, %p1889_p4 }
 0x6e1   : > { %1899 = shalt.err (!%p1896_p8)
}
 0x6e2   : > { %s1900_s19 = scalar_lea.hbm %s3133_s12, 128  ;;  %s1904_s29 = scalar_lea.hbm %s3188_s4, 256 }
 0x6e3   : > { %p1901_p10 = scmp.ne.s32.totalorder %s3133_s12, %s1900_s19  ;;  %p1905_p13 = scmp.lt.u32.totalorder %s3133_s12, %s3188_s4 }
 0x6e4   : > { %p1906_p0 = scmp.lt.u32.totalorder %s1904_s29, %s1900_s19  ;;  %p1908_p2 = scmp.lt.u32.totalorder %s1900_s19, %s3133_s12 }
 0x6e5   : > { %p1902_p11 = pnand %p1901_p10, %p2078_p3 }
 0x6e6   : > { %p1907_p1 = por %p1906_p0, %p1905_p13 }
 0x6e7   : > { %p1903_p12 = pneg %p1902_p11 }
 0x6e8   : > { %p1909_p4 = por %p1908_p2, %p1907_p1 }
 0x6ea   : > { %p1910_p5 = pnand %p1909_p4, %p1903_p12 }
 0x6ec   : > { %1913 = shalt.err (!%p1910_p5)
}
 0x6ed   : > { %1678 = dma.vmem_to_hbm [thread:$0]  (%p2078_p3), %s1498_s18, 128, %s3133_s12, %s1483_s13  }
 0x6ee PF: > { %p1684_p6 = scmp.ge.s32.totalorder %s1980_s22, 2  ;;  %s1509_s11 = sand.u32 1, %s1952_s15  }
 0x6ef   : > { %s1510_s7 = scalar_lea.sflag [#allocation4], %s1509_s11 }
 0x6f0   : > { %p1681_p7 = pnand %p1684_p6, %p2088_p9 }
 0x6f2   : > { %1947 = dma.done.wait (!%p1681_p7), %s1510_s7, 128  }
 0x6f3   : > { %1949 = vsyncadd (!%p1681_p7), %s1510_s7, 4294967168  ;;  %s17_s22 = sadd.s32 1, %s1980_s22   ;;  %s3369_s15 = smov %s1956_s16 }
 0x6f4   : > { %p14_p8 = scmp.ge.s32.totalorder %s17_s22, 10   ;;  %s3370_s16 = smov %s1960_s17 }
 0x6f5   : > { %s3371_s17 = smov %s2096_s5  ;;  %s3372_s18 = smov %s1972_s20 }
 0x6f6   : > { %s3373_s19 = smov %s1976_s21  ;;  %s3374_s20 = smov %s3377_s25 }
 0x6f7   : > { %s3375_s21 = smov %s3381_s26  ;;  %16 = sbr.rel (!%p14_p8) target bundleno = 5 (0x5), region = 82 }
 0x6fe   :  { %1515 = vsyncpa [#allocation4], 1 }
 0x6ff   :  { %1517 = vsyncpa [#allocation4 + $0x1], 1 }

</bundles_post_ra>
